<compile_context>
chip_gen: v7x
topology: tpu7x:2x2x1
jax: 0.10.0
libtpu: 0.0.40
codegen_flags: <defaults>
</compile_context>

<pallas_src>
import functools
import math

import jax
import jax.numpy as jnp
from jax import lax
from jax.experimental import pallas as pl
from jax.experimental.pallas import tpu as pltpu


# ----------------------------------------------------------------------------
# Pallas kernel: fused (im2col-matmul) conv + bias + optional ReLU
# ----------------------------------------------------------------------------

def _fused_matmul_kernel(x_ref, w_ref, b_ref, o_ref, *, relu):
    """out = maybe_relu(x @ w + bias); bf16 operands, f32 accumulate."""
    acc = jnp.dot(x_ref[...], w_ref[...], preferred_element_type=jnp.float32)
    acc = acc + b_ref[...]
    if relu:
        acc = jnp.maximum(acc, 0.0)
    o_ref[...] = acc.astype(o_ref.dtype)


def _choose_tm(M):
    """Largest M-tile that divides M and still gives >=2 grid steps (megacore),
    otherwise a single full-M block (full-dim blocks are exempt from (8,128))."""
    for tm in (512, 256, 128, 64):
        if M % tm == 0 and M // tm >= 2:
            return tm
    return M


def fused_conv_matmul(patches, w_mat, bias, relu, out_dtype):
    """patches: (M, K) im2col matrix, w_mat: (K, N) f32 (BN scale already folded),
    bias: (N,) f32. Returns (M, N) array of `out_dtype`."""
    M, K = patches.shape
    N = w_mat.shape[1]

    # Lane-dense output: pad Cout to a multiple of 128 (masked vst otherwise).
    n_pad = (-N) % 128
    if n_pad:
        w_mat = jnp.pad(w_mat, ((0, 0), (0, n_pad)))
        bias = jnp.pad(bias, ((0, n_pad),))
    Np = N + n_pad

    # bf16 sublane packing: pad the contraction dim to a multiple of 16 (zeros).
    k_pad = (-K) % 16
    if k_pad:
        patches = jnp.pad(patches, ((0, 0), (0, k_pad)))
        w_mat = jnp.pad(w_mat, ((0, k_pad), (0, 0)))
    Kp = K + k_pad

    patches = patches.astype(jnp.bfloat16)
    w_mat = w_mat.astype(jnp.bfloat16)
    bias = bias.reshape(1, Np).astype(jnp.float32)

    TM = _choose_tm(M)
    grid = (M // TM,)

    out = pl.pallas_call(
        functools.partial(_fused_matmul_kernel, relu=relu),
        out_shape=jax.ShapeDtypeStruct((M, Np), out_dtype),
        grid=grid,
        in_specs=[
            pl.BlockSpec((TM, Kp), lambda i: (i, 0)),
            pl.BlockSpec((Kp, Np), lambda i: (0, 0)),
            pl.BlockSpec((1, Np), lambda i: (0, 0)),
        ],
        out_specs=pl.BlockSpec((TM, Np), lambda i: (i, 0)),
        compiler_params=pltpu.CompilerParams(
            dimension_semantics=("parallel",)),
    )(patches, w_mat, bias)

    return out[:, :N] if n_pad else out


# ----------------------------------------------------------------------------
# JAX glue: NHWC im2col, pooling, parameter setup
# ----------------------------------------------------------------------------

def im2col_nhwc(x, kh, kw, stride, pad):
    """x: (B, H, W, C) -> patches (B*Ho*Wo, kh*kw*C) with (kh, kw, C) ordering.
    Channel stays on the lane axis; no large transpose is needed."""
    if pad:
        x = jnp.pad(x, ((0, 0), (pad, pad), (pad, pad), (0, 0)))
    B, H, W, C = x.shape
    Ho = (H - kh) // stride + 1
    Wo = (W - kw) // stride + 1
    cols = []
    for i in range(kh):
        for j in range(kw):
            cols.append(x[:, i:i + stride * Ho:stride, j:j + stride * Wo:stride, :])
    patches = jnp.concatenate(cols, axis=-1)            # (B, Ho, Wo, kh*kw*C)
    return patches.reshape(B * Ho * Wo, kh * kw * C), Ho, Wo


def conv_bn_relu(x, weight, scale, bias, stride, pad, relu, out_dtype):
    """Conv2d (NHWC activations, PyTorch OIHW weight) + folded BN + optional ReLU."""
    Cout, Cin, kh, kw = weight.shape
    B = x.shape[0]
    patches, Ho, Wo = im2col_nhwc(x, kh, kw, stride, pad)
    # (kh, kw, Cin, Cout) flatten matches the patch (kh, kw, C) ordering.
    w_mat = jnp.transpose(weight, (2, 3, 1, 0)).reshape(kh * kw * Cin, Cout)
    w_mat = w_mat * scale[None, :]                       # fold BN scale (f32, one-time)
    out = fused_conv_matmul(patches, w_mat, bias, relu, out_dtype)
    return out.reshape(B, Ho, Wo, Cout)


def _adaptive_bounds(in_size, out_size):
    return [(int(math.floor(i * in_size / out_size)),
             int(math.ceil((i + 1) * in_size / out_size))) for i in range(out_size)]


def adaptive_pool2d_nhwc(x, out_size, mode):
    """PyTorch-semantics adaptive max/avg pool, NHWC. Fast path when divisible."""
    B, H, W, C = x.shape
    if H % out_size == 0 and W % out_size == 0:
        kh, kw = H // out_size, W // out_size
        if mode == "max":
            return lax.reduce_window(
                x, jnp.array(-jnp.inf, x.dtype), lax.max,
                window_dimensions=(1, kh, kw, 1),
                window_strides=(1, kh, kw, 1), padding="VALID")
        s = lax.reduce_window(
            x.astype(jnp.float32), jnp.array(0.0, jnp.float32), lax.add,
            window_dimensions=(1, kh, kw, 1),
            window_strides=(1, kh, kw, 1), padding="VALID")
        return (s / float(kh * kw)).astype(x.dtype)
    hb = _adaptive_bounds(H, out_size)
    wb = _adaptive_bounds(W, out_size)
    rows = []
    for hs, he in hb:
        cols = []
        for ws, we in wb:
            win = x[:, hs:he, ws:we, :]
            if mode == "max":
                cols.append(jnp.max(win, axis=(1, 2)))
            else:
                cols.append(jnp.mean(win, axis=(1, 2)))
        rows.append(jnp.stack(cols, axis=1))             # (B, out_w, C)
    return jnp.stack(rows, axis=1)                       # (B, out_h, out_w, C)


def maxpool2d_3x3_s2_nhwc(x):
    return lax.reduce_window(
        x, jnp.array(-jnp.inf, x.dtype), lax.max,
        window_dimensions=(1, 3, 3, 1),
        window_strides=(1, 2, 2, 1), padding="VALID")


def bn_fold(gamma, beta, mean, var, eps=1e-5, conv_bias=None):
    scale = gamma * lax.rsqrt(var + eps)
    cb = 0.0 if conv_bias is None else conv_bias
    bias = (cb - mean) * scale + beta
    return scale, bias


def init_params(key, dic_size):
    ks = jax.random.split(key, 12)

    def conv_w(k, cout, cin, kh, kw):
        fan_in = cin * kh * kw
        return (jax.random.normal(k, (cout, cin, kh, kw), jnp.float32)
                / math.sqrt(fan_in))

    def bn_init(k, c):
        k1, k2 = jax.random.split(k)
        gamma = 1.0 + 0.1 * jax.random.normal(k1, (c,), jnp.float32)
        beta = 0.1 * jax.random.normal(k2, (c,), jnp.float32)
        return gamma, beta, jnp.zeros((c,), jnp.float32), jnp.ones((c,), jnp.float32)

    return {
        "w1": conv_w(ks[0], 64, 3, 7, 7),
        "bn1": bn_init(ks[1], 64),
        "w2": conv_w(ks[2], 128, 64, 7, 7),
        "bn2": bn_init(ks[3], 128),
        "w3": conv_w(ks[4], 128, 128, 3, 3),
        "b3": 0.01 * jax.random.normal(ks[5], (128,), jnp.float32),
        "bn3": bn_init(ks[6], 128),
        "w4": conv_w(ks[7], dic_size, 128, 3, 3),
        "b4": 0.01 * jax.random.normal(ks[8], (dic_size,), jnp.float32),
    }


# ----------------------------------------------------------------------------
# Forward pass (mirrors Conv.forward; BatchNorm in inference mode, folded stats)
# ----------------------------------------------------------------------------

def forward_single(params, x, noise_key, dic_size, output_len):
    q = int(round(math.sqrt(output_len)))
    assert q * q == output_len, "sqrt of output_len has to be an integer"
    B = x.shape[0]

    x = jnp.transpose(x, (0, 2, 3, 1)).astype(jnp.bfloat16)      # NCHW -> NHWC, bf16

    s1, b1 = bn_fold(*params["bn1"])
    x = conv_bn_relu(x, params["w1"], s1, b1, stride=1, pad=3, relu=True,
                     out_dtype=jnp.bfloat16)
    x = adaptive_pool2d_nhwc(x, q * 4, "max")

    s2, b2 = bn_fold(*params["bn2"])
    x = conv_bn_relu(x, params["w2"], s2, b2, stride=2, pad=3, relu=True,
                     out_dtype=jnp.bfloat16)

    s3, b3 = bn_fold(*params["bn3"], conv_bias=params["b3"])
    x = conv_bn_relu(x, params["w3"], s3, b3, stride=1, pad=1, relu=True,
                     out_dtype=jnp.bfloat16)

    x = maxpool2d_3x3_s2_nhwc(x)

    x = conv_bn_relu(x, params["w4"], jnp.ones((dic_size,), jnp.float32),
                     params["b4"], stride=1, pad=1, relu=False,
                     out_dtype=jnp.float32)
    x = adaptive_pool2d_nhwc(x, q, "avg").astype(jnp.float32)    # (B, q, q, dic)

    # NHWC reshape gives (B, output_len, dic) directly -- spatial is the softmax
    # axis, so the final torch transpose(1, 2) is already materialized.
    logits = x.reshape(B, output_len, dic_size)

    # Hard Gumbel-softmax forward value: one-hot of argmax((logits + g) / tau).
    # TODO(synk): straight-through gradient (y_hard - y_soft.detach() + y_soft)
    #             not implemented; forward value only.
    u = jax.random.uniform(noise_key, logits.shape, jnp.float32,
                           minval=1e-10, maxval=1.0)
    g = -jnp.log(-jnp.log(u))
    y = (logits + g) * (1.0 / 0.2)
    idx = jnp.argmax(y, axis=1)                                   # (B, dic)
    pos = lax.broadcasted_iota(jnp.int32, y.shape, 1)
    onehot = (pos == idx[:, None, :]).astype(jnp.float32)         # (B, L, dic)
    return onehot


def conv_forward(params, x, noise_key, dic_size=64, output_len=16):
    if x.ndim == 4:
        return forward_single(params, x, noise_key, dic_size, output_len)
    elif x.ndim == 5:
        # Fold frames into the batch: one pass, bigger M tiles, one launch set.
        B, F = x.shape[0], x.shape[1]
        xf = x.reshape((B * F,) + x.shape[2:])
        out = forward_single(params, xf, noise_key, dic_size, output_len)
        return out.reshape(B, F, output_len, dic_size)
    else:
        raise ValueError(f"input shape {x.shape} is incorrect")


# ----------------------------------------------------------------------------
if __name__ == "__main__":
    DIC_SIZE = 64
    OUTPUT_LEN = 16  # must be a perfect square (sqrt = 4)

    key = jax.random.PRNGKey(0)
    pkey, xkey, nkey = jax.random.split(key, 3)

    params = init_params(pkey, DIC_SIZE)
    x = jax.random.normal(xkey, (2, 3, 32, 32), jnp.float32)

    fwd = jax.jit(functools.partial(conv_forward,
                                    dic_size=DIC_SIZE, output_len=OUTPUT_LEN))
    out = fwd(params, x, nkey)
    out = jax.block_until_ready(out)

    assert out.shape == (2, OUTPUT_LEN, DIC_SIZE), out.shape
    # hard gumbel-softmax along the output_len axis -> each (batch, dic) column one-hot
    col_sums = jnp.sum(out, axis=1)
    assert bool(jnp.allclose(col_sums, 1.0)), "hard one-hot check failed"

    print("KERNEL_OK")
</pallas_src>

<mosaic_0001>
module attributes {stable_mosaic.version = 11 : i64} {
  func.func @_fused_matmul_kernel(%arg0: i32, %arg1: memref<512x160xbf16, #tpu.memory_space<vmem>>, %arg2: memref<160x128xbf16, #tpu.memory_space<vmem>>, %arg3: memref<1x128xf32, #tpu.memory_space<vmem>>, %arg4: memref<512x128xbf16, #tpu.memory_space<vmem>>) attributes {dimension_semantics = [#tpu.dimension_semantics<parallel>], iteration_bounds = array<i64: 4>, scalar_prefetch = 0 : i64, scratch_operands = 0 : i64, tpu.core_type = #tpu.core_type<tc>, window_params = [{transform_indices = @transform_0, window_bounds = array<i64: 512, 160>}, {pipeline_mode = #tpu.pipeline_mode<synchronous>, transform_indices = @transform_1, window_bounds = array<i64: 160, 128>}, {pipeline_mode = #tpu.pipeline_mode<synchronous>, transform_indices = @transform_2, window_bounds = array<i64: 1, 128>}, {transform_indices = @transform_3, window_bounds = array<i64: 512, 128>}]} {
    %c0 = arith.constant 0 : index
    %c0_0 = arith.constant 0 : index
    %0 = vector.load %arg1[%c0, %c0_0] : memref<512x160xbf16, #tpu.memory_space<vmem>>, vector<512x160xbf16>
    %c0_1 = arith.constant 0 : index
    %c0_2 = arith.constant 0 : index
    %1 = vector.load %arg2[%c0_1, %c0_2] : memref<160x128xbf16, #tpu.memory_space<vmem>>, vector<160x128xbf16>
    %cst = arith.constant dense<0.000000e+00> : vector<512x128xf32>
    %2 = tpu.matmul %0, %1, %cst {dimension_numbers = #tpu.dot_dimension_numbers<[1], [0], [0], [1], [0, 0, 1, 1], [], []>} : vector<512x160xbf16>, vector<160x128xbf16>, vector<512x128xf32> -> vector<512x128xf32>
    %c0_3 = arith.constant 0 : index
    %c0_4 = arith.constant 0 : index
    %3 = vector.load %arg3[%c0_3, %c0_4] : memref<1x128xf32, #tpu.memory_space<vmem>>, vector<1x128xf32>
    %4 = vector.broadcast %3 : vector<1x128xf32> to vector<512x128xf32>
    %5 = arith.addf %2, %4 : vector<512x128xf32>
    %cst_5 = arith.constant 0.000000e+00 : f32
    %6 = vector.broadcast %cst_5 : f32 to vector<512x128xf32>
    %7 = arith.maximumf %5, %6 : vector<512x128xf32>
    %8 = arith.truncf %7 : vector<512x128xf32> to vector<512x128xbf16>
    %c0_6 = arith.constant 0 : index
    %c0_7 = arith.constant 0 : index
    %9 = vector.load %arg4[%c0_6, %c0_7] : memref<512x128xbf16, #tpu.memory_space<vmem>>, vector<512x128xbf16>
    tpu.vector_store %arg4[%c0_6, %c0_7], %8 {strides = array<i32>} : memref<512x128xbf16, #tpu.memory_space<vmem>>, vector<512x128xbf16>,
    return
  }
  func.func @transform_0(%arg0: i32) -> (i32, i32) {
    %c0_i32 = arith.constant 0 : i32
    %c0_i32_0 = arith.constant 0 : i32
    return %arg0, %c0_i32 : i32, i32
  }
  func.func @transform_1(%arg0: i32) -> (i32, i32) {
    %c0_i32 = arith.constant 0 : i32
    %c0_i32_0 = arith.constant 0 : i32
    %c0_i32_1 = arith.constant 0 : i32
    return %c0_i32, %c0_i32_0 : i32, i32
  }
  func.func @transform_2(%arg0: i32) -> (i32, i32) {
    %c0_i32 = arith.constant 0 : i32
    %c0_i32_0 = arith.constant 0 : i32
    %c0_i32_1 = arith.constant 0 : i32
    return %c0_i32, %c0_i32_0 : i32, i32
  }
  func.func @transform_3(%arg0: i32) -> (i32, i32) {
    %c0_i32 = arith.constant 0 : i32
    %c0_i32_0 = arith.constant 0 : i32
    return %arg0, %c0_i32 : i32, i32
  }
}

module attributes {stable_mosaic.version = 11 : i64} {
  func.func @_fused_matmul_kernel(%arg0: i32, %arg1: memref<64x3136xbf16, #tpu.memory_space<vmem>>, %arg2: memref<3136x128xbf16, #tpu.memory_space<vmem>>, %arg3: memref<1x128xf32, #tpu.memory_space<vmem>>, %arg4: memref<64x128xbf16, #tpu.memory_space<vmem>>) attributes {dimension_semantics = [#tpu.dimension_semantics<parallel>], iteration_bounds = array<i64: 2>, scalar_prefetch = 0 : i64, scratch_operands = 0 : i64, tpu.core_type = #tpu.core_type<tc>, window_params = [{transform_indices = @transform_0, window_bounds = array<i64: 64, 3136>}, {pipeline_mode = #tpu.pipeline_mode<synchronous>, transform_indices = @transform_1, window_bounds = array<i64: 3136, 128>}, {pipeline_mode = #tpu.pipeline_mode<synchronous>, transform_indices = @transform_2, window_bounds = array<i64: 1, 128>}, {transform_indices = @transform_3, window_bounds = array<i64: 64, 128>}]} {
    %c0 = arith.constant 0 : index
    %c0_0 = arith.constant 0 : index
    %0 = vector.load %arg1[%c0, %c0_0] : memref<64x3136xbf16, #tpu.memory_space<vmem>>, vector<64x3136xbf16>
    %c0_1 = arith.constant 0 : index
    %c0_2 = arith.constant 0 : index
    %1 = vector.load %arg2[%c0_1, %c0_2] : memref<3136x128xbf16, #tpu.memory_space<vmem>>, vector<3136x128xbf16>
    %cst = arith.constant dense<0.000000e+00> : vector<64x128xf32>
    %2 = tpu.matmul %0, %1, %cst {dimension_numbers = #tpu.dot_dimension_numbers<[1], [0], [0], [1], [0, 0, 1, 1], [], []>} : vector<64x3136xbf16>, vector<3136x128xbf16>, vector<64x128xf32> -> vector<64x128xf32>
    %c0_3 = arith.constant 0 : index
    %c0_4 = arith.constant 0 : index
    %3 = vector.load %arg3[%c0_3, %c0_4] : memref<1x128xf32, #tpu.memory_space<vmem>>, vector<1x128xf32>
    %4 = vector.broadcast %3 : vector<1x128xf32> to vector<64x128xf32>
    %5 = arith.addf %2, %4 : vector<64x128xf32>
    %cst_5 = arith.constant 0.000000e+00 : f32
    %6 = vector.broadcast %cst_5 : f32 to vector<64x128xf32>
    %7 = arith.maximumf %5, %6 : vector<64x128xf32>
    %8 = arith.truncf %7 : vector<64x128xf32> to vector<64x128xbf16>
    %c0_6 = arith.constant 0 : index
    %c0_7 = arith.constant 0 : index
    %9 = vector.load %arg4[%c0_6, %c0_7] : memref<64x128xbf16, #tpu.memory_space<vmem>>, vector<64x128xbf16>
    tpu.vector_store %arg4[%c0_6, %c0_7], %8 {strides = array<i32>} : memref<64x128xbf16, #tpu.memory_space<vmem>>, vector<64x128xbf16>,
    return
  }
  func.func @transform_0(%arg0: i32) -> (i32, i32) {
    %c0_i32 = arith.constant 0 : i32
    %c0_i32_0 = arith.constant 0 : i32
    return %arg0, %c0_i32 : i32, i32
  }
  func.func @transform_1(%arg0: i32) -> (i32, i32) {
    %c0_i32 = arith.constant 0 : i32
    %c0_i32_0 = arith.constant 0 : i32
    %c0_i32_1 = arith.constant 0 : i32
    return %c0_i32, %c0_i32_0 : i32, i32
  }
  func.func @transform_2(%arg0: i32) -> (i32, i32) {
    %c0_i32 = arith.constant 0 : i32
    %c0_i32_0 = arith.constant 0 : i32
    %c0_i32_1 = arith.constant 0 : i32
    return %c0_i32, %c0_i32_0 : i32, i32
  }
  func.func @transform_3(%arg0: i32) -> (i32, i32) {
    %c0_i32 = arith.constant 0 : i32
    %c0_i32_0 = arith.constant 0 : i32
    return %arg0, %c0_i32 : i32, i32
  }
}

module attributes {stable_mosaic.version = 11 : i64} {
  func.func @_fused_matmul_kernel(%arg0: i32, %arg1: memref<64x1152xbf16, #tpu.memory_space<vmem>>, %arg2: memref<1152x128xbf16, #tpu.memory_space<vmem>>, %arg3: memref<1x128xf32, #tpu.memory_space<vmem>>, %arg4: memref<64x128xbf16, #tpu.memory_space<vmem>>) attributes {dimension_semantics = [#tpu.dimension_semantics<parallel>], iteration_bounds = array<i64: 2>, scalar_prefetch = 0 : i64, scratch_operands = 0 : i64, tpu.core_type = #tpu.core_type<tc>, window_params = [{transform_indices = @transform_0, window_bounds = array<i64: 64, 1152>}, {pipeline_mode = #tpu.pipeline_mode<synchronous>, transform_indices = @transform_1, window_bounds = array<i64: 1152, 128>}, {pipeline_mode = #tpu.pipeline_mode<synchronous>, transform_indices = @transform_2, window_bounds = array<i64: 1, 128>}, {transform_indices = @transform_3, window_bounds = array<i64: 64, 128>}]} {
    %c0 = arith.constant 0 : index
    %c0_0 = arith.constant 0 : index
    %0 = vector.load %arg1[%c0, %c0_0] : memref<64x1152xbf16, #tpu.memory_space<vmem>>, vector<64x1152xbf16>
    %c0_1 = arith.constant 0 : index
    %c0_2 = arith.constant 0 : index
    %1 = vector.load %arg2[%c0_1, %c0_2] : memref<1152x128xbf16, #tpu.memory_space<vmem>>, vector<1152x128xbf16>
    %cst = arith.constant dense<0.000000e+00> : vector<64x128xf32>
    %2 = tpu.matmul %0, %1, %cst {dimension_numbers = #tpu.dot_dimension_numbers<[1], [0], [0], [1], [0, 0, 1, 1], [], []>} : vector<64x1152xbf16>, vector<1152x128xbf16>, vector<64x128xf32> -> vector<64x128xf32>
    %c0_3 = arith.constant 0 : index
    %c0_4 = arith.constant 0 : index
    %3 = vector.load %arg3[%c0_3, %c0_4] : memref<1x128xf32, #tpu.memory_space<vmem>>, vector<1x128xf32>
    %4 = vector.broadcast %3 : vector<1x128xf32> to vector<64x128xf32>
    %5 = arith.addf %2, %4 : vector<64x128xf32>
    %cst_5 = arith.constant 0.000000e+00 : f32
    %6 = vector.broadcast %cst_5 : f32 to vector<64x128xf32>
    %7 = arith.maximumf %5, %6 : vector<64x128xf32>
    %8 = arith.truncf %7 : vector<64x128xf32> to vector<64x128xbf16>
    %c0_6 = arith.constant 0 : index
    %c0_7 = arith.constant 0 : index
    %9 = vector.load %arg4[%c0_6, %c0_7] : memref<64x128xbf16, #tpu.memory_space<vmem>>, vector<64x128xbf16>
    tpu.vector_store %arg4[%c0_6, %c0_7], %8 {strides = array<i32>} : memref<64x128xbf16, #tpu.memory_space<vmem>>, vector<64x128xbf16>,
    return
  }
  func.func @transform_0(%arg0: i32) -> (i32, i32) {
    %c0_i32 = arith.constant 0 : i32
    %c0_i32_0 = arith.constant 0 : i32
    return %arg0, %c0_i32 : i32, i32
  }
  func.func @transform_1(%arg0: i32) -> (i32, i32) {
    %c0_i32 = arith.constant 0 : i32
    %c0_i32_0 = arith.constant 0 : i32
    %c0_i32_1 = arith.constant 0 : i32
    return %c0_i32, %c0_i32_0 : i32, i32
  }
  func.func @transform_2(%arg0: i32) -> (i32, i32) {
    %c0_i32 = arith.constant 0 : i32
    %c0_i32_0 = arith.constant 0 : i32
    %c0_i32_1 = arith.constant 0 : i32
    return %c0_i32, %c0_i32_0 : i32, i32
  }
  func.func @transform_3(%arg0: i32) -> (i32, i32) {
    %c0_i32 = arith.constant 0 : i32
    %c0_i32_0 = arith.constant 0 : i32
    return %arg0, %c0_i32 : i32, i32
  }
}

module attributes {stable_mosaic.version = 11 : i64} {
  func.func @_fused_matmul_kernel(%arg0: i32, %arg1: memref<18x1152xbf16, #tpu.memory_space<vmem>>, %arg2: memref<1152x128xbf16, #tpu.memory_space<vmem>>, %arg3: memref<1x128xf32, #tpu.memory_space<vmem>>, %arg4: memref<18x128xf32, #tpu.memory_space<vmem>>) attributes {dimension_semantics = [#tpu.dimension_semantics<parallel>], iteration_bounds = array<i64: 1>, scalar_prefetch = 0 : i64, scratch_operands = 0 : i64, tpu.core_type = #tpu.core_type<tc>, window_params = [{transform_indices = @transform_0, window_bounds = array<i64: 18, 1152>}, {pipeline_mode = #tpu.pipeline_mode<synchronous>, transform_indices = @transform_1, window_bounds = array<i64: 1152, 128>}, {pipeline_mode = #tpu.pipeline_mode<synchronous>, transform_indices = @transform_2, window_bounds = array<i64: 1, 128>}, {transform_indices = @transform_3, window_bounds = array<i64: 18, 128>}]} {
    %c0 = arith.constant 0 : index
    %c0_0 = arith.constant 0 : index
    %0 = vector.load %arg1[%c0, %c0_0] : memref<18x1152xbf16, #tpu.memory_space<vmem>>, vector<18x1152xbf16>
    %c0_1 = arith.constant 0 : index
    %c0_2 = arith.constant 0 : index
    %1 = vector.load %arg2[%c0_1, %c0_2] : memref<1152x128xbf16, #tpu.memory_space<vmem>>, vector<1152x128xbf16>
    %cst = arith.constant dense<0.000000e+00> : vector<18x128xf32>
    %2 = tpu.matmul %0, %1, %cst {dimension_numbers = #tpu.dot_dimension_numbers<[1], [0], [0], [1], [0, 0, 1, 1], [], []>} : vector<18x1152xbf16>, vector<1152x128xbf16>, vector<18x128xf32> -> vector<18x128xf32>
    %c0_3 = arith.constant 0 : index
    %c0_4 = arith.constant 0 : index
    %3 = vector.load %arg3[%c0_3, %c0_4] : memref<1x128xf32, #tpu.memory_space<vmem>>, vector<1x128xf32>
    %4 = vector.broadcast %3 : vector<1x128xf32> to vector<18x128xf32>
    %5 = arith.addf %2, %4 : vector<18x128xf32>
    %c0_5 = arith.constant 0 : index
    %c0_6 = arith.constant 0 : index
    %6 = vector.load %arg4[%c0_5, %c0_6] : memref<18x128xf32, #tpu.memory_space<vmem>>, vector<18x128xf32>
    tpu.vector_store %arg4[%c0_5, %c0_6], %5 {strides = array<i32>} : memref<18x128xf32, #tpu.memory_space<vmem>>, vector<18x128xf32>,
    return
  }
  func.func @transform_0(%arg0: i32) -> (i32, i32) {
    %c0_i32 = arith.constant 0 : i32
    %c0_i32_0 = arith.constant 0 : i32
    return %arg0, %c0_i32 : i32, i32
  }
  func.func @transform_1(%arg0: i32) -> (i32, i32) {
    %c0_i32 = arith.constant 0 : i32
    %c0_i32_0 = arith.constant 0 : i32
    %c0_i32_1 = arith.constant 0 : i32
    return %c0_i32, %c0_i32_0 : i32, i32
  }
  func.func @transform_2(%arg0: i32) -> (i32, i32) {
    %c0_i32 = arith.constant 0 : i32
    %c0_i32_0 = arith.constant 0 : i32
    %c0_i32_1 = arith.constant 0 : i32
    return %c0_i32, %c0_i32_0 : i32, i32
  }
  func.func @transform_3(%arg0: i32) -> (i32, i32) {
    %c0_i32 = arith.constant 0 : i32
    %c0_i32_0 = arith.constant 0 : i32
    return %arg0, %c0_i32 : i32, i32
  }
}

</mosaic_0001>

<bundles_post_ra>
// kernel: conv_forward.4
= control target key start
LH: loop header
LB: loop body
LE: loop exit
PB: predicated region body
PF: predicated region fallthrough
CT: control target
= control target key end

     0   :  { %s2046_s12 = smov 0   ;;  %s2298_s0 = inlined_call_operand.vmem [shape: bf16[2048,160], index: 0, kind: input, shape index: {}]   ;;  %s2299_s1 = inlined_call_operand.vmem [shape: bf16[160,128], index: 1, kind: input, shape index: {}]   ;;  %s2300_s2 = inlined_call_operand.vmem [shape: f32[1,128], index: 2, kind: input, shape index: {}]   ;;  %s2301_s3 = inlined_call_operand.vmem [shape: bf16[2048,128], index: 3, kind: output, shape index: {}]  }
   0x1 LB: > { %s1443_s13 = sadd.s32 4294967295, %s2023_s12   ;;  %p1447_p0 = scmp.ge.s32.totalorder %s2023_s12, 1  ;;  %s2023_s12 = sphi %s2046_s12, %s13_s12  }
   0x2   : > { %p139_p1 = scmp.lt.s32.totalorder %s2023_s12, 5 }
   0x4   : > { %p140_p2 = pnand %p1447_p0, %p139_p1 }
   0x5   : > { %v1911_v0 = vld [vmem:[%s2299_s1] sm:$0xff] (!%p140_p2)   ;;  %v2025_v1 = vmov (!%p140_p2), 0   ;;  %s1448_s16 = sshll.u32 (!%p140_p2), %s1443_s13, 6  ;;  %v1912_v2 = vld [vmem:[%s2299_s1 + $0x8] sm:$0xff] (!%p140_p2)   ;;  %v1913_v3 = vld [vmem:[%s2299_s1 + $0x10] sm:$0xff] (!%p140_p2)   ;;  %vm617_vm0 = vcmask (!%p140_p2), 261120  }
   0x6   : > { %143 = sbr.rel (%p140_p2) target bundleno = 387 (0x183), region = 32  ;;  %714 = vmatprep.subr.bf16.mxu0 (!%p140_p2), %v2025_v1  ;;  %1882 = vmatprep.subr.bf16.mxu1 (!%p140_p2), %v2025_v1  ;;  %p165_p3 = scmp.lt.s32.totalorder (!%p140_p2), %s1448_s16, 255  ;;  %v1914_v4 = vld [vmem:[%s2299_s1 + $0x18] sm:$0xff] (!%p140_p2)   ;;  %v1915_v7 = vld [vmem:[%s2299_s1 + $0x20] sm:$0xff] (!%p140_p2)   ;;  %v1916_v8 = vld [vmem:[%s2299_s1 + $0x28] sm:$0xff] (!%p140_p2)  }
   0x7   : > { %715 = vmatpush1.bf16.msra.mxu0 (!%p140_p2), %v1911_v0  ;;  %1892 = vmatpush1.bf16.msra.mxu1 (!%p140_p2), %v1911_v0  ;;  %v1917_v9 = vld [vmem:[%s2299_s1 + $0x30] sm:$0xff] (!%p140_p2)   ;;  %v1918_v10 = vld [vmem:[%s2299_s1 + $0x38] sm:$0xff] (!%p140_p2)   ;;  %v1919_v11 = vld [vmem:[%s2299_s1 + $0x40] sm:$0xff] (!%p140_p2)  }
   0x8   : > { %716 = vmatprep.subr.bf16.mxu0 (!%p140_p2), %v2025_v1  ;;  %1883 = vmatprep.subr.bf16.mxu1 (!%p140_p2), %v2025_v1  ;;  %v1920_v12 = vld [vmem:[%s2299_s1 + $0x48] sm:$0xff] (!%p140_p2)  }
   0xb   : > { %717 = vmatpush1.bf16.msra.mxu0 (!%p140_p2), %v1912_v2  ;;  %1893 = vmatpush1.bf16.msra.mxu1 (!%p140_p2), %v1912_v2 }
   0xc   : > { %718 = vmatprep.subr.bf16.mxu0 (!%p140_p2), %v2025_v1  ;;  %1884 = vmatprep.subr.bf16.mxu1 (!%p140_p2), %v2025_v1 }
   0xd   : > { %s2303_s16 = smov (!%p165_p3, %s1448_s16), 255 }
   0xe   : > { %s1626_s21 = sshll.u32 %s2303_s16, 3  ;;  %s1452_s15 = sshll.u32 %s2303_s16, 2 }
   0xf   : > { %s2069_s24 = scalar_lea.vmem %s2298_s0, %s1626_s21  ;;  %719 = vmatpush1.bf16.msra.mxu0 %v1913_v3  ;;  %1894 = vmatpush1.bf16.msra.mxu1 %v1913_v3  ;;  %s2201_s19 = scalar_lea.vmem %s2301_s3, %s1452_s15 }
  0x10   : > { %720 = vmatprep.subr.bf16.mxu0 %v2025_v1  ;;  %1885 = vmatprep.subr.bf16.mxu1 %v2025_v1  ;;  %v1923_v5 = vld [vmem:[%s2069_s24 + $0x4] ss:$8 sps:$4 sm:$0xff]   ;;  %v1921_v13 = vld [vmem:[%s2069_s24] ss:$8 sps:$4 sm:$0xff]   ;;  %v1927_v15 = vld [vmem:[%s2069_s24 + $0x14] ss:$8 sps:$4 sm:$0xff]  }
  0x11   : > { %v1926_v6 = vld [vmem:[%s2069_s24 + $0x104] ss:$8 sps:$4 sm:$0xff]   ;;  %1528 = vmatprep.mubr.msk.bf16.mxu0 %vm617_vm0, %v1923_v5  ;;  %v1924_v14 = vld [vmem:[%s2069_s24 + $0x100] ss:$8 sps:$4 sm:$0xff]   ;;  %v1929_v16 = vld [vmem:[%s2069_s24 + $0x114] ss:$8 sps:$4 sm:$0xff]  }
  0x12   : > { %1544 = vmatprep.mubr.msk.bf16.mxu1 %vm617_vm0, %v1926_v6  ;;  %v1931_v17 = vld [vmem:[%s2069_s24 + $0x10] ss:$8 sps:$4 sm:$0xff]   ;;  %v1933_v19 = vld [vmem:[%s2069_s24 + $0x24] ss:$8 sps:$4 sm:$0xff]   ;;  %v1937_v21 = vld [vmem:[%s2069_s24 + $0x20] ss:$8 sps:$4 sm:$0xff]  }
  0x13   : > { %721 = vmatpush1.bf16.msra.mxu0 %v1914_v4  ;;  %1895 = vmatpush1.bf16.msra.mxu1 %v1914_v4  ;;  %v1932_v18 = vld [vmem:[%s2069_s24 + $0x110] ss:$8 sps:$4 sm:$0xff]   ;;  %v1935_v20 = vld [vmem:[%s2069_s24 + $0x124] ss:$8 sps:$4 sm:$0xff]   ;;  %v1938_v22 = vld [vmem:[%s2069_s24 + $0x120] ss:$8 sps:$4 sm:$0xff]  }
  0x14   : > { %722 = vmatprep.subr.bf16.mxu0 %v2025_v1  ;;  %1886 = vmatprep.subr.bf16.mxu1 %v2025_v1  ;;  %v1939_v23 = vld [vmem:[%s2069_s24 + $0x34] ss:$8 sps:$4 sm:$0xff]   ;;  %v1943_v25 = vld [vmem:[%s2069_s24 + $0x30] ss:$8 sps:$4 sm:$0xff]   ;;  %v1945_v27 = vld [vmem:[%s2069_s24 + $0x44] ss:$8 sps:$4 sm:$0xff]  }
  0x15   : > { %v1941_v24 = vld [vmem:[%s2069_s24 + $0x134] ss:$8 sps:$4 sm:$0xff]   ;;  %v1944_v26 = vld [vmem:[%s2069_s24 + $0x130] ss:$8 sps:$4 sm:$0xff]   ;;  %v1947_v28 = vld [vmem:[%s2069_s24 + $0x144] ss:$8 sps:$4 sm:$0xff]  }
  0x16   : > { %v1949_v29 = vld [vmem:[%s2069_s24 + $0x40] ss:$8 sps:$4 sm:$0xff]   ;;  %v1951_v31 = vld [vmem:[%s2069_s24 + $0x54] ss:$8 sps:$4 sm:$0xff]   ;;  %v1955_v33 = vld [vmem:[%s2069_s24 + $0x50] ss:$8 sps:$4 sm:$0xff]  }
  0x17   : > { %723 = vmatpush1.bf16.msra.mxu0 %v1915_v7  ;;  %1896 = vmatpush1.bf16.msra.mxu1 %v1915_v7  ;;  %v1950_v30 = vld [vmem:[%s2069_s24 + $0x140] ss:$8 sps:$4 sm:$0xff]   ;;  %v1953_v32 = vld [vmem:[%s2069_s24 + $0x154] ss:$8 sps:$4 sm:$0xff]   ;;  %v1956_v34 = vld [vmem:[%s2069_s24 + $0x150] ss:$8 sps:$4 sm:$0xff]  }
  0x18   : > { %724 = vmatprep.subr.bf16.mxu0 %v2025_v1  ;;  %1887 = vmatprep.subr.bf16.mxu1 %v2025_v1  ;;  %v1957_v35 = vld [vmem:[%s2069_s24 + $0x64] ss:$8 sps:$4 sm:$0xff]   ;;  %v1961_v37 = vld [vmem:[%s2069_s24 + $0x60] ss:$8 sps:$4 sm:$0xff]   ;;  %v1963_v39 = vld [vmem:[%s2069_s24 + $0x74] ss:$8 sps:$4 sm:$0xff]  }
  0x19   : > { %v1959_v36 = vld [vmem:[%s2069_s24 + $0x164] ss:$8 sps:$4 sm:$0xff]   ;;  %v1962_v38 = vld [vmem:[%s2069_s24 + $0x160] ss:$8 sps:$4 sm:$0xff]   ;;  %v1965_v40 = vld [vmem:[%s2069_s24 + $0x174] ss:$8 sps:$4 sm:$0xff]  }
  0x1a   : > { %v1967_v41 = vld [vmem:[%s2069_s24 + $0x70] ss:$8 sps:$4 sm:$0xff]   ;;  %v1969_v43 = vld [vmem:[%s2069_s24 + $0x84] ss:$8 sps:$4 sm:$0xff]   ;;  %v1973_v45 = vld [vmem:[%s2069_s24 + $0x80] ss:$8 sps:$4 sm:$0xff]  }
  0x1b   : > { %725 = vmatpush1.bf16.msra.mxu0 %v1916_v8  ;;  %1897 = vmatpush1.bf16.msra.mxu1 %v1916_v8  ;;  %v1968_v42 = vld [vmem:[%s2069_s24 + $0x170] ss:$8 sps:$4 sm:$0xff]   ;;  %v1971_v44 = vld [vmem:[%s2069_s24 + $0x184] ss:$8 sps:$4 sm:$0xff]   ;;  %v1974_v46 = vld [vmem:[%s2069_s24 + $0x180] ss:$8 sps:$4 sm:$0xff]  }
  0x1c   : > { %726 = vmatprep.subr.bf16.mxu0 %v2025_v1  ;;  %1888 = vmatprep.subr.bf16.mxu1 %v2025_v1  ;;  %v1975_v47 = vld [vmem:[%s2069_s24 + $0x94] ss:$8 sps:$4 sm:$0xff]   ;;  %v1979_v49 = vld [vmem:[%s2069_s24 + $0x90] ss:$8 sps:$4 sm:$0xff]   ;;  %v1981_v51 = vld [vmem:[%s2069_s24 + $0xa4] ss:$8 sps:$4 sm:$0xff]  }
  0x1d   : > { %v1977_v48 = vld [vmem:[%s2069_s24 + $0x194] ss:$8 sps:$4 sm:$0xff]   ;;  %v1980_v50 = vld [vmem:[%s2069_s24 + $0x190] ss:$8 sps:$4 sm:$0xff]   ;;  %v1983_v52 = vld [vmem:[%s2069_s24 + $0x1a4] ss:$8 sps:$4 sm:$0xff]  }
  0x1e   : > { %v1985_v53 = vld [vmem:[%s2069_s24 + $0xa0] ss:$8 sps:$4 sm:$0xff]   ;;  %v1987_v55 = vld [vmem:[%s2069_s24 + $0xb4] ss:$8 sps:$4 sm:$0xff]   ;;  %v1991_v57 = vld [vmem:[%s2069_s24 + $0xb0] ss:$8 sps:$4 sm:$0xff]  }
  0x1f   : > { %727 = vmatpush1.bf16.msra.mxu0 %v1917_v9  ;;  %1898 = vmatpush1.bf16.msra.mxu1 %v1917_v9  ;;  %v1986_v54 = vld [vmem:[%s2069_s24 + $0x1a0] ss:$8 sps:$4 sm:$0xff]   ;;  %v1989_v56 = vld [vmem:[%s2069_s24 + $0x1b4] ss:$8 sps:$4 sm:$0xff]   ;;  %v1992_v58 = vld [vmem:[%s2069_s24 + $0x1b0] ss:$8 sps:$4 sm:$0xff]  }
  0x20   : > { %728 = vmatprep.subr.bf16.mxu0 %v2025_v1  ;;  %1889 = vmatprep.subr.bf16.mxu1 %v2025_v1  ;;  %v1993_v59 = vld [vmem:[%s2069_s24 + $0xc4] ss:$8 sps:$4 sm:$0xff]   ;;  %v1997_v61 = vld [vmem:[%s2069_s24 + $0xc0] ss:$8 sps:$4 sm:$0xff]   ;;  %v1999_v63 = vld [vmem:[%s2069_s24 + $0xd4] ss:$8 sps:$4 sm:$0xff]  }
  0x21   : > { %v1995_v60 = vld [vmem:[%s2069_s24 + $0x1c4] ss:$8 sps:$4 sm:$0xff]   ;;  %v1998_v62 = vld [vmem:[%s2069_s24 + $0x1c0] ss:$8 sps:$4 sm:$0xff]   ;;  %v2001_v0 = vld [vmem:[%s2069_s24 + $0x1d4] ss:$8 sps:$4 sm:$0xff]  }
  0x22   : > { %v2004_v2 = vld [vmem:[%s2069_s24 + $0x1d0] ss:$8 sps:$4 sm:$0xff]   ;;  %v2005_v3 = vld [vmem:[%s2069_s24 + $0xe4] ss:$8 sps:$4 sm:$0xff]   ;;  %v2009_v5 = vld [vmem:[%s2069_s24 + $0xe0] ss:$8 sps:$4 sm:$0xff]  }
  0x23   : > { %729 = vmatpush1.bf16.msra.mxu0 %v1918_v10  ;;  %1899 = vmatpush1.bf16.msra.mxu1 %v1918_v10  ;;  %v2007_v4 = vld [vmem:[%s2069_s24 + $0x1e4] ss:$8 sps:$4 sm:$0xff]   ;;  %v2010_v6 = vld [vmem:[%s2069_s24 + $0x1e0] ss:$8 sps:$4 sm:$0xff]   ;;  %v2011_v7 = vld [vmem:[%s2069_s24 + $0xf4] ss:$8 sps:$4 sm:$0xff]  }
  0x24   : > { %730 = vmatprep.subr.bf16.mxu0 %v2025_v1  ;;  %1890 = vmatprep.subr.bf16.mxu1 %v2025_v1  ;;  %v2013_v8 = vld [vmem:[%s2069_s24 + $0x1f4] ss:$8 sps:$4 sm:$0xff]   ;;  %v2015_v9 = vld [vmem:[%s2069_s24 + $0xf0] ss:$8 sps:$4 sm:$0xff]  }
  0x25   : > { %v2016_v10 = vld [vmem:[%s2069_s24 + $0x1f0] ss:$8 sps:$4 sm:$0xff]  }
  0x27   : > { %731 = vmatpush1.bf16.msra.mxu0 %v1919_v11  ;;  %1900 = vmatpush1.bf16.msra.mxu1 %v1919_v11  ;;  %v2191_v11 = vld [vmem:[%s2300_s2] ss:$0 sm:$0xff] }
  0x28   : > { %732 = vmatprep.subr.bf16.mxu0 %v2025_v1  ;;  %1891 = vmatprep.subr.bf16.mxu1 %v2025_v1  ;;  %v2003_v1 = vld [vmem:[%s2069_s24 + $0xd0] ss:$8 sps:$4 sm:$0xff]  }
  0x2b   : > { %733 = vmatpush1.bf16.msra.mxu0 %v1920_v12  ;;  %1901 = vmatpush1.bf16.msra.mxu1 %v1920_v12 }
  0x2e   : > { %747 = vmatmul.mubr.bf16.vlgmr.msra.gmra.mrb[0].mxu0 %v1921_v13  ;;  %875 = vmatmul.mubr.bf16.vlgmr.msra.gmra.mrb[0].mxu1 %v1924_v14 }
  0x2f   : > { %1529 = vmatprep.mubr.msk.bf16.mxu0 %vm617_vm0, %v1927_v15  ;;  %1545 = vmatprep.mubr.msk.bf16.mxu1 %vm617_vm0, %v1929_v16 }
  0x36   : > { %755 = vmatmul.mubr.bf16.gmra.mrb[4].mxu0 %v1931_v17  ;;  %883 = vmatmul.mubr.bf16.gmra.mrb[4].mxu1 %v1932_v18 }
  0x37   : > { %1530 = vmatprep.mubr.msk.bf16.mxu0 %vm617_vm0, %v1933_v19  ;;  %1546 = vmatprep.mubr.msk.bf16.mxu1 %vm617_vm0, %v1935_v20 }
  0x3e   : > { %763 = vmatmul.mubr.bf16.gmra.mrb[8].mxu0 %v1937_v21  ;;  %891 = vmatmul.mubr.bf16.gmra.mrb[8].mxu1 %v1938_v22 }
  0x3f   : > { %1531 = vmatprep.mubr.msk.bf16.mxu0 %vm617_vm0, %v1939_v23  ;;  %1547 = vmatprep.mubr.msk.bf16.mxu1 %vm617_vm0, %v1941_v24 }
  0x46   : > { %771 = vmatmul.mubr.bf16.gmra.mrb[12].mxu0 %v1943_v25  ;;  %899 = vmatmul.mubr.bf16.gmra.mrb[12].mxu1 %v1944_v26 }
  0x47   : > { %1532 = vmatprep.mubr.msk.bf16.mxu0 %vm617_vm0, %v1945_v27  ;;  %1548 = vmatprep.mubr.msk.bf16.mxu1 %vm617_vm0, %v1947_v28 }
  0x4e   : > { %779 = vmatmul.mubr.bf16.gmra.mrb[16].mxu0 %v1949_v29  ;;  %907 = vmatmul.mubr.bf16.gmra.mrb[16].mxu1 %v1950_v30 }
  0x4f   : > { %1533 = vmatprep.mubr.msk.bf16.mxu0 %vm617_vm0, %v1951_v31  ;;  %1549 = vmatprep.mubr.msk.bf16.mxu1 %vm617_vm0, %v1953_v32 }
  0x56   : > { %787 = vmatmul.mubr.bf16.gmra.mrb[20].mxu0 %v1955_v33  ;;  %915 = vmatmul.mubr.bf16.gmra.mrb[20].mxu1 %v1956_v34 }
  0x57   : > { %1534 = vmatprep.mubr.msk.bf16.mxu0 %vm617_vm0, %v1957_v35  ;;  %1550 = vmatprep.mubr.msk.bf16.mxu1 %vm617_vm0, %v1959_v36 }
  0x5e   : > { %795 = vmatmul.mubr.bf16.gmra.mrb[24].mxu0 %v1961_v37  ;;  %923 = vmatmul.mubr.bf16.gmra.mrb[24].mxu1 %v1962_v38 }
  0x5f   : > { %1535 = vmatprep.mubr.msk.bf16.mxu0 %vm617_vm0, %v1963_v39  ;;  %1551 = vmatprep.mubr.msk.bf16.mxu1 %vm617_vm0, %v1965_v40 }
  0x66   : > { %803 = vmatmul.mubr.bf16.gmra.mrb[28].mxu0 %v1967_v41  ;;  %931 = vmatmul.mubr.bf16.gmra.mrb[28].mxu1 %v1968_v42 }
  0x67   : > { %1536 = vmatprep.mubr.msk.bf16.mxu0 %vm617_vm0, %v1969_v43  ;;  %1552 = vmatprep.mubr.msk.bf16.mxu1 %vm617_vm0, %v1971_v44 }
  0x6e   : > { %811 = vmatmul.mubr.bf16.gmra.mrb[32].mxu0 %v1973_v45  ;;  %939 = vmatmul.mubr.bf16.gmra.mrb[32].mxu1 %v1974_v46 }
  0x6f   : > { %1537 = vmatprep.mubr.msk.bf16.mxu0 %vm617_vm0, %v1975_v47  ;;  %1553 = vmatprep.mubr.msk.bf16.mxu1 %vm617_vm0, %v1977_v48 }
  0x76   : > { %819 = vmatmul.mubr.bf16.gmra.mrb[36].mxu0 %v1979_v49  ;;  %947 = vmatmul.mubr.bf16.gmra.mrb[36].mxu1 %v1980_v50 }
  0x77   : > { %1538 = vmatprep.mubr.msk.bf16.mxu0 %vm617_vm0, %v1981_v51  ;;  %1554 = vmatprep.mubr.msk.bf16.mxu1 %vm617_vm0, %v1983_v52 }
  0x7e   : > { %827 = vmatmul.mubr.bf16.gmra.mrb[40].mxu0 %v1985_v53  ;;  %955 = vmatmul.mubr.bf16.gmra.mrb[40].mxu1 %v1986_v54 }
  0x7f   : > { %1539 = vmatprep.mubr.msk.bf16.mxu0 %vm617_vm0, %v1987_v55  ;;  %1555 = vmatprep.mubr.msk.bf16.mxu1 %vm617_vm0, %v1989_v56 }
  0x86   : > { %835 = vmatmul.mubr.bf16.gmra.mrb[44].mxu0 %v1991_v57  ;;  %963 = vmatmul.mubr.bf16.gmra.mrb[44].mxu1 %v1992_v58 }
  0x87   : > { %1540 = vmatprep.mubr.msk.bf16.mxu0 %vm617_vm0, %v1993_v59  ;;  %1556 = vmatprep.mubr.msk.bf16.mxu1 %vm617_vm0, %v1995_v60 }
  0x8e   : > { %843 = vmatmul.mubr.bf16.gmra.mrb[48].mxu0 %v1997_v61  ;;  %971 = vmatmul.mubr.bf16.gmra.mrb[48].mxu1 %v1998_v62 }
  0x8f   : > { %1541 = vmatprep.mubr.msk.bf16.mxu0 %vm617_vm0, %v1999_v63  ;;  %1557 = vmatprep.mubr.msk.bf16.mxu1 %vm617_vm0, %v2001_v0 }
  0x96   : > { %851 = vmatmul.mubr.bf16.gmra.mrb[52].mxu0 %v2003_v1  ;;  %979 = vmatmul.mubr.bf16.gmra.mrb[52].mxu1 %v2004_v2 }
  0x97   : > { %1542 = vmatprep.mubr.msk.bf16.mxu0 %vm617_vm0, %v2005_v3  ;;  %1558 = vmatprep.mubr.msk.bf16.mxu1 %vm617_vm0, %v2007_v4 }
  0x9e   : > { %859 = vmatmul.mubr.bf16.gmra.mrb[56].mxu0 %v2009_v5  ;;  %987 = vmatmul.mubr.bf16.gmra.mrb[56].mxu1 %v2010_v6 }
  0x9f   : > { %1543 = vmatprep.mubr.msk.bf16.mxu0 %vm617_vm0, %v2011_v7  ;;  %1559 = vmatprep.mubr.msk.bf16.mxu1 %vm617_vm0, %v2013_v8 }
  0xa6   : > { %867 = vmatmul.mubr.bf16.gmra.mrb[60].mxu0 %v2015_v9  ;;  %995 = vmatmul.mubr.bf16.gmra.mrb[60].mxu1 %v2016_v10 }
 0x101   : > { %v748_v12 = vpop.f32.mrb[0].mxu0  ;;  %v876_v13 = vpop.f32.mrb[0].mxu1 }
 0x102   : > { %v749_v14 = vadd.f32 %v2191_v11, %v748_v12  ;;  %v877_v15 = vadd.f32 %v2191_v11, %v876_v13  ;;  %v750_v16 = vpop.f32.mrb[1].mxu0  ;;  %v878_v17 = vpop.f32.mrb[1].mxu1 }
 0x103   : > { %v751_v18 = vpop.f32.mrb[2].mxu0  ;;  %v879_v19 = vpop.f32.mrb[2].mxu1 }
 0x104   : > { %v752_v20 = vadd.f32 %v2191_v11, %v751_v18  ;;  %v880_v21 = vadd.f32 %v2191_v11, %v879_v19  ;;  %v753_v22 = vpop.f32.mrb[3].mxu0  ;;  %v881_v23 = vpop.f32.mrb[3].mxu1  ;;  %v1003_v24 = vmax.f32 %v749_v14, 0.0  ;;  %v1035_v25 = vmax.f32 %v877_v15, 0.0 }
 0x106   : > { %v1004_v26 = vmax.f32 %v752_v20, 0.0  ;;  %v1036_v27 = vmax.f32 %v880_v21, 0.0 }
 0x108   : > { %v1694_v28 = vpack.c.bf16 %v1004_v26, %v1003_v24  ;;  %v1774_v29 = vpack.c.bf16 %v1036_v27, %v1035_v25 }
 0x109   : > { %v756_v30 = vpop.f32.mrb[4].mxu0  ;;  %v884_v31 = vpop.f32.mrb[4].mxu1 }
 0x10a   : > { %1695 = vst [vmem:[%s2201_s19] sm:$0xff] %v1694_v28   ;;  %1866 = vst [vmem:[%s2201_s19 + $0x80] sm:$0xff] %v1774_v29   ;;  %v757_v32 = vadd.f32 %v2191_v11, %v756_v30  ;;  %v885_v33 = vadd.f32 %v2191_v11, %v884_v31  ;;  %v758_v34 = vpop.f32.mrb[5].mxu0  ;;  %v886_v35 = vpop.f32.mrb[5].mxu1 }
 0x10b   : > { %v759_v36 = vpop.f32.mrb[6].mxu0  ;;  %v887_v37 = vpop.f32.mrb[6].mxu1 }
 0x10c   : > { %v760_v38 = vadd.f32 %v2191_v11, %v759_v36  ;;  %v888_v39 = vadd.f32 %v2191_v11, %v887_v37  ;;  %v761_v40 = vpop.f32.mrb[7].mxu0  ;;  %v889_v41 = vpop.f32.mrb[7].mxu1  ;;  %v1005_v42 = vmax.f32 %v757_v32, 0.0  ;;  %v1037_v43 = vmax.f32 %v885_v33, 0.0 }
 0x10e   : > { %v1006_v44 = vmax.f32 %v760_v38, 0.0  ;;  %v1038_v45 = vmax.f32 %v888_v39, 0.0 }
 0x110   : > { %v1699_v46 = vpack.c.bf16 %v1006_v44, %v1005_v42  ;;  %v1779_v47 = vpack.c.bf16 %v1038_v45, %v1037_v43 }
 0x111   : > { %v764_v48 = vpop.f32.mrb[8].mxu0  ;;  %v892_v49 = vpop.f32.mrb[8].mxu1 }
 0x112   : > { %1851 = vst [vmem:[%s2201_s19 + $0x8] sm:$0xff] %v1699_v46   ;;  %1867 = vst [vmem:[%s2201_s19 + $0x88] sm:$0xff] %v1779_v47   ;;  %v765_v50 = vadd.f32 %v2191_v11, %v764_v48  ;;  %v893_v51 = vadd.f32 %v2191_v11, %v892_v49  ;;  %v766_v52 = vpop.f32.mrb[9].mxu0  ;;  %v894_v53 = vpop.f32.mrb[9].mxu1 }
 0x113   : > { %v767_v54 = vpop.f32.mrb[10].mxu0  ;;  %v895_v55 = vpop.f32.mrb[10].mxu1 }
 0x114   : > { %v768_v56 = vadd.f32 %v2191_v11, %v767_v54  ;;  %v896_v57 = vadd.f32 %v2191_v11, %v895_v55  ;;  %v769_v58 = vpop.f32.mrb[11].mxu0  ;;  %v897_v59 = vpop.f32.mrb[11].mxu1  ;;  %v1007_v60 = vmax.f32 %v765_v50, 0.0  ;;  %v1039_v61 = vmax.f32 %v893_v51, 0.0 }
 0x116   : > { %v1008_v62 = vmax.f32 %v768_v56, 0.0  ;;  %v1040_v63 = vmax.f32 %v896_v57, 0.0 }
 0x118   : > { %v1704_v0 = vpack.c.bf16 %v1008_v62, %v1007_v60  ;;  %v1784_v1 = vpack.c.bf16 %v1040_v63, %v1039_v61 }
 0x119   : > { %v772_v2 = vpop.f32.mrb[12].mxu0  ;;  %v900_v3 = vpop.f32.mrb[12].mxu1 }
 0x11a   : > { %1852 = vst [vmem:[%s2201_s19 + $0x10] sm:$0xff] %v1704_v0   ;;  %1868 = vst [vmem:[%s2201_s19 + $0x90] sm:$0xff] %v1784_v1   ;;  %v773_v4 = vadd.f32 %v2191_v11, %v772_v2  ;;  %v901_v5 = vadd.f32 %v2191_v11, %v900_v3  ;;  %v774_v6 = vpop.f32.mrb[13].mxu0  ;;  %v902_v7 = vpop.f32.mrb[13].mxu1 }
 0x11b   : > { %v775_v8 = vpop.f32.mrb[14].mxu0  ;;  %v903_v9 = vpop.f32.mrb[14].mxu1 }
 0x11c   : > { %v776_v10 = vadd.f32 %v2191_v11, %v775_v8  ;;  %v904_v12 = vadd.f32 %v2191_v11, %v903_v9  ;;  %v777_v13 = vpop.f32.mrb[15].mxu0  ;;  %v905_v14 = vpop.f32.mrb[15].mxu1  ;;  %v1009_v15 = vmax.f32 %v773_v4, 0.0  ;;  %v1041_v16 = vmax.f32 %v901_v5, 0.0 }
 0x11e   : > { %v1010_v17 = vmax.f32 %v776_v10, 0.0  ;;  %v1042_v18 = vmax.f32 %v904_v12, 0.0 }
 0x120   : > { %v1709_v19 = vpack.c.bf16 %v1010_v17, %v1009_v15  ;;  %v1789_v20 = vpack.c.bf16 %v1042_v18, %v1041_v16 }
 0x121   : > { %v780_v21 = vpop.f32.mrb[16].mxu0  ;;  %v908_v22 = vpop.f32.mrb[16].mxu1 }
 0x122   : > { %1853 = vst [vmem:[%s2201_s19 + $0x18] sm:$0xff] %v1709_v19   ;;  %1869 = vst [vmem:[%s2201_s19 + $0x98] sm:$0xff] %v1789_v20   ;;  %v781_v23 = vadd.f32 %v2191_v11, %v780_v21  ;;  %v909_v24 = vadd.f32 %v2191_v11, %v908_v22  ;;  %v782_v25 = vpop.f32.mrb[17].mxu0  ;;  %v910_v26 = vpop.f32.mrb[17].mxu1 }
 0x123   : > { %v783_v27 = vpop.f32.mrb[18].mxu0  ;;  %v911_v28 = vpop.f32.mrb[18].mxu1 }
 0x124   : > { %v784_v29 = vadd.f32 %v2191_v11, %v783_v27  ;;  %v912_v30 = vadd.f32 %v2191_v11, %v911_v28  ;;  %v785_v31 = vpop.f32.mrb[19].mxu0  ;;  %v913_v32 = vpop.f32.mrb[19].mxu1  ;;  %v1011_v33 = vmax.f32 %v781_v23, 0.0  ;;  %v1043_v34 = vmax.f32 %v909_v24, 0.0 }
 0x126   : > { %v1012_v35 = vmax.f32 %v784_v29, 0.0  ;;  %v1044_v36 = vmax.f32 %v912_v30, 0.0 }
 0x128   : > { %v1714_v37 = vpack.c.bf16 %v1012_v35, %v1011_v33  ;;  %v1794_v38 = vpack.c.bf16 %v1044_v36, %v1043_v34 }
 0x129   : > { %v788_v39 = vpop.f32.mrb[20].mxu0  ;;  %v916_v40 = vpop.f32.mrb[20].mxu1 }
 0x12a   : > { %1854 = vst [vmem:[%s2201_s19 + $0x20] sm:$0xff] %v1714_v37   ;;  %1870 = vst [vmem:[%s2201_s19 + $0xa0] sm:$0xff] %v1794_v38   ;;  %v789_v41 = vadd.f32 %v2191_v11, %v788_v39  ;;  %v917_v42 = vadd.f32 %v2191_v11, %v916_v40  ;;  %v790_v43 = vpop.f32.mrb[21].mxu0  ;;  %v918_v44 = vpop.f32.mrb[21].mxu1 }
 0x12b   : > { %v791_v45 = vpop.f32.mrb[22].mxu0  ;;  %v919_v46 = vpop.f32.mrb[22].mxu1 }
 0x12c   : > { %v792_v47 = vadd.f32 %v2191_v11, %v791_v45  ;;  %v920_v48 = vadd.f32 %v2191_v11, %v919_v46  ;;  %v793_v49 = vpop.f32.mrb[23].mxu0  ;;  %v921_v50 = vpop.f32.mrb[23].mxu1  ;;  %v1013_v51 = vmax.f32 %v789_v41, 0.0  ;;  %v1045_v52 = vmax.f32 %v917_v42, 0.0 }
 0x12e   : > { %v1014_v53 = vmax.f32 %v792_v47, 0.0  ;;  %v1046_v54 = vmax.f32 %v920_v48, 0.0 }
 0x130   : > { %v1719_v55 = vpack.c.bf16 %v1014_v53, %v1013_v51  ;;  %v1799_v56 = vpack.c.bf16 %v1046_v54, %v1045_v52 }
 0x131   : > { %v796_v57 = vpop.f32.mrb[24].mxu0  ;;  %v924_v58 = vpop.f32.mrb[24].mxu1 }
 0x132   : > { %1855 = vst [vmem:[%s2201_s19 + $0x28] sm:$0xff] %v1719_v55   ;;  %1871 = vst [vmem:[%s2201_s19 + $0xa8] sm:$0xff] %v1799_v56   ;;  %v797_v59 = vadd.f32 %v2191_v11, %v796_v57  ;;  %v925_v60 = vadd.f32 %v2191_v11, %v924_v58  ;;  %v798_v61 = vpop.f32.mrb[25].mxu0  ;;  %v926_v62 = vpop.f32.mrb[25].mxu1 }
 0x133   : > { %v799_v63 = vpop.f32.mrb[26].mxu0  ;;  %v927_v0 = vpop.f32.mrb[26].mxu1 }
 0x134   : > { %v800_v1 = vadd.f32 %v2191_v11, %v799_v63  ;;  %v928_v2 = vadd.f32 %v2191_v11, %v927_v0  ;;  %v801_v3 = vpop.f32.mrb[27].mxu0  ;;  %v929_v4 = vpop.f32.mrb[27].mxu1  ;;  %v1015_v5 = vmax.f32 %v797_v59, 0.0  ;;  %v1047_v6 = vmax.f32 %v925_v60, 0.0 }
 0x136   : > { %v1016_v7 = vmax.f32 %v800_v1, 0.0  ;;  %v1048_v8 = vmax.f32 %v928_v2, 0.0 }
 0x138   : > { %v1724_v9 = vpack.c.bf16 %v1016_v7, %v1015_v5  ;;  %v1804_v10 = vpack.c.bf16 %v1048_v8, %v1047_v6 }
 0x139   : > { %v804_v12 = vpop.f32.mrb[28].mxu0  ;;  %v932_v13 = vpop.f32.mrb[28].mxu1 }
 0x13a   : > { %1856 = vst [vmem:[%s2201_s19 + $0x30] sm:$0xff] %v1724_v9   ;;  %1872 = vst [vmem:[%s2201_s19 + $0xb0] sm:$0xff] %v1804_v10   ;;  %v805_v14 = vadd.f32 %v2191_v11, %v804_v12  ;;  %v933_v15 = vadd.f32 %v2191_v11, %v932_v13  ;;  %v806_v16 = vpop.f32.mrb[29].mxu0  ;;  %v934_v17 = vpop.f32.mrb[29].mxu1 }
 0x13b   : > { %v807_v18 = vpop.f32.mrb[30].mxu0  ;;  %v935_v19 = vpop.f32.mrb[30].mxu1 }
 0x13c   : > { %v808_v20 = vadd.f32 %v2191_v11, %v807_v18  ;;  %v936_v21 = vadd.f32 %v2191_v11, %v935_v19  ;;  %v809_v22 = vpop.f32.mrb[31].mxu0  ;;  %v937_v23 = vpop.f32.mrb[31].mxu1  ;;  %v1017_v24 = vmax.f32 %v805_v14, 0.0  ;;  %v1049_v25 = vmax.f32 %v933_v15, 0.0 }
 0x13e   : > { %v1018_v26 = vmax.f32 %v808_v20, 0.0  ;;  %v1050_v27 = vmax.f32 %v936_v21, 0.0 }
 0x140   : > { %v1729_v28 = vpack.c.bf16 %v1018_v26, %v1017_v24  ;;  %v1809_v29 = vpack.c.bf16 %v1050_v27, %v1049_v25 }
 0x141   : > { %v812_v30 = vpop.f32.mrb[32].mxu0  ;;  %v940_v31 = vpop.f32.mrb[32].mxu1 }
 0x142   : > { %1857 = vst [vmem:[%s2201_s19 + $0x38] sm:$0xff] %v1729_v28   ;;  %1873 = vst [vmem:[%s2201_s19 + $0xb8] sm:$0xff] %v1809_v29   ;;  %v813_v32 = vadd.f32 %v2191_v11, %v812_v30  ;;  %v941_v33 = vadd.f32 %v2191_v11, %v940_v31  ;;  %v814_v34 = vpop.f32.mrb[33].mxu0  ;;  %v942_v35 = vpop.f32.mrb[33].mxu1 }
 0x143   : > { %v815_v36 = vpop.f32.mrb[34].mxu0  ;;  %v943_v37 = vpop.f32.mrb[34].mxu1 }
 0x144   : > { %v816_v38 = vadd.f32 %v2191_v11, %v815_v36  ;;  %v944_v39 = vadd.f32 %v2191_v11, %v943_v37  ;;  %v817_v40 = vpop.f32.mrb[35].mxu0  ;;  %v945_v41 = vpop.f32.mrb[35].mxu1  ;;  %v1019_v42 = vmax.f32 %v813_v32, 0.0  ;;  %v1051_v43 = vmax.f32 %v941_v33, 0.0 }
 0x146   : > { %v1020_v44 = vmax.f32 %v816_v38, 0.0  ;;  %v1052_v45 = vmax.f32 %v944_v39, 0.0 }
 0x148   : > { %v1734_v46 = vpack.c.bf16 %v1020_v44, %v1019_v42  ;;  %v1814_v47 = vpack.c.bf16 %v1052_v45, %v1051_v43 }
 0x149   : > { %v820_v48 = vpop.f32.mrb[36].mxu0  ;;  %v948_v49 = vpop.f32.mrb[36].mxu1 }
 0x14a   : > { %1858 = vst [vmem:[%s2201_s19 + $0x40] sm:$0xff] %v1734_v46   ;;  %1874 = vst [vmem:[%s2201_s19 + $0xc0] sm:$0xff] %v1814_v47   ;;  %v821_v50 = vadd.f32 %v2191_v11, %v820_v48  ;;  %v949_v51 = vadd.f32 %v2191_v11, %v948_v49  ;;  %v822_v52 = vpop.f32.mrb[37].mxu0  ;;  %v950_v53 = vpop.f32.mrb[37].mxu1 }
 0x14b   : > { %v823_v54 = vpop.f32.mrb[38].mxu0  ;;  %v951_v55 = vpop.f32.mrb[38].mxu1 }
 0x14c   : > { %v824_v56 = vadd.f32 %v2191_v11, %v823_v54  ;;  %v952_v57 = vadd.f32 %v2191_v11, %v951_v55  ;;  %v825_v58 = vpop.f32.mrb[39].mxu0  ;;  %v953_v59 = vpop.f32.mrb[39].mxu1  ;;  %v1021_v60 = vmax.f32 %v821_v50, 0.0  ;;  %v1053_v61 = vmax.f32 %v949_v51, 0.0 }
 0x14e   : > { %v1022_v62 = vmax.f32 %v824_v56, 0.0  ;;  %v1054_v63 = vmax.f32 %v952_v57, 0.0 }
 0x150   : > { %v1739_v0 = vpack.c.bf16 %v1022_v62, %v1021_v60  ;;  %v1819_v1 = vpack.c.bf16 %v1054_v63, %v1053_v61 }
 0x151   : > { %v828_v2 = vpop.f32.mrb[40].mxu0  ;;  %v956_v3 = vpop.f32.mrb[40].mxu1 }
 0x152   : > { %1859 = vst [vmem:[%s2201_s19 + $0x48] sm:$0xff] %v1739_v0   ;;  %1875 = vst [vmem:[%s2201_s19 + $0xc8] sm:$0xff] %v1819_v1   ;;  %v829_v4 = vadd.f32 %v2191_v11, %v828_v2  ;;  %v957_v5 = vadd.f32 %v2191_v11, %v956_v3  ;;  %v830_v6 = vpop.f32.mrb[41].mxu0  ;;  %v958_v7 = vpop.f32.mrb[41].mxu1 }
 0x153   : > { %v831_v8 = vpop.f32.mrb[42].mxu0  ;;  %v959_v9 = vpop.f32.mrb[42].mxu1 }
 0x154   : > { %v832_v10 = vadd.f32 %v2191_v11, %v831_v8  ;;  %v960_v12 = vadd.f32 %v2191_v11, %v959_v9  ;;  %v833_v13 = vpop.f32.mrb[43].mxu0  ;;  %v961_v14 = vpop.f32.mrb[43].mxu1  ;;  %v1023_v15 = vmax.f32 %v829_v4, 0.0  ;;  %v1055_v16 = vmax.f32 %v957_v5, 0.0 }
 0x156   : > { %v1024_v17 = vmax.f32 %v832_v10, 0.0  ;;  %v1056_v18 = vmax.f32 %v960_v12, 0.0 }
 0x158   : > { %v1744_v19 = vpack.c.bf16 %v1024_v17, %v1023_v15  ;;  %v1824_v20 = vpack.c.bf16 %v1056_v18, %v1055_v16 }
 0x159   : > { %v836_v21 = vpop.f32.mrb[44].mxu0  ;;  %v964_v22 = vpop.f32.mrb[44].mxu1 }
 0x15a   : > { %1860 = vst [vmem:[%s2201_s19 + $0x50] sm:$0xff] %v1744_v19   ;;  %1876 = vst [vmem:[%s2201_s19 + $0xd0] sm:$0xff] %v1824_v20   ;;  %v837_v23 = vadd.f32 %v2191_v11, %v836_v21  ;;  %v965_v24 = vadd.f32 %v2191_v11, %v964_v22  ;;  %v838_v25 = vpop.f32.mrb[45].mxu0  ;;  %v966_v26 = vpop.f32.mrb[45].mxu1 }
 0x15b   : > { %v839_v27 = vpop.f32.mrb[46].mxu0  ;;  %v967_v28 = vpop.f32.mrb[46].mxu1 }
 0x15c   : > { %v840_v29 = vadd.f32 %v2191_v11, %v839_v27  ;;  %v968_v30 = vadd.f32 %v2191_v11, %v967_v28  ;;  %v841_v31 = vpop.f32.mrb[47].mxu0  ;;  %v969_v32 = vpop.f32.mrb[47].mxu1  ;;  %v1025_v33 = vmax.f32 %v837_v23, 0.0  ;;  %v1057_v34 = vmax.f32 %v965_v24, 0.0 }
 0x15e   : > { %v1026_v35 = vmax.f32 %v840_v29, 0.0  ;;  %v1058_v36 = vmax.f32 %v968_v30, 0.0 }
 0x160   : > { %v1749_v37 = vpack.c.bf16 %v1026_v35, %v1025_v33  ;;  %v1829_v38 = vpack.c.bf16 %v1058_v36, %v1057_v34 }
 0x161   : > { %v844_v39 = vpop.f32.mrb[48].mxu0  ;;  %v972_v40 = vpop.f32.mrb[48].mxu1 }
 0x162   : > { %1861 = vst [vmem:[%s2201_s19 + $0x58] sm:$0xff] %v1749_v37   ;;  %1877 = vst [vmem:[%s2201_s19 + $0xd8] sm:$0xff] %v1829_v38   ;;  %v845_v41 = vadd.f32 %v2191_v11, %v844_v39  ;;  %v973_v42 = vadd.f32 %v2191_v11, %v972_v40  ;;  %v846_v43 = vpop.f32.mrb[49].mxu0  ;;  %v974_v44 = vpop.f32.mrb[49].mxu1 }
 0x163   : > { %v847_v45 = vpop.f32.mrb[50].mxu0  ;;  %v975_v46 = vpop.f32.mrb[50].mxu1 }
 0x164   : > { %v848_v47 = vadd.f32 %v2191_v11, %v847_v45  ;;  %v976_v48 = vadd.f32 %v2191_v11, %v975_v46  ;;  %v849_v49 = vpop.f32.mrb[51].mxu0  ;;  %v977_v50 = vpop.f32.mrb[51].mxu1  ;;  %v1027_v51 = vmax.f32 %v845_v41, 0.0  ;;  %v1059_v52 = vmax.f32 %v973_v42, 0.0 }
 0x166   : > { %v1028_v53 = vmax.f32 %v848_v47, 0.0  ;;  %v1060_v54 = vmax.f32 %v976_v48, 0.0 }
 0x168   : > { %v1754_v55 = vpack.c.bf16 %v1028_v53, %v1027_v51  ;;  %v1834_v56 = vpack.c.bf16 %v1060_v54, %v1059_v52 }
 0x169   : > { %v852_v57 = vpop.f32.mrb[52].mxu0  ;;  %v980_v58 = vpop.f32.mrb[52].mxu1 }
 0x16a   : > { %1862 = vst [vmem:[%s2201_s19 + $0x60] sm:$0xff] %v1754_v55   ;;  %1878 = vst [vmem:[%s2201_s19 + $0xe0] sm:$0xff] %v1834_v56   ;;  %v853_v59 = vadd.f32 %v2191_v11, %v852_v57  ;;  %v981_v60 = vadd.f32 %v2191_v11, %v980_v58  ;;  %v854_v61 = vpop.f32.mrb[53].mxu0  ;;  %v982_v62 = vpop.f32.mrb[53].mxu1 }
 0x16b   : > { %v855_v63 = vpop.f32.mrb[54].mxu0  ;;  %v983_v0 = vpop.f32.mrb[54].mxu1 }
 0x16c   : > { %v856_v1 = vadd.f32 %v2191_v11, %v855_v63  ;;  %v984_v2 = vadd.f32 %v2191_v11, %v983_v0  ;;  %v857_v3 = vpop.f32.mrb[55].mxu0  ;;  %v985_v4 = vpop.f32.mrb[55].mxu1  ;;  %v1029_v5 = vmax.f32 %v853_v59, 0.0  ;;  %v1061_v6 = vmax.f32 %v981_v60, 0.0 }
 0x16e   : > { %v1030_v7 = vmax.f32 %v856_v1, 0.0  ;;  %v1062_v8 = vmax.f32 %v984_v2, 0.0 }
 0x170   : > { %v1759_v9 = vpack.c.bf16 %v1030_v7, %v1029_v5  ;;  %v1839_v10 = vpack.c.bf16 %v1062_v8, %v1061_v6 }
 0x171   : > { %v860_v12 = vpop.f32.mrb[56].mxu0  ;;  %v988_v13 = vpop.f32.mrb[56].mxu1 }
 0x172   : > { %1863 = vst [vmem:[%s2201_s19 + $0x68] sm:$0xff] %v1759_v9   ;;  %1879 = vst [vmem:[%s2201_s19 + $0xe8] sm:$0xff] %v1839_v10   ;;  %v861_v14 = vadd.f32 %v2191_v11, %v860_v12  ;;  %v989_v15 = vadd.f32 %v2191_v11, %v988_v13  ;;  %v862_v16 = vpop.f32.mrb[57].mxu0  ;;  %v990_v17 = vpop.f32.mrb[57].mxu1 }
 0x173   : > { %v863_v18 = vpop.f32.mrb[58].mxu0  ;;  %v991_v19 = vpop.f32.mrb[58].mxu1 }
 0x174   : > { %v864_v20 = vadd.f32 %v2191_v11, %v863_v18  ;;  %v992_v21 = vadd.f32 %v2191_v11, %v991_v19  ;;  %v865_v22 = vpop.f32.mrb[59].mxu0  ;;  %v993_v23 = vpop.f32.mrb[59].mxu1  ;;  %v1031_v24 = vmax.f32 %v861_v14, 0.0  ;;  %v1063_v25 = vmax.f32 %v989_v15, 0.0 }
 0x176   : > { %v1032_v26 = vmax.f32 %v864_v20, 0.0  ;;  %v1064_v27 = vmax.f32 %v992_v21, 0.0 }
 0x178   : > { %v1764_v28 = vpack.c.bf16 %v1032_v26, %v1031_v24  ;;  %v1844_v29 = vpack.c.bf16 %v1064_v27, %v1063_v25 }
 0x179   : > { %v868_v30 = vpop.f32.mrb[60].mxu0  ;;  %v996_v31 = vpop.f32.mrb[60].mxu1 }
 0x17a   : > { %1864 = vst [vmem:[%s2201_s19 + $0x70] sm:$0xff] %v1764_v28   ;;  %1880 = vst [vmem:[%s2201_s19 + $0xf0] sm:$0xff] %v1844_v29   ;;  %v869_v32 = vadd.f32 %v2191_v11, %v868_v30  ;;  %v997_v33 = vadd.f32 %v2191_v11, %v996_v31  ;;  %v870_v34 = vpop.f32.mrb[61].mxu0  ;;  %v998_v35 = vpop.f32.mrb[61].mxu1 }
 0x17b   : > { %v871_v36 = vpop.f32.mrb[62].mxu0  ;;  %v999_v37 = vpop.f32.mrb[62].mxu1 }
 0x17c   : > { %v872_v38 = vadd.f32 %v2191_v11, %v871_v36  ;;  %v1000_v39 = vadd.f32 %v2191_v11, %v999_v37  ;;  %v873_v40 = vpop.f32.mrb[63].mxu0  ;;  %v1001_v41 = vpop.f32.mrb[63].mxu1  ;;  %v1033_v42 = vmax.f32 %v869_v32, 0.0  ;;  %v1065_v43 = vmax.f32 %v997_v33, 0.0 }
 0x17e   : > { %v1034_v44 = vmax.f32 %v872_v38, 0.0  ;;  %v1066_v45 = vmax.f32 %v1000_v39, 0.0 }
 0x180   : > { %v1769_v46 = vpack.c.bf16 %v1034_v44, %v1033_v42  ;;  %v1849_v47 = vpack.c.bf16 %v1066_v45, %v1065_v43 }
 0x182   : > { %1865 = vst [vmem:[%s2201_s19 + $0x78] sm:$0xff] %v1769_v46   ;;  %1881 = vst [vmem:[%s2201_s19 + $0xf8] sm:$0xff] %v1849_v47  }
 0x183 PF: > { %s13_s12 = sadd.s32 1, %s2023_s12  }
 0x184   : > { %p10_p4 = scmp.ge.s32.totalorder %s13_s12, 6  }
 0x186   :  { %12 = sbr.rel (!%p10_p4) target bundleno = 1 (0x1), region = 62 }

// kernel: conv_forward.5
= control target key start
LH: loop header
LB: loop body
LE: loop exit
PB: predicated region body
PF: predicated region fallthrough
CT: control target
= control target key end

     0   :  { %s4563_s12 = smov 0   ;;  %s5344_s0 = inlined_call_operand.vmem [shape: bf16[128,3136], index: 0, kind: input, shape index: {}]   ;;  %s5345_s1 = inlined_call_operand.vmem [shape: bf16[3136,128], index: 1, kind: input, shape index: {}]   ;;  %s5346_s2 = inlined_call_operand.vmem [shape: f32[1,128], index: 2, kind: input, shape index: {}]   ;;  %s5347_s3 = inlined_call_operand.vmem [shape: bf16[128,128], index: 3, kind: output, shape index: {}]  }
   0x1 LB: > { %s3319_s13 = sadd.s32 4294967295, %s4541_s12   ;;  %p3323_p0 = scmp.ge.s32.totalorder %s4541_s12, 1  ;;  %s4541_s12 = sphi %s4563_s12, %s13_s12  }
   0x2   : > { %p139_p1 = scmp.lt.s32.totalorder %s4541_s12, 3 }
   0x4   : > { %p140_p2 = pnand %p3323_p0, %p139_p1 }
   0x5   : > { %v4191_v0 = vld [vmem:[%s5345_s1 + $0x40] sm:$0xff] (!%p140_p2)   ;;  %v4195_v4 = vld [vmem:[%s5345_s1 + $0x48] sm:$0xff] (!%p140_p2)   ;;  %v4199_v8 = vld [vmem:[%s5345_s1 + $0x50] sm:$0xff] (!%p140_p2)   ;;  %s3324_s19 = sshll.u32 (!%p140_p2), %s3319_s13, 3  ;;  %vm2357_vm0 = vcmask (!%p140_p2), 523264  }
   0x6   : > { %143 = sbr.rel (%p140_p2) target bundleno = 475 (0x1db), region = 32  ;;  %v4192_v1 = vld [vmem:[%s5345_s1 + $0xc0] sm:$0xff] (!%p140_p2)   ;;  %3670 = vmatprep.subr.bf16.mxu0 (!%p140_p2), %v4191_v0  ;;  %v4196_v5 = vld [vmem:[%s5345_s1 + $0xc8] sm:$0xff] (!%p140_p2)   ;;  %v4200_v9 = vld [vmem:[%s5345_s1 + $0xd0] sm:$0xff] (!%p140_p2)   ;;  %p165_p3 = scmp.lt.s32.totalorder (!%p140_p2), %s3324_s19, 15 }
   0x7   : > { %v4193_v2 = vld [vmem:[%s5345_s1] sm:$0xff] (!%p140_p2)   ;;  %3710 = vmatprep.subr.bf16.mxu1 (!%p140_p2), %v4192_v1  ;;  %v4197_v6 = vld [vmem:[%s5345_s1 + $0x8] sm:$0xff] (!%p140_p2)   ;;  %v4201_v10 = vld [vmem:[%s5345_s1 + $0x10] sm:$0xff] (!%p140_p2)  }
   0x8   : > { %v4194_v3 = vld [vmem:[%s5345_s1 + $0x80] sm:$0xff] (!%p140_p2)   ;;  %3671 = vmatpush3.bf16.msra.mxu0 (!%p140_p2), %v4193_v2  ;;  %v4198_v7 = vld [vmem:[%s5345_s1 + $0x88] sm:$0xff] (!%p140_p2)   ;;  %v4202_v11 = vld [vmem:[%s5345_s1 + $0x90] sm:$0xff] (!%p140_p2)  }
   0x9   : > { %3711 = vmatpush3.bf16.msra.mxu1 (!%p140_p2), %v4194_v3  ;;  %3672 = vmatprep.subr.bf16.mxu0 (!%p140_p2), %v4195_v4  ;;  %v4203_v12 = vld [vmem:[%s5345_s1 + $0x58] sm:$0xff] (!%p140_p2)   ;;  %v4207_v16 = vld [vmem:[%s5345_s1 + $0x60] sm:$0xff] (!%p140_p2)   ;;  %v4211_v20 = vld [vmem:[%s5345_s1 + $0x68] sm:$0xff] (!%p140_p2)  }
   0xa   : > { %3712 = vmatprep.subr.bf16.mxu1 (!%p140_p2), %v4196_v5  ;;  %v4204_v13 = vld [vmem:[%s5345_s1 + $0xd8] sm:$0xff] (!%p140_p2)   ;;  %v4208_v17 = vld [vmem:[%s5345_s1 + $0xe0] sm:$0xff] (!%p140_p2)   ;;  %v4212_v21 = vld [vmem:[%s5345_s1 + $0xe8] sm:$0xff] (!%p140_p2)  }
   0xb   : > { %v4205_v14 = vld [vmem:[%s5345_s1 + $0x18] sm:$0xff] (!%p140_p2)   ;;  %v4209_v18 = vld [vmem:[%s5345_s1 + $0x20] sm:$0xff] (!%p140_p2)   ;;  %v4213_v22 = vld [vmem:[%s5345_s1 + $0x28] sm:$0xff] (!%p140_p2)  }
   0xc   : > { %3673 = vmatpush3.bf16.msra.mxu0 (!%p140_p2), %v4197_v6  ;;  %v4206_v15 = vld [vmem:[%s5345_s1 + $0x98] sm:$0xff] (!%p140_p2)   ;;  %v4210_v19 = vld [vmem:[%s5345_s1 + $0xa0] sm:$0xff] (!%p140_p2)   ;;  %v4214_v23 = vld [vmem:[%s5345_s1 + $0xa8] sm:$0xff] (!%p140_p2)  }
   0xd   : > { %3713 = vmatpush3.bf16.msra.mxu1 %v4198_v7  ;;  %3674 = vmatprep.subr.bf16.mxu0 %v4199_v8  ;;  %s5349_s19 = smov (!%p165_p3, %s3324_s19), 15  ;;  %v4215_v24 = vld [vmem:[%s5345_s1 + $0x70] sm:$0xff]   ;;  %v4219_v28 = vld [vmem:[%s5345_s1 + $0x78] sm:$0xff]   ;;  %v4229_v36 = vld [vmem:[%s5345_s1 + $0x140] sm:$0xff]  }
   0xe   : > { %3714 = vmatprep.subr.bf16.mxu1 %v4200_v9  ;;  %v4216_v25 = vld [vmem:[%s5345_s1 + $0xf0] sm:$0xff]   ;;  %s4182_s16 = smul.u32 100, %s5349_s19  ;;  %v4220_v29 = vld [vmem:[%s5345_s1 + $0xf8] sm:$0xff]   ;;  %v4230_v37 = vld [vmem:[%s5345_s1 + $0x1c0] sm:$0xff]  }
   0xf   : > { %v4217_v26 = vld [vmem:[%s5345_s1 + $0x30] sm:$0xff]   ;;  %v4221_v30 = vld [vmem:[%s5345_s1 + $0x38] sm:$0xff]   ;;  %v4231_v38 = vld [vmem:[%s5345_s1 + $0x100] sm:$0xff]  }
  0x10   : > { %3675 = vmatpush3.bf16.msra.mxu0 %v4201_v10  ;;  %v4218_v27 = vld [vmem:[%s5345_s1 + $0xb0] sm:$0xff]   ;;  %s4669_s13 = scalar_lea.vmem %s5344_s0, %s4182_s16  ;;  %v4222_v31 = vld [vmem:[%s5345_s1 + $0xb8] sm:$0xff]   ;;  %v4232_v39 = vld [vmem:[%s5345_s1 + $0x180] sm:$0xff]  }
  0x11   : > { %3715 = vmatpush3.bf16.msra.mxu1 %v4202_v11  ;;  %3676 = vmatprep.subr.bf16.mxu0 %v4203_v12  ;;  %v4223_v32 = vld [vmem:[%s4669_s13] ss:$100 sps:$4 sm:$0xff]   ;;  %v4226_v34 = vld [vmem:[%s4669_s13 + $0x8] ss:$100 sps:$4 sm:$0xff]   ;;  %v4239_v45 = vld [vmem:[%s4669_s13 + $0xd4] ss:$100 sps:$4 sm:$0xff]  }
  0x12   : > { %3716 = vmatprep.subr.bf16.mxu1 %v4204_v13  ;;  %v4225_v33 = vld [vmem:[%s4669_s13 + $0x4] ss:$100 sps:$4 sm:$0xff]   ;;  %v4228_v35 = vld [vmem:[%s4669_s13 + $0xc] ss:$100 sps:$4 sm:$0xff]   ;;  %v4247_v52 = vld [vmem:[%s5345_s1 + $0x158] sm:$0xff]  }
  0x13   : > { %2402 = vmatprep.mubr.bf16.mxu0 %v4225_v33  ;;  %2467 = vmatprep.mubr.bf16.mxu1 %v4228_v35  ;;  %v4233_v40 = vld [vmem:[%s5345_s1 + $0x148] sm:$0xff]   ;;  %v4242_v47 = vld [vmem:[%s4669_s13 + $0xd0] ss:$100 sps:$4 sm:$0xff]   ;;  %v4248_v53 = vld [vmem:[%s5345_s1 + $0x1d8] sm:$0xff]  }
  0x14   : > { %3677 = vmatpush3.bf16.msra.mxu0 %v4205_v14  ;;  %v4234_v41 = vld [vmem:[%s5345_s1 + $0x1c8] sm:$0xff]   ;;  %v4243_v48 = vld [vmem:[%s5345_s1 + $0x150] sm:$0xff]   ;;  %v4249_v54 = vld [vmem:[%s5345_s1 + $0x118] sm:$0xff]  }
  0x15   : > { %3717 = vmatpush3.bf16.msra.mxu1 %v4206_v15  ;;  %3678 = vmatprep.subr.bf16.mxu0 %v4207_v16  ;;  %v4235_v42 = vld [vmem:[%s5345_s1 + $0x108] sm:$0xff]   ;;  %v4244_v49 = vld [vmem:[%s5345_s1 + $0x1d0] sm:$0xff]   ;;  %v4250_v55 = vld [vmem:[%s5345_s1 + $0x198] sm:$0xff]  }
  0x16   : > { %3718 = vmatprep.subr.bf16.mxu1 %v4208_v17  ;;  %v4236_v43 = vld [vmem:[%s5345_s1 + $0x188] sm:$0xff]   ;;  %v4245_v50 = vld [vmem:[%s5345_s1 + $0x110] sm:$0xff]   ;;  %v4253_v57 = vld [vmem:[%s4669_s13 + $0x19c] ss:$100 sps:$4 sm:$0xff]  }
  0x17   : > { %v4237_v44 = vld [vmem:[%s4669_s13 + $0xcc] ss:$100 sps:$4 sm:$0xff]   ;;  %v4251_v56 = vld [vmem:[%s4669_s13 + $0x194] ss:$100 sps:$4 sm:$0xff]   ;;  %v4257_v60 = vld [vmem:[%s5345_s1 + $0x160] sm:$0xff]  }
  0x18   : > { %3679 = vmatpush3.bf16.msra.mxu0 %v4209_v18  ;;  %v4241_v46 = vld [vmem:[%s4669_s13 + $0xc8] ss:$100 sps:$4 sm:$0xff]   ;;  %v4246_v51 = vld [vmem:[%s5345_s1 + $0x190] sm:$0xff]   ;;  %v4256_v59 = vld [vmem:[%s4669_s13 + $0x198] ss:$100 sps:$4 sm:$0xff]  }
  0x19   : > { %3719 = vmatpush3.bf16.msra.mxu1 %v4210_v19  ;;  %3680 = vmatprep.subr.bf16.mxu0 %v4211_v20  ;;  %v4255_v58 = vld [vmem:[%s4669_s13 + $0x190] ss:$100 sps:$4 sm:$0xff]   ;;  %v4258_v61 = vld [vmem:[%s5345_s1 + $0x1e0] sm:$0xff]   ;;  %v4261_v0 = vld [vmem:[%s5345_s1 + $0x168] sm:$0xff]  }
  0x1a   : > { %3720 = vmatprep.subr.bf16.mxu1 %v4212_v21  ;;  %v4259_v62 = vld [vmem:[%s5345_s1 + $0x120] sm:$0xff]   ;;  %v4262_v1 = vld [vmem:[%s5345_s1 + $0x1e8] sm:$0xff]   ;;  %v4269_v6 = vld [vmem:[%s4669_s13 + $0x258] ss:$100 sps:$4 sm:$0xff]  }
  0x1b   : > { %v4260_v63 = vld [vmem:[%s5345_s1 + $0x1a0] sm:$0xff]   ;;  %v4263_v2 = vld [vmem:[%s5345_s1 + $0x128] sm:$0xff]   ;;  %v4271_v8 = vld [vmem:[%s5345_s1 + $0x170] sm:$0xff]  }
  0x1c   : > { %3681 = vmatpush3.bf16.msra.mxu0 %v4213_v22  ;;  %v4264_v3 = vld [vmem:[%s5345_s1 + $0x1a8] sm:$0xff]   ;;  %v4265_v4 = vld [vmem:[%s4669_s13 + $0x25c] ss:$100 sps:$4 sm:$0xff]   ;;  %v4272_v9 = vld [vmem:[%s5345_s1 + $0x1f0] sm:$0xff]  }
  0x1d   : > { %3721 = vmatpush3.bf16.msra.mxu1 %v4214_v23  ;;  %3682 = vmatprep.subr.bf16.mxu0 %v4215_v24  ;;  %v4267_v5 = vld [vmem:[%s4669_s13 + $0x264] ss:$100 sps:$4 sm:$0xff]   ;;  %v4273_v10 = vld [vmem:[%s5345_s1 + $0x130] sm:$0xff]   ;;  %v4275_v12 = vld [vmem:[%s5345_s1 + $0x178] sm:$0xff]  }
  0x1e   : > { %3722 = vmatprep.subr.bf16.mxu1 %v4216_v25  ;;  %v4270_v7 = vld [vmem:[%s4669_s13 + $0x260] ss:$100 sps:$4 sm:$0xff]   ;;  %v4274_v11 = vld [vmem:[%s5345_s1 + $0x1b0] sm:$0xff]   ;;  %v4276_v13 = vld [vmem:[%s5345_s1 + $0x1f8] sm:$0xff]  }
  0x1f   : > { %v4277_v14 = vld [vmem:[%s5345_s1 + $0x138] sm:$0xff]   ;;  %v4279_v16 = vld [vmem:[%s4669_s13 + $0x10] ss:$100 sps:$4 sm:$0xff]   ;;  %v4285_v20 = vld [vmem:[%s5345_s1 + $0x240] sm:$0xff]  }
  0x20   : > { %3683 = vmatpush3.bf16.msra.mxu0 %v4217_v26  ;;  %v4278_v15 = vld [vmem:[%s5345_s1 + $0x1b8] sm:$0xff]   ;;  %v4286_v21 = vld [vmem:[%s5345_s1 + $0x2c0] sm:$0xff]   ;;  %v4289_v24 = vld [vmem:[%s5345_s1 + $0x248] sm:$0xff]  }
  0x21   : > { %3723 = vmatpush3.bf16.msra.mxu1 %v4218_v27  ;;  %3684 = vmatprep.subr.bf16.mxu0 %v4219_v28  ;;  %v4281_v17 = vld [vmem:[%s4669_s13 + $0x14] ss:$100 sps:$4 sm:$0xff]   ;;  %v4284_v19 = vld [vmem:[%s4669_s13 + $0x1c] ss:$100 sps:$4 sm:$0xff]   ;;  %v4290_v25 = vld [vmem:[%s5345_s1 + $0x2c8] sm:$0xff]  }
  0x22   : > { %3724 = vmatprep.subr.bf16.mxu1 %v4220_v29  ;;  %v4282_v18 = vld [vmem:[%s4669_s13 + $0x18] ss:$100 sps:$4 sm:$0xff]   ;;  %v4287_v22 = vld [vmem:[%s5345_s1 + $0x200] sm:$0xff]   ;;  %v4291_v26 = vld [vmem:[%s5345_s1 + $0x208] sm:$0xff]  }
  0x23   : > { %v4288_v23 = vld [vmem:[%s5345_s1 + $0x280] sm:$0xff]   ;;  %v4292_v27 = vld [vmem:[%s5345_s1 + $0x288] sm:$0xff]   ;;  %v4300_v33 = vld [vmem:[%s5345_s1 + $0x2d0] sm:$0xff]  }
  0x24   : > { %3685 = vmatpush3.bf16.msra.mxu0 %v4221_v30  ;;  %v4293_v28 = vld [vmem:[%s4669_s13 + $0xdc] ss:$100 sps:$4 sm:$0xff]   ;;  %v4295_v29 = vld [vmem:[%s4669_s13 + $0xe4] ss:$100 sps:$4 sm:$0xff]   ;;  %v4302_v35 = vld [vmem:[%s5345_s1 + $0x290] sm:$0xff]  }
  0x25   : > { %3725 = vmatpush3.bf16.msra.mxu1 %v4222_v31  ;;  %3750 = vmatprep.subr.bf16.mxu0 %v4229_v36  ;;  %v4297_v30 = vld [vmem:[%s4669_s13 + $0xd8] ss:$100 sps:$4 sm:$0xff]   ;;  %v4298_v31 = vld [vmem:[%s4669_s13 + $0xe0] ss:$100 sps:$4 sm:$0xff]  }
  0x26   : > { %3790 = vmatprep.subr.bf16.mxu1 %v4230_v37  ;;  %v4303_v36 = vld [vmem:[%s5345_s1 + $0x258] sm:$0xff]  }
  0x27   : > { %2403 = vmatmul.mubr.bf16.vlgmr.msra.gmra.mrb[0].mxu0 %v4223_v32  ;;  %v4299_v32 = vld [vmem:[%s5345_s1 + $0x250] sm:$0xff]   ;;  %v4304_v37 = vld [vmem:[%s5345_s1 + $0x2d8] sm:$0xff]  }
  0x28   : > { %2468 = vmatmul.mubr.bf16.vlgmr.msra.gmra.mrb[0].mxu1 %v4226_v34  ;;  %3751 = vmatpush3.bf16.msra.mxu0 %v4231_v38  ;;  %v4301_v34 = vld [vmem:[%s5345_s1 + $0x210] sm:$0xff]   ;;  %v4305_v38 = vld [vmem:[%s5345_s1 + $0x218] sm:$0xff]  }
  0x29   : > { %3791 = vmatpush3.bf16.msra.mxu1 %v4232_v39  ;;  %3752 = vmatprep.subr.bf16.mxu0 %v4233_v40  ;;  %v4306_v39 = vld [vmem:[%s5345_s1 + $0x298] sm:$0xff]   ;;  %v4307_v40 = vld [vmem:[%s4669_s13 + $0x1a4] ss:$100 sps:$4 sm:$0xff]  }
  0x2a   : > { %3792 = vmatprep.subr.bf16.mxu1 %v4234_v41  ;;  %2410 = vmatprep.mubr.bf16.mxu0 %v4237_v44  ;;  %v4309_v41 = vld [vmem:[%s4669_s13 + $0x1ac] ss:$100 sps:$4 sm:$0xff]   ;;  %v4313_v44 = vld [vmem:[%s5345_s1 + $0x260] sm:$0xff]  }
  0x2b   : > { %2475 = vmatprep.mubr.bf16.mxu1 %v4239_v45  ;;  %v4314_v45 = vld [vmem:[%s5345_s1 + $0x2e0] sm:$0xff]  }
  0x2c   : > { %3753 = vmatpush3.bf16.msra.mxu0 %v4235_v42  ;;  %v4311_v42 = vld [vmem:[%s4669_s13 + $0x1a0] ss:$100 sps:$4 sm:$0xff]  }
  0x2d   : > { %3793 = vmatpush3.bf16.msra.mxu1 %v4236_v43  ;;  %3754 = vmatprep.subr.bf16.mxu0 %v4243_v48  ;;  %v4312_v43 = vld [vmem:[%s4669_s13 + $0x1a8] ss:$100 sps:$4 sm:$0xff]  }
  0x2e   : > { %3794 = vmatprep.subr.bf16.mxu1 %v4244_v49  ;;  %v4317_v48 = vld [vmem:[%s5345_s1 + $0x268] sm:$0xff]  }
  0x2f   : > { %2411 = vmatmul.mubr.bf16.gmra.mrb[4].mxu0 %v4241_v46  ;;  %v4315_v46 = vld [vmem:[%s5345_s1 + $0x220] sm:$0xff]   ;;  %v4318_v49 = vld [vmem:[%s5345_s1 + $0x2e8] sm:$0xff]  }
  0x30   : > { %2476 = vmatmul.mubr.bf16.gmra.mrb[4].mxu1 %v4242_v47  ;;  %3755 = vmatpush3.bf16.msra.mxu0 %v4245_v50  ;;  %v4316_v47 = vld [vmem:[%s5345_s1 + $0x2a0] sm:$0xff]   ;;  %v4319_v50 = vld [vmem:[%s5345_s1 + $0x228] sm:$0xff]  }
  0x31   : > { %3795 = vmatpush3.bf16.msra.mxu1 %v4246_v51  ;;  %3756 = vmatprep.subr.bf16.mxu0 %v4247_v52  ;;  %v4320_v51 = vld [vmem:[%s5345_s1 + $0x2a8] sm:$0xff]  }
  0x32   : > { %3796 = vmatprep.subr.bf16.mxu1 %v4248_v53  ;;  %2418 = vmatprep.mubr.bf16.mxu0 %v4251_v56  ;;  %v4321_v52 = vld [vmem:[%s4669_s13 + $0x26c] ss:$100 sps:$4 sm:$0xff]   ;;  %v4323_v53 = vld [vmem:[%s4669_s13 + $0x274] ss:$100 sps:$4 sm:$0xff]  }
  0x33   : > { %2483 = vmatprep.mubr.bf16.mxu1 %v4253_v57  ;;  %v4327_v56 = vld [vmem:[%s5345_s1 + $0x270] sm:$0xff]  }
  0x34   : > { %3757 = vmatpush3.bf16.msra.mxu0 %v4249_v54  ;;  %v4325_v54 = vld [vmem:[%s4669_s13 + $0x268] ss:$100 sps:$4 sm:$0xff]   ;;  %v4328_v57 = vld [vmem:[%s5345_s1 + $0x2f0] sm:$0xff]  }
  0x35   : > { %3797 = vmatpush3.bf16.msra.mxu1 %v4250_v55  ;;  %3758 = vmatprep.subr.bf16.mxu0 %v4257_v60  ;;  %v4326_v55 = vld [vmem:[%s4669_s13 + $0x270] ss:$100 sps:$4 sm:$0xff]   ;;  %v4331_v60 = vld [vmem:[%s5345_s1 + $0x278] sm:$0xff]  }
  0x36   : > { %3798 = vmatprep.subr.bf16.mxu1 %v4258_v61  ;;  %v4332_v61 = vld [vmem:[%s5345_s1 + $0x2f8] sm:$0xff]  }
  0x37   : > { %2419 = vmatmul.mubr.bf16.gmra.mrb[8].mxu0 %v4255_v58  ;;  %v4329_v58 = vld [vmem:[%s5345_s1 + $0x230] sm:$0xff]  }
  0x38   : > { %2484 = vmatmul.mubr.bf16.gmra.mrb[8].mxu1 %v4256_v59  ;;  %3759 = vmatpush3.bf16.msra.mxu0 %v4259_v62  ;;  %v4330_v59 = vld [vmem:[%s5345_s1 + $0x2b0] sm:$0xff]   ;;  %v4333_v62 = vld [vmem:[%s5345_s1 + $0x238] sm:$0xff]  }
  0x39   : > { %3799 = vmatpush3.bf16.msra.mxu1 %v4260_v63  ;;  %3760 = vmatprep.subr.bf16.mxu0 %v4261_v0  ;;  %v4334_v63 = vld [vmem:[%s5345_s1 + $0x2b8] sm:$0xff]   ;;  %v4335_v0 = vld [vmem:[%s4669_s13 + $0x20] ss:$100 sps:$4 sm:$0xff]  }
  0x3a   : > { %3800 = vmatprep.subr.bf16.mxu1 %v4262_v1  ;;  %2426 = vmatprep.mubr.bf16.mxu0 %v4265_v4  ;;  %v4337_v1 = vld [vmem:[%s4669_s13 + $0x24] ss:$100 sps:$4 sm:$0xff]  }
  0x3b   : > { %2491 = vmatprep.mubr.bf16.mxu1 %v4267_v5  ;;  %v4341_v4 = vld [vmem:[%s5345_s1 + $0x340] sm:$0xff]  }
  0x3c   : > { %3761 = vmatpush3.bf16.msra.mxu0 %v4263_v2  ;;  %v4338_v2 = vld [vmem:[%s4669_s13 + $0x28] ss:$100 sps:$4 sm:$0xff]   ;;  %v4342_v5 = vld [vmem:[%s5345_s1 + $0x3c0] sm:$0xff]  }
  0x3d   : > { %3801 = vmatpush3.bf16.msra.mxu1 %v4264_v3  ;;  %3762 = vmatprep.subr.bf16.mxu0 %v4271_v8  ;;  %v4340_v3 = vld [vmem:[%s4669_s13 + $0x2c] ss:$100 sps:$4 sm:$0xff]  }
  0x3e   : > { %3802 = vmatprep.subr.bf16.mxu1 %v4272_v9  ;;  %v4345_v8 = vld [vmem:[%s5345_s1 + $0x348] sm:$0xff]  }
  0x3f   : > { %2427 = vmatmul.mubr.bf16.gmra.mrb[12].mxu0 %v4269_v6  ;;  %v4343_v6 = vld [vmem:[%s5345_s1 + $0x300] sm:$0xff]   ;;  %v4346_v9 = vld [vmem:[%s5345_s1 + $0x3c8] sm:$0xff]  }
  0x40   : > { %2492 = vmatmul.mubr.bf16.gmra.mrb[12].mxu1 %v4270_v7  ;;  %3763 = vmatpush3.bf16.msra.mxu0 %v4273_v10  ;;  %v4344_v7 = vld [vmem:[%s5345_s1 + $0x380] sm:$0xff]   ;;  %v4347_v10 = vld [vmem:[%s5345_s1 + $0x308] sm:$0xff]  }
  0x41   : > { %3803 = vmatpush3.bf16.msra.mxu1 %v4274_v11  ;;  %3764 = vmatprep.subr.bf16.mxu0 %v4275_v12  ;;  %v4348_v11 = vld [vmem:[%s5345_s1 + $0x388] sm:$0xff]  }
  0x42   : > { %3804 = vmatprep.subr.bf16.mxu1 %v4276_v13  ;;  %2532 = vmatprep.mubr.bf16.mxu0 %v4281_v17  ;;  %v4349_v12 = vld [vmem:[%s4669_s13 + $0xec] ss:$100 sps:$4 sm:$0xff]   ;;  %v4351_v13 = vld [vmem:[%s4669_s13 + $0xf4] ss:$100 sps:$4 sm:$0xff]  }
  0x43   : > { %2597 = vmatprep.mubr.bf16.mxu1 %v4284_v19  ;;  %v4356_v17 = vld [vmem:[%s5345_s1 + $0x3d0] sm:$0xff]  }
  0x44   : > { %3765 = vmatpush3.bf16.msra.mxu0 %v4277_v14  ;;  %v4353_v14 = vld [vmem:[%s4669_s13 + $0xe8] ss:$100 sps:$4 sm:$0xff]   ;;  %v4358_v19 = vld [vmem:[%s5345_s1 + $0x390] sm:$0xff]  }
  0x45   : > { %3805 = vmatpush3.bf16.msra.mxu1 %v4278_v15  ;;  %3830 = vmatprep.subr.bf16.mxu0 %v4285_v20  ;;  %v4354_v15 = vld [vmem:[%s4669_s13 + $0xf0] ss:$100 sps:$4 sm:$0xff]   ;;  %v4359_v20 = vld [vmem:[%s5345_s1 + $0x358] sm:$0xff]  }
  0x46   : > { %3870 = vmatprep.subr.bf16.mxu1 %v4286_v21  ;;  %v4360_v21 = vld [vmem:[%s5345_s1 + $0x3d8] sm:$0xff]  }
  0x47   : > { %2533 = vmatmul.mubr.bf16.vlgmr.msra.gmra.mrb[16].mxu0 %v4279_v16  ;;  %v4355_v16 = vld [vmem:[%s5345_s1 + $0x350] sm:$0xff]  }
  0x48   : > { %2598 = vmatmul.mubr.bf16.vlgmr.msra.gmra.mrb[16].mxu1 %v4282_v18  ;;  %3831 = vmatpush3.bf16.msra.mxu0 %v4287_v22  ;;  %v4357_v18 = vld [vmem:[%s5345_s1 + $0x310] sm:$0xff]   ;;  %v4361_v22 = vld [vmem:[%s5345_s1 + $0x318] sm:$0xff]  }
  0x49   : > { %3871 = vmatpush3.bf16.msra.mxu1 %v4288_v23  ;;  %3832 = vmatprep.subr.bf16.mxu0 %v4289_v24  ;;  %v4362_v23 = vld [vmem:[%s5345_s1 + $0x398] sm:$0xff]  }
  0x4a   : > { %3872 = vmatprep.subr.bf16.mxu1 %v4290_v25  ;;  %2540 = vmatprep.mubr.bf16.mxu0 %v4293_v28  ;;  %v4363_v24 = vld [vmem:[%s4669_s13 + $0x1b4] ss:$100 sps:$4 sm:$0xff]   ;;  %v4365_v25 = vld [vmem:[%s4669_s13 + $0x1bc] ss:$100 sps:$4 sm:$0xff]  }
  0x4b   : > { %2605 = vmatprep.mubr.bf16.mxu1 %v4295_v29  ;;  %v4369_v28 = vld [vmem:[%s5345_s1 + $0x360] sm:$0xff]  }
  0x4c   : > { %3833 = vmatpush3.bf16.msra.mxu0 %v4291_v26  ;;  %v4367_v26 = vld [vmem:[%s4669_s13 + $0x1b0] ss:$100 sps:$4 sm:$0xff]   ;;  %v4370_v29 = vld [vmem:[%s5345_s1 + $0x3e0] sm:$0xff]  }
  0x4d   : > { %3873 = vmatpush3.bf16.msra.mxu1 %v4292_v27  ;;  %3834 = vmatprep.subr.bf16.mxu0 %v4299_v32  ;;  %v4368_v27 = vld [vmem:[%s4669_s13 + $0x1b8] ss:$100 sps:$4 sm:$0xff]   ;;  %v4373_v32 = vld [vmem:[%s5345_s1 + $0x368] sm:$0xff]  }
  0x4e   : > { %3874 = vmatprep.subr.bf16.mxu1 %v4300_v33  ;;  %v4374_v33 = vld [vmem:[%s5345_s1 + $0x3e8] sm:$0xff]  }
  0x4f   : > { %2541 = vmatmul.mubr.bf16.gmra.mrb[20].mxu0 %v4297_v30  ;;  %v4371_v30 = vld [vmem:[%s5345_s1 + $0x320] sm:$0xff]  }
  0x50   : > { %2606 = vmatmul.mubr.bf16.gmra.mrb[20].mxu1 %v4298_v31  ;;  %3835 = vmatpush3.bf16.msra.mxu0 %v4301_v34  ;;  %v4372_v31 = vld [vmem:[%s5345_s1 + $0x3a0] sm:$0xff]   ;;  %v4375_v34 = vld [vmem:[%s5345_s1 + $0x328] sm:$0xff]  }
  0x51   : > { %3875 = vmatpush3.bf16.msra.mxu1 %v4302_v35  ;;  %3836 = vmatprep.subr.bf16.mxu0 %v4303_v36  ;;  %v4376_v35 = vld [vmem:[%s5345_s1 + $0x3a8] sm:$0xff]   ;;  %v4377_v36 = vld [vmem:[%s4669_s13 + $0x27c] ss:$100 sps:$4 sm:$0xff]  }
  0x52   : > { %3876 = vmatprep.subr.bf16.mxu1 %v4304_v37  ;;  %2548 = vmatprep.mubr.bf16.mxu0 %v4307_v40  ;;  %v4379_v37 = vld [vmem:[%s4669_s13 + $0x284] ss:$100 sps:$4 sm:$0xff]   ;;  %v4383_v40 = vld [vmem:[%s5345_s1 + $0x370] sm:$0xff]  }
  0x53   : > { %2613 = vmatprep.mubr.bf16.mxu1 %v4309_v41  ;;  %v4384_v41 = vld [vmem:[%s5345_s1 + $0x3f0] sm:$0xff]  }
  0x54   : > { %3837 = vmatpush3.bf16.msra.mxu0 %v4305_v38  ;;  %v4381_v38 = vld [vmem:[%s4669_s13 + $0x278] ss:$100 sps:$4 sm:$0xff]  }
  0x55   : > { %3877 = vmatpush3.bf16.msra.mxu1 %v4306_v39  ;;  %3838 = vmatprep.subr.bf16.mxu0 %v4313_v44  ;;  %v4382_v39 = vld [vmem:[%s4669_s13 + $0x280] ss:$100 sps:$4 sm:$0xff]   ;;  %v4387_v44 = vld [vmem:[%s5345_s1 + $0x378] sm:$0xff]  }
  0x56   : > { %3878 = vmatprep.subr.bf16.mxu1 %v4314_v45  ;;  %v4388_v45 = vld [vmem:[%s5345_s1 + $0x3f8] sm:$0xff]  }
  0x57   : > { %2549 = vmatmul.mubr.bf16.gmra.mrb[24].mxu0 %v4311_v42  ;;  %v4385_v42 = vld [vmem:[%s5345_s1 + $0x330] sm:$0xff]  }
  0x58   : > { %2614 = vmatmul.mubr.bf16.gmra.mrb[24].mxu1 %v4312_v43  ;;  %3839 = vmatpush3.bf16.msra.mxu0 %v4315_v46  ;;  %v4386_v43 = vld [vmem:[%s5345_s1 + $0x3b0] sm:$0xff]   ;;  %v4389_v46 = vld [vmem:[%s5345_s1 + $0x338] sm:$0xff]  }
  0x59   : > { %3879 = vmatpush3.bf16.msra.mxu1 %v4316_v47  ;;  %3840 = vmatprep.subr.bf16.mxu0 %v4317_v48  ;;  %v4390_v47 = vld [vmem:[%s5345_s1 + $0x3b8] sm:$0xff]   ;;  %v4391_v48 = vld [vmem:[%s4669_s13 + $0x30] ss:$100 sps:$4 sm:$0xff]  }
  0x5a   : > { %3880 = vmatprep.subr.bf16.mxu1 %v4318_v49  ;;  %2556 = vmatprep.mubr.bf16.mxu0 %v4321_v52  ;;  %v4393_v49 = vld [vmem:[%s4669_s13 + $0x34] ss:$100 sps:$4 sm:$0xff]   ;;  %v4397_v52 = vld [vmem:[%s5345_s1 + $0x440] sm:$0xff]  }
  0x5b   : > { %2621 = vmatprep.mubr.bf16.mxu1 %v4323_v53  ;;  %v4398_v53 = vld [vmem:[%s5345_s1 + $0x4c0] sm:$0xff]  }
  0x5c   : > { %3841 = vmatpush3.bf16.msra.mxu0 %v4319_v50  ;;  %v4394_v50 = vld [vmem:[%s4669_s13 + $0x38] ss:$100 sps:$4 sm:$0xff]  }
  0x5d   : > { %3881 = vmatpush3.bf16.msra.mxu1 %v4320_v51  ;;  %3842 = vmatprep.subr.bf16.mxu0 %v4327_v56  ;;  %v4396_v51 = vld [vmem:[%s4669_s13 + $0x3c] ss:$100 sps:$4 sm:$0xff]   ;;  %v4401_v56 = vld [vmem:[%s5345_s1 + $0x448] sm:$0xff]  }
  0x5e   : > { %3882 = vmatprep.subr.bf16.mxu1 %v4328_v57  ;;  %v4402_v57 = vld [vmem:[%s5345_s1 + $0x4c8] sm:$0xff]  }
  0x5f   : > { %2557 = vmatmul.mubr.bf16.gmra.mrb[28].mxu0 %v4325_v54  ;;  %v4399_v54 = vld [vmem:[%s5345_s1 + $0x400] sm:$0xff]  }
  0x60   : > { %2622 = vmatmul.mubr.bf16.gmra.mrb[28].mxu1 %v4326_v55  ;;  %3843 = vmatpush3.bf16.msra.mxu0 %v4329_v58  ;;  %v4400_v55 = vld [vmem:[%s5345_s1 + $0x480] sm:$0xff]   ;;  %v4403_v58 = vld [vmem:[%s5345_s1 + $0x408] sm:$0xff]  }
  0x61   : > { %3883 = vmatpush3.bf16.msra.mxu1 %v4330_v59  ;;  %3844 = vmatprep.subr.bf16.mxu0 %v4331_v60  ;;  %v4404_v59 = vld [vmem:[%s5345_s1 + $0x488] sm:$0xff]   ;;  %v4405_v60 = vld [vmem:[%s4669_s13 + $0xfc] ss:$100 sps:$4 sm:$0xff]  }
  0x62   : > { %3884 = vmatprep.subr.bf16.mxu1 %v4332_v61  ;;  %2662 = vmatprep.mubr.bf16.mxu0 %v4337_v1  ;;  %v4407_v61 = vld [vmem:[%s4669_s13 + $0x104] ss:$100 sps:$4 sm:$0xff]   ;;  %v4412_v1 = vld [vmem:[%s5345_s1 + $0x4d0] sm:$0xff]  }
  0x63   : > { %2727 = vmatprep.mubr.bf16.mxu1 %v4340_v3  ;;  %v4414_v3 = vld [vmem:[%s5345_s1 + $0x490] sm:$0xff]  }
  0x64   : > { %3845 = vmatpush3.bf16.msra.mxu0 %v4333_v62  ;;  %v4409_v62 = vld [vmem:[%s4669_s13 + $0xf8] ss:$100 sps:$4 sm:$0xff]  }
  0x65   : > { %3885 = vmatpush3.bf16.msra.mxu1 %v4334_v63  ;;  %3910 = vmatprep.subr.bf16.mxu0 %v4341_v4  ;;  %v4410_v63 = vld [vmem:[%s4669_s13 + $0x100] ss:$100 sps:$4 sm:$0xff]   ;;  %v4415_v4 = vld [vmem:[%s5345_s1 + $0x458] sm:$0xff]  }
  0x66   : > { %3950 = vmatprep.subr.bf16.mxu1 %v4342_v5  ;;  %v4416_v5 = vld [vmem:[%s5345_s1 + $0x4d8] sm:$0xff]  }
  0x67   : > { %2663 = vmatmul.mubr.bf16.vlgmr.msra.gmra.mrb[32].mxu0 %v4335_v0  ;;  %v4411_v0 = vld [vmem:[%s5345_s1 + $0x450] sm:$0xff]  }
  0x68   : > { %2728 = vmatmul.mubr.bf16.vlgmr.msra.gmra.mrb[32].mxu1 %v4338_v2  ;;  %3911 = vmatpush3.bf16.msra.mxu0 %v4343_v6  ;;  %v4413_v2 = vld [vmem:[%s5345_s1 + $0x410] sm:$0xff]   ;;  %v4417_v6 = vld [vmem:[%s5345_s1 + $0x418] sm:$0xff]  }
  0x69   : > { %3951 = vmatpush3.bf16.msra.mxu1 %v4344_v7  ;;  %3912 = vmatprep.subr.bf16.mxu0 %v4345_v8  ;;  %v4418_v7 = vld [vmem:[%s5345_s1 + $0x498] sm:$0xff]   ;;  %v4419_v8 = vld [vmem:[%s4669_s13 + $0x1c4] ss:$100 sps:$4 sm:$0xff]  }
  0x6a   : > { %3952 = vmatprep.subr.bf16.mxu1 %v4346_v9  ;;  %2670 = vmatprep.mubr.bf16.mxu0 %v4349_v12  ;;  %v4421_v9 = vld [vmem:[%s4669_s13 + $0x1cc] ss:$100 sps:$4 sm:$0xff]   ;;  %v4425_v12 = vld [vmem:[%s5345_s1 + $0x460] sm:$0xff]  }
  0x6b   : > { %2735 = vmatprep.mubr.bf16.mxu1 %v4351_v13  ;;  %v4426_v13 = vld [vmem:[%s5345_s1 + $0x4e0] sm:$0xff]  }
  0x6c   : > { %3913 = vmatpush3.bf16.msra.mxu0 %v4347_v10  ;;  %v4423_v10 = vld [vmem:[%s4669_s13 + $0x1c0] ss:$100 sps:$4 sm:$0xff]  }
  0x6d   : > { %3953 = vmatpush3.bf16.msra.mxu1 %v4348_v11  ;;  %3914 = vmatprep.subr.bf16.mxu0 %v4355_v16  ;;  %v4424_v11 = vld [vmem:[%s4669_s13 + $0x1c8] ss:$100 sps:$4 sm:$0xff]  }
  0x6e   : > { %3954 = vmatprep.subr.bf16.mxu1 %v4356_v17  ;;  %v4429_v16 = vld [vmem:[%s5345_s1 + $0x468] sm:$0xff]  }
  0x6f   : > { %2671 = vmatmul.mubr.bf16.gmra.mrb[36].mxu0 %v4353_v14  ;;  %v4427_v14 = vld [vmem:[%s5345_s1 + $0x420] sm:$0xff]   ;;  %v4430_v17 = vld [vmem:[%s5345_s1 + $0x4e8] sm:$0xff]  }
  0x70   : > { %2736 = vmatmul.mubr.bf16.gmra.mrb[36].mxu1 %v4354_v15  ;;  %3915 = vmatpush3.bf16.msra.mxu0 %v4357_v18  ;;  %v4428_v15 = vld [vmem:[%s5345_s1 + $0x4a0] sm:$0xff]   ;;  %v4431_v18 = vld [vmem:[%s5345_s1 + $0x428] sm:$0xff]  }
  0x71   : > { %3955 = vmatpush3.bf16.msra.mxu1 %v4358_v19  ;;  %3916 = vmatprep.subr.bf16.mxu0 %v4359_v20  ;;  %v4432_v19 = vld [vmem:[%s5345_s1 + $0x4a8] sm:$0xff]  }
  0x72   : > { %3956 = vmatprep.subr.bf16.mxu1 %v4360_v21  ;;  %2678 = vmatprep.mubr.bf16.mxu0 %v4363_v24  ;;  %v4433_v20 = vld [vmem:[%s4669_s13 + $0x28c] ss:$100 sps:$4 sm:$0xff]   ;;  %v4435_v21 = vld [vmem:[%s4669_s13 + $0x294] ss:$100 sps:$4 sm:$0xff]  }
  0x73   : > { %2743 = vmatprep.mubr.bf16.mxu1 %v4365_v25  ;;  %v4439_v24 = vld [vmem:[%s5345_s1 + $0x470] sm:$0xff]  }
  0x74   : > { %3917 = vmatpush3.bf16.msra.mxu0 %v4361_v22  ;;  %v4437_v22 = vld [vmem:[%s4669_s13 + $0x288] ss:$100 sps:$4 sm:$0xff]   ;;  %v4440_v25 = vld [vmem:[%s5345_s1 + $0x4f0] sm:$0xff]  }
  0x75   : > { %3957 = vmatpush3.bf16.msra.mxu1 %v4362_v23  ;;  %3918 = vmatprep.subr.bf16.mxu0 %v4369_v28  ;;  %v4438_v23 = vld [vmem:[%s4669_s13 + $0x290] ss:$100 sps:$4 sm:$0xff]   ;;  %v4443_v28 = vld [vmem:[%s5345_s1 + $0x478] sm:$0xff]  }
  0x76   : > { %3958 = vmatprep.subr.bf16.mxu1 %v4370_v29  ;;  %v4444_v29 = vld [vmem:[%s5345_s1 + $0x4f8] sm:$0xff]  }
  0x77   : > { %2679 = vmatmul.mubr.bf16.gmra.mrb[40].mxu0 %v4367_v26  ;;  %v4441_v26 = vld [vmem:[%s5345_s1 + $0x430] sm:$0xff]  }
  0x78   : > { %2744 = vmatmul.mubr.bf16.gmra.mrb[40].mxu1 %v4368_v27  ;;  %3919 = vmatpush3.bf16.msra.mxu0 %v4371_v30  ;;  %v4442_v27 = vld [vmem:[%s5345_s1 + $0x4b0] sm:$0xff]   ;;  %v4445_v30 = vld [vmem:[%s5345_s1 + $0x438] sm:$0xff]  }
  0x79   : > { %3959 = vmatpush3.bf16.msra.mxu1 %v4372_v31  ;;  %3920 = vmatprep.subr.bf16.mxu0 %v4373_v32  ;;  %v4446_v31 = vld [vmem:[%s5345_s1 + $0x4b8] sm:$0xff]   ;;  %v4447_v32 = vld [vmem:[%s4669_s13 + $0x40] ss:$100 sps:$4 sm:$0xff]  }
  0x7a   : > { %3960 = vmatprep.subr.bf16.mxu1 %v4374_v33  ;;  %2686 = vmatprep.mubr.bf16.mxu0 %v4377_v36  ;;  %v4449_v33 = vld [vmem:[%s4669_s13 + $0x44] ss:$100 sps:$4 sm:$0xff]  }
  0x7b   : > { %2751 = vmatprep.mubr.bf16.mxu1 %v4379_v37  ;;  %v4453_v36 = vld [vmem:[%s5345_s1 + $0x540] sm:$0xff]  }
  0x7c   : > { %3921 = vmatpush3.bf16.msra.mxu0 %v4375_v34  ;;  %v4450_v34 = vld [vmem:[%s4669_s13 + $0x48] ss:$100 sps:$4 sm:$0xff]   ;;  %v4454_v37 = vld [vmem:[%s5345_s1 + $0x5c0] sm:$0xff]  }
  0x7d   : > { %3961 = vmatpush3.bf16.msra.mxu1 %v4376_v35  ;;  %3922 = vmatprep.subr.bf16.mxu0 %v4383_v40  ;;  %v4452_v35 = vld [vmem:[%s4669_s13 + $0x4c] ss:$100 sps:$4 sm:$0xff]  }
  0x7e   : > { %3962 = vmatprep.subr.bf16.mxu1 %v4384_v41  ;;  %v4457_v40 = vld [vmem:[%s5345_s1 + $0x548] sm:$0xff]  }
  0x7f   : > { %2687 = vmatmul.mubr.bf16.gmra.mrb[44].mxu0 %v4381_v38  ;;  %v4455_v38 = vld [vmem:[%s5345_s1 + $0x500] sm:$0xff]   ;;  %v4458_v41 = vld [vmem:[%s5345_s1 + $0x5c8] sm:$0xff]  }
  0x80   : > { %2752 = vmatmul.mubr.bf16.gmra.mrb[44].mxu1 %v4382_v39  ;;  %3923 = vmatpush3.bf16.msra.mxu0 %v4385_v42  ;;  %v4456_v39 = vld [vmem:[%s5345_s1 + $0x580] sm:$0xff]   ;;  %v4459_v42 = vld [vmem:[%s5345_s1 + $0x508] sm:$0xff]  }
  0x81   : > { %3963 = vmatpush3.bf16.msra.mxu1 %v4386_v43  ;;  %3924 = vmatprep.subr.bf16.mxu0 %v4387_v44  ;;  %v4460_v43 = vld [vmem:[%s5345_s1 + $0x588] sm:$0xff]  }
  0x82   : > { %3964 = vmatprep.subr.bf16.mxu1 %v4388_v45  ;;  %2792 = vmatprep.mubr.bf16.mxu0 %v4393_v49  ;;  %v4461_v44 = vld [vmem:[%s4669_s13 + $0x10c] ss:$100 sps:$4 sm:$0xff]   ;;  %v4463_v45 = vld [vmem:[%s4669_s13 + $0x114] ss:$100 sps:$4 sm:$0xff]  }
  0x83   : > { %2857 = vmatprep.mubr.bf16.mxu1 %v4396_v51  ;;  %v4468_v49 = vld [vmem:[%s5345_s1 + $0x5d0] sm:$0xff]  }
  0x84   : > { %3925 = vmatpush3.bf16.msra.mxu0 %v4389_v46  ;;  %v4465_v46 = vld [vmem:[%s4669_s13 + $0x108] ss:$100 sps:$4 sm:$0xff]   ;;  %v4470_v51 = vld [vmem:[%s5345_s1 + $0x590] sm:$0xff]  }
  0x85   : > { %3965 = vmatpush3.bf16.msra.mxu1 %v4390_v47  ;;  %3990 = vmatprep.subr.bf16.mxu0 %v4397_v52  ;;  %v4466_v47 = vld [vmem:[%s4669_s13 + $0x110] ss:$100 sps:$4 sm:$0xff]   ;;  %v4471_v52 = vld [vmem:[%s5345_s1 + $0x558] sm:$0xff]  }
  0x86   : > { %4030 = vmatprep.subr.bf16.mxu1 %v4398_v53  ;;  %v4472_v53 = vld [vmem:[%s5345_s1 + $0x5d8] sm:$0xff]  }
  0x87   : > { %2793 = vmatmul.mubr.bf16.vlgmr.msra.gmra.mrb[48].mxu0 %v4391_v48  ;;  %v4467_v48 = vld [vmem:[%s5345_s1 + $0x550] sm:$0xff]  }
  0x88   : > { %2858 = vmatmul.mubr.bf16.vlgmr.msra.gmra.mrb[48].mxu1 %v4394_v50  ;;  %3991 = vmatpush3.bf16.msra.mxu0 %v4399_v54  ;;  %v4469_v50 = vld [vmem:[%s5345_s1 + $0x510] sm:$0xff]   ;;  %v4473_v54 = vld [vmem:[%s5345_s1 + $0x518] sm:$0xff]  }
  0x89   : > { %4031 = vmatpush3.bf16.msra.mxu1 %v4400_v55  ;;  %3992 = vmatprep.subr.bf16.mxu0 %v4401_v56  ;;  %v4474_v55 = vld [vmem:[%s5345_s1 + $0x598] sm:$0xff]  }
  0x8a   : > { %4032 = vmatprep.subr.bf16.mxu1 %v4402_v57  ;;  %2800 = vmatprep.mubr.bf16.mxu0 %v4405_v60  ;;  %v4475_v56 = vld [vmem:[%s4669_s13 + $0x1d4] ss:$100 sps:$4 sm:$0xff]   ;;  %v4477_v57 = vld [vmem:[%s4669_s13 + $0x1dc] ss:$100 sps:$4 sm:$0xff]  }
  0x8b   : > { %2865 = vmatprep.mubr.bf16.mxu1 %v4407_v61  ;;  %v4481_v60 = vld [vmem:[%s5345_s1 + $0x560] sm:$0xff]  }
  0x8c   : > { %3993 = vmatpush3.bf16.msra.mxu0 %v4403_v58  ;;  %v4479_v58 = vld [vmem:[%s4669_s13 + $0x1d0] ss:$100 sps:$4 sm:$0xff]   ;;  %v4482_v61 = vld [vmem:[%s5345_s1 + $0x5e0] sm:$0xff]  }
  0x8d   : > { %4033 = vmatpush3.bf16.msra.mxu1 %v4404_v59  ;;  %3994 = vmatprep.subr.bf16.mxu0 %v4411_v0  ;;  %v4480_v59 = vld [vmem:[%s4669_s13 + $0x1d8] ss:$100 sps:$4 sm:$0xff]   ;;  %v4485_v0 = vld [vmem:[%s5345_s1 + $0x568] sm:$0xff]  }
  0x8e   : > { %4034 = vmatprep.subr.bf16.mxu1 %v4412_v1  ;;  %v4486_v1 = vld [vmem:[%s5345_s1 + $0x5e8] sm:$0xff]  }
  0x8f   : > { %2801 = vmatmul.mubr.bf16.gmra.mrb[52].mxu0 %v4409_v62  ;;  %v4483_v62 = vld [vmem:[%s5345_s1 + $0x520] sm:$0xff]  }
  0x90   : > { %2866 = vmatmul.mubr.bf16.gmra.mrb[52].mxu1 %v4410_v63  ;;  %3995 = vmatpush3.bf16.msra.mxu0 %v4413_v2  ;;  %v4484_v63 = vld [vmem:[%s5345_s1 + $0x5a0] sm:$0xff]   ;;  %v4487_v2 = vld [vmem:[%s5345_s1 + $0x528] sm:$0xff]  }
  0x91   : > { %4035 = vmatpush3.bf16.msra.mxu1 %v4414_v3  ;;  %3996 = vmatprep.subr.bf16.mxu0 %v4415_v4  ;;  %v4488_v3 = vld [vmem:[%s5345_s1 + $0x5a8] sm:$0xff]   ;;  %v4489_v4 = vld [vmem:[%s4669_s13 + $0x29c] ss:$100 sps:$4 sm:$0xff]  }
  0x92   : > { %4036 = vmatprep.subr.bf16.mxu1 %v4416_v5  ;;  %2808 = vmatprep.mubr.bf16.mxu0 %v4419_v8  ;;  %v4491_v5 = vld [vmem:[%s4669_s13 + $0x2a4] ss:$100 sps:$4 sm:$0xff]   ;;  %v4495_v8 = vld [vmem:[%s5345_s1 + $0x570] sm:$0xff]  }
  0x93   : > { %2873 = vmatprep.mubr.bf16.mxu1 %v4421_v9  ;;  %v4496_v9 = vld [vmem:[%s5345_s1 + $0x5f0] sm:$0xff]  }
  0x94   : > { %3997 = vmatpush3.bf16.msra.mxu0 %v4417_v6  ;;  %v4493_v6 = vld [vmem:[%s4669_s13 + $0x298] ss:$100 sps:$4 sm:$0xff]  }
  0x95   : > { %4037 = vmatpush3.bf16.msra.mxu1 %v4418_v7  ;;  %3998 = vmatprep.subr.bf16.mxu0 %v4425_v12  ;;  %v4494_v7 = vld [vmem:[%s4669_s13 + $0x2a0] ss:$100 sps:$4 sm:$0xff]   ;;  %v4499_v12 = vld [vmem:[%s5345_s1 + $0x578] sm:$0xff]  }
  0x96   : > { %4038 = vmatprep.subr.bf16.mxu1 %v4426_v13  ;;  %v4500_v13 = vld [vmem:[%s5345_s1 + $0x5f8] sm:$0xff]  }
  0x97   : > { %2809 = vmatmul.mubr.bf16.gmra.mrb[56].mxu0 %v4423_v10  ;;  %v4497_v10 = vld [vmem:[%s5345_s1 + $0x530] sm:$0xff]  }
  0x98   : > { %2874 = vmatmul.mubr.bf16.gmra.mrb[56].mxu1 %v4424_v11  ;;  %3999 = vmatpush3.bf16.msra.mxu0 %v4427_v14  ;;  %v4498_v11 = vld [vmem:[%s5345_s1 + $0x5b0] sm:$0xff]   ;;  %v4501_v14 = vld [vmem:[%s5345_s1 + $0x538] sm:$0xff]  }
  0x99   : > { %4039 = vmatpush3.bf16.msra.mxu1 %v4428_v15  ;;  %4000 = vmatprep.subr.bf16.mxu0 %v4429_v16  ;;  %v4502_v15 = vld [vmem:[%s5345_s1 + $0x5b8] sm:$0xff]   ;;  %v4503_v16 = vld [vmem:[%s4669_s13 + $0x50] ss:$100 sps:$4 sm:$0xff]  }
  0x9a   : > { %4040 = vmatprep.subr.bf16.mxu1 %v4430_v17  ;;  %2816 = vmatprep.mubr.bf16.mxu0 %v4433_v20  ;;  %v4505_v17 = vld [vmem:[%s4669_s13 + $0x54] ss:$100 sps:$4 sm:$0xff]  }
  0x9b   : > { %2881 = vmatprep.mubr.bf16.mxu1 %v4435_v21  ;;  %v4509_v21 = vld [vmem:[%s5345_s1 + $0x600] sm:$0xff]  }
  0x9c   : > { %4001 = vmatpush3.bf16.msra.mxu0 %v4431_v18  ;;  %v4506_v18 = vld [vmem:[%s4669_s13 + $0x58] ss:$100 sps:$4 sm:$0xff]  }
  0x9d   : > { %4041 = vmatpush3.bf16.msra.mxu1 %v4432_v19  ;;  %4002 = vmatprep.subr.bf16.mxu0 %v4439_v24  ;;  %v4508_v19 = vld [vmem:[%s4669_s13 + $0x5c] ss:$100 sps:$4 sm:$0xff]  }
  0x9e   : > { %4042 = vmatprep.subr.bf16.mxu1 %v4440_v25 }
  0x9f   : > { %2817 = vmatmul.mubr.bf16.gmra.mrb[60].mxu0 %v4437_v22 }
  0xa0   : > { %2882 = vmatmul.mubr.bf16.gmra.mrb[60].mxu1 %v4438_v23  ;;  %4003 = vmatpush3.bf16.msra.mxu0 %v4441_v26  ;;  %v4510_v23 = vld [vmem:[%s4669_s13 + $0x11c] ss:$100 sps:$4 sm:$0xff]   ;;  %v4512_v26 = vld [vmem:[%s4669_s13 + $0x124] ss:$100 sps:$4 sm:$0xff]  }
  0xa1   : > { %4043 = vmatpush3.bf16.msra.mxu1 %v4442_v27  ;;  %4004 = vmatprep.subr.bf16.mxu0 %v4443_v28 }
  0xa2   : > { %4044 = vmatprep.subr.bf16.mxu1 %v4444_v29  ;;  %2922 = vmatprep.mubr.bf16.mxu0 %v4449_v33 }
  0xa3   : > { %2987 = vmatprep.mubr.bf16.mxu1 %v4452_v35 }
  0xa4   : > { %4005 = vmatpush3.bf16.msra.mxu0 %v4445_v30 }
  0xa5   : > { %4045 = vmatpush3.bf16.msra.mxu1 %v4446_v31  ;;  %4070 = vmatprep.subr.bf16.mxu0 %v4453_v36  ;;  %v4516_v31 = vld [vmem:[%s5345_s1 + $0x608] sm:$0xff]  }
  0xa6   : > { %4110 = vmatprep.subr.bf16.mxu1 %v4454_v37  ;;  %v4515_v37 = vld [vmem:[%s4669_s13 + $0x120] ss:$100 sps:$4 sm:$0xff]  }
  0xa7   : > { %2923 = vmatmul.mubr.bf16.vlgmr.msra.gmra.mrb[64].mxu0 %v4447_v32 }
  0xa8   : > { %2988 = vmatmul.mubr.bf16.vlgmr.msra.gmra.mrb[64].mxu1 %v4450_v34  ;;  %4071 = vmatpush3.bf16.msra.mxu0 %v4455_v38  ;;  %v4514_v34 = vld [vmem:[%s4669_s13 + $0x118] ss:$100 sps:$4 sm:$0xff]   ;;  %v4517_v38 = vld [vmem:[%s4669_s13 + $0x1e4] ss:$100 sps:$4 sm:$0xff]  }
  0xa9   : > { %4111 = vmatpush3.bf16.msra.mxu1 %v4456_v39  ;;  %4072 = vmatprep.subr.bf16.mxu0 %v4457_v40  ;;  %v4519_v39 = vld [vmem:[%s4669_s13 + $0x1ec] ss:$100 sps:$4 sm:$0xff]  }
  0xaa   : > { %4112 = vmatprep.subr.bf16.mxu1 %v4458_v41  ;;  %2930 = vmatprep.mubr.bf16.mxu0 %v4461_v44  ;;  %v4523_v40 = vld [vmem:[%s5345_s1 + $0x610] sm:$0xff]   ;;  %v4521_v44 = vld [vmem:[%s4669_s13 + $0x1e0] ss:$100 sps:$4 sm:$0xff]  }
  0xab   : > { %2995 = vmatprep.mubr.bf16.mxu1 %v4463_v45  ;;  %v4522_v45 = vld [vmem:[%s4669_s13 + $0x1e8] ss:$100 sps:$4 sm:$0xff]  }
  0xac   : > { %4073 = vmatpush3.bf16.msra.mxu0 %v4459_v42  ;;  %v4530_v42 = vld [vmem:[%s5345_s1 + $0x618] sm:$0xff]  }
  0xad   : > { %4113 = vmatpush3.bf16.msra.mxu1 %v4460_v43  ;;  %4074 = vmatprep.subr.bf16.mxu0 %v4467_v48  ;;  %v5266_v48 = vld [vmem:[%s5346_s2] ss:$0 sm:$0xff] }
  0xae   : > { %4114 = vmatprep.subr.bf16.mxu1 %v4468_v49 }
  0xaf   : > { %2931 = vmatmul.mubr.bf16.gmra.mrb[68].mxu0 %v4465_v46  ;;  %v4524_v46 = vld [vmem:[%s4669_s13 + $0x2ac] ss:$100 sps:$4 sm:$0xff]  }
  0xb0   : > { %2996 = vmatmul.mubr.bf16.gmra.mrb[68].mxu1 %v4466_v47  ;;  %4075 = vmatpush3.bf16.msra.mxu0 %v4469_v50  ;;  %v4526_v47 = vld [vmem:[%s4669_s13 + $0x2b4] ss:$100 sps:$4 sm:$0xff]  }
  0xb1   : > { %4115 = vmatpush3.bf16.msra.mxu1 %v4470_v51  ;;  %4076 = vmatprep.subr.bf16.mxu0 %v4471_v52 }
  0xb2   : > { %4116 = vmatprep.subr.bf16.mxu1 %v4472_v53  ;;  %2938 = vmatprep.mubr.bf16.mxu0 %v4475_v56 }
  0xb3   : > { %3003 = vmatprep.mubr.bf16.mxu1 %v4477_v57 }
  0xb4   : > { %4077 = vmatpush3.bf16.msra.mxu0 %v4473_v54 }
  0xb5   : > { %4117 = vmatpush3.bf16.msra.mxu1 %v4474_v55  ;;  %4078 = vmatprep.subr.bf16.mxu0 %v4481_v60 }
  0xb6   : > { %4118 = vmatprep.subr.bf16.mxu1 %v4482_v61 }
  0xb7   : > { %2939 = vmatmul.mubr.bf16.gmra.mrb[72].mxu0 %v4479_v58 }
  0xb8   : > { %3004 = vmatmul.mubr.bf16.gmra.mrb[72].mxu1 %v4480_v59  ;;  %4079 = vmatpush3.bf16.msra.mxu0 %v4483_v62 }
  0xb9   : > { %4119 = vmatpush3.bf16.msra.mxu1 %v4484_v63  ;;  %4080 = vmatprep.subr.bf16.mxu0 %v4485_v0 }
  0xba   : > { %4120 = vmatprep.subr.bf16.mxu1 %v4486_v1  ;;  %2946 = vmatprep.mubr.bf16.mxu0 %v4489_v4  ;;  %v4528_v1 = vld [vmem:[%s4669_s13 + $0x2a8] ss:$100 sps:$4 sm:$0xff]  }
  0xbb   : > { %3011 = vmatprep.mubr.bf16.mxu1 %v4491_v5 }
  0xbc   : > { %4081 = vmatpush3.bf16.msra.mxu0 %v4487_v2 }
  0xbd   : > { %4121 = vmatpush3.bf16.msra.mxu1 %v4488_v3  ;;  %4082 = vmatprep.subr.bf16.mxu0 %v4495_v8 }
  0xbe   : > { %4122 = vmatprep.subr.bf16.mxu1 %v4496_v9 }
  0xbf   : > { %2947 = vmatmul.mubr.bf16.gmra.mrb[76].mxu0 %v4493_v6  ;;  %v4529_v6 = vld [vmem:[%s4669_s13 + $0x2b0] ss:$100 sps:$4 sm:$0xff]  }
  0xc0   : > { %3012 = vmatmul.mubr.bf16.gmra.mrb[76].mxu1 %v4494_v7  ;;  %4083 = vmatpush3.bf16.msra.mxu0 %v4497_v10  ;;  %v4531_v7 = vld [vmem:[%s4669_s13 + $0x60] ss:$100 sps:$4 sm:$0xff]  }
  0xc1   : > { %4123 = vmatpush3.bf16.msra.mxu1 %v4498_v11  ;;  %4084 = vmatprep.subr.bf16.mxu0 %v4499_v12  ;;  %v4532_v11 = vld [vmem:[%s4669_s13 + $0x1f0] ss:$100 sps:$4 sm:$0xff]  }
  0xc2   : > { %4124 = vmatprep.subr.bf16.mxu1 %v4500_v13  ;;  %3052 = vmatprep.mubr.bf16.mxu0 %v4505_v17 }
  0xc3   : > { %3117 = vmatprep.mubr.bf16.mxu1 %v4508_v19 }
  0xc4   : > { %4085 = vmatpush3.bf16.msra.mxu0 %v4501_v14 }
  0xc5   : > { %4125 = vmatpush3.bf16.msra.mxu1 %v4502_v15  ;;  %4158 = vmatprep.subr.bf16.mxu0 %v4509_v21 }
  0xc6   : > { %4174 = vmatprep.subr.bf16.mxu1 %v4509_v21 }
  0xc7   : > { %3053 = vmatmul.mubr.bf16.vlgmr.msra.gmra.mrb[80].mxu0 %v4503_v16 }
  0xc8   : > { %3118 = vmatmul.mubr.bf16.vlgmr.msra.gmra.mrb[80].mxu1 %v4506_v18  ;;  %4159 = vmatpush3.bf16.msra.mxu0 %v4509_v21 }
  0xc9   : > { %4178 = vmatpush3.bf16.msra.mxu1 %v4509_v21  ;;  %3060 = vmatprep.mubr.bf16.mxu0 %v4510_v23  ;;  %v4533_v23 = vld [vmem:[%s4669_s13 + $0x128] ss:$100 sps:$4 sm:$0xff]  }
  0xca   : > { %3125 = vmatprep.mubr.bf16.mxu1 %v4512_v26  ;;  %4160 = vmatprep.subr.bf16.mxu0 %v4516_v31 }
  0xcb   : > { %4175 = vmatprep.subr.bf16.mxu1 %v4516_v31 }
  0xcc   : > { %4161 = vmatpush3.bf16.msra.mxu0 %v4516_v31 }
  0xcd   : > { %4179 = vmatpush3.bf16.msra.mxu1 %v4516_v31  ;;  %4162 = vmatprep.subr.bf16.mxu0 %v4523_v40 }
  0xce   : > { %4176 = vmatprep.subr.bf16.mxu1 %v4523_v40 }
  0xcf   : > { %3061 = vmatmul.mubr.bf16.gmra.mrb[84].mxu0 %v4514_v34 }
  0xd0   : > { %3126 = vmatmul.mubr.bf16.gmra.mrb[84].mxu1 %v4515_v37  ;;  %3068 = vmatprep.mubr.bf16.mxu0 %v4517_v38 }
  0xd1   : > { %3133 = vmatprep.mubr.bf16.mxu1 %v4519_v39  ;;  %4163 = vmatpush3.bf16.msra.mxu0 %v4523_v40 }
  0xd2   : > { %4180 = vmatpush3.bf16.msra.mxu1 %v4523_v40  ;;  %4164 = vmatprep.subr.bf16.mxu0 %v4530_v42 }
  0xd3   : > { %4177 = vmatprep.subr.bf16.mxu1 %v4530_v42 }
  0xd5   : > { %4165 = vmatpush3.bf16.msra.mxu0 %v4530_v42 }
  0xd6   : > { %4181 = vmatpush3.bf16.msra.mxu1 %v4530_v42 }
  0xd7   : > { %3069 = vmatmul.mubr.bf16.gmra.mrb[88].mxu0 %v4521_v44 }
  0xd8   : > { %3134 = vmatmul.mubr.bf16.gmra.mrb[88].mxu1 %v4522_v45  ;;  %3076 = vmatprep.mubr.bf16.mxu0 %v4524_v46 }
  0xd9   : > { %3141 = vmatprep.mubr.bf16.mxu1 %v4526_v47 }
  0xdf   : > { %3077 = vmatmul.mubr.bf16.gmra.mrb[92].mxu0 %v4528_v1 }
  0xe0   : > { %3142 = vmatmul.mubr.bf16.gmra.mrb[92].mxu1 %v4529_v6  ;;  %4166 = vmatprep.mubr.msk.bf16.mxu0 %vm2357_vm0, %v4531_v7 }
  0xe1   : > { %4170 = vmatprep.mubr.msk.bf16.mxu1 %vm2357_vm0, %v4532_v11 }
  0xe7   : > { %4167 = vmatmul.mubr.msk.bf16.vlgmr.msra.gmra.mrb[96].mxu0 %vm2357_vm0, %v4533_v23 }
  0xfa   : > { %v3686_v20 = vpop.f32.mrb[0].mxu0 }
  0xfb   : > { %v3726_v22 = vpop.f32.mrb[0].mxu1  ;;  %v3687_v24 = vpop.f32.mrb[1].mxu0 }
  0xfc   : > { %v3727_v25 = vpop.f32.mrb[1].mxu1  ;;  %v3688_v27 = vadd.f32 %v3687_v24, %v3686_v20  ;;  %v3689_v29 = vpop.f32.mrb[2].mxu0  ;;  %v4534_v24 = vld [vmem:[%s4669_s13 + $0x2b8] ss:$100 sps:$4 sm:$0xff]   ;;  %s3327_s13 = sshll.u32 %s5349_s19, 2 }
  0xfd   : > { %v3728_v28 = vadd.f32 %v3727_v25, %v3726_v22  ;;  %v3729_v30 = vpop.f32.mrb[2].mxu1  ;;  %v3690_v32 = vpop.f32.mrb[3].mxu0  ;;  %4171 = vmatmul.mubr.msk.bf16.vlgmr.msra.gmra.mrb[96].mxu1 %vm2357_vm0, %v4534_v24  ;;  %s175_s28 = scalar_lea.vmem %s5347_s3, %s3327_s13 }
  0xfe   : > { %v3730_v33 = vpop.f32.mrb[3].mxu1  ;;  %v3691_v35 = vadd.f32 %v3690_v32, %v3689_v29  ;;  %v2405_v51 = vadd.f32 %v3688_v27, %v5266_v48 }
  0xff   : > { %v3731_v36 = vadd.f32 %v3730_v33, %v3729_v30 }
 0x100   : > { %v2408_v52 = vadd.f32 %v3691_v35, %v5266_v48  ;;  %v2470_v59 = vadd.f32 %v3728_v28, %v2405_v51 }
 0x102   : > { %v3692_v41 = vpop.f32.mrb[4].mxu0  ;;  %v5270_v60 = vadd.f32 %v3731_v36, %v2408_v52 }
 0x103   : > { %v3732_v43 = vpop.f32.mrb[4].mxu1  ;;  %v3693_v49 = vpop.f32.mrb[5].mxu0 }
 0x104   : > { %v3733_v50 = vpop.f32.mrb[5].mxu1  ;;  %v3694_v53 = vadd.f32 %v3693_v49, %v3692_v41  ;;  %v3695_v54 = vpop.f32.mrb[6].mxu0 }
 0x105   : > { %v3735_v55 = vpop.f32.mrb[6].mxu1  ;;  %v3734_v56 = vadd.f32 %v3733_v50, %v3732_v43  ;;  %v3696_v57 = vpop.f32.mrb[7].mxu0 }
 0x106   : > { %v3736_v58 = vpop.f32.mrb[7].mxu1  ;;  %v2413_v61 = vadd.f32 %v3694_v53, %v5266_v48  ;;  %v3697_v62 = vadd.f32 %v3696_v57, %v3695_v54 }
 0x107   : > { %v3737_v63 = vadd.f32 %v3736_v58, %v3735_v55 }
 0x108   : > { %v5274_v2 = vadd.f32 %v3734_v56, %v2413_v61  ;;  %v2416_v3 = vadd.f32 %v3697_v62, %v5266_v48 }
 0x10a   : > { %v3698_v0 = vpop.f32.mrb[8].mxu0  ;;  %v5280_v12 = vadd.f32 %v3737_v63, %v2416_v3 }
 0x10b   : > { %v3738_v4 = vpop.f32.mrb[8].mxu1  ;;  %v3699_v5 = vpop.f32.mrb[9].mxu0 }
 0x10c   : > { %v3700_v8 = vadd.f32 %v3699_v5, %v3698_v0  ;;  %v3739_v9 = vpop.f32.mrb[9].mxu1  ;;  %v3701_v10 = vpop.f32.mrb[10].mxu0 }
 0x10d   : > { %v3740_v13 = vadd.f32 %v3739_v9, %v3738_v4  ;;  %v3741_v14 = vpop.f32.mrb[10].mxu1  ;;  %v3702_v15 = vpop.f32.mrb[11].mxu0 }
 0x10e   : > { %v2421_v16 = vadd.f32 %v3700_v8, %v5266_v48  ;;  %v3703_v17 = vadd.f32 %v3702_v15, %v3701_v10  ;;  %v3742_v18 = vpop.f32.mrb[11].mxu1 }
 0x10f   : > { %v3743_v19 = vadd.f32 %v3742_v18, %v3741_v14 }
 0x110   : > { %v5284_v20 = vadd.f32 %v3740_v13, %v2421_v16  ;;  %v2424_v21 = vadd.f32 %v3703_v17, %v5266_v48 }
 0x112   : > { %v5288_v22 = vadd.f32 %v3743_v19, %v2424_v21  ;;  %v3704_v25 = vpop.f32.mrb[12].mxu0 }
 0x113   : > { %v3744_v26 = vpop.f32.mrb[12].mxu1  ;;  %v3705_v27 = vpop.f32.mrb[13].mxu0 }
 0x114   : > { %v3745_v28 = vpop.f32.mrb[13].mxu1  ;;  %v3706_v29 = vadd.f32 %v3705_v27, %v3704_v25  ;;  %v3707_v31 = vpop.f32.mrb[14].mxu0 }
 0x115   : > { %v3746_v30 = vadd.f32 %v3745_v28, %v3744_v26  ;;  %v3747_v32 = vpop.f32.mrb[14].mxu1  ;;  %v3708_v33 = vpop.f32.mrb[15].mxu0 }
 0x116   : > { %v3748_v34 = vpop.f32.mrb[15].mxu1  ;;  %v2429_v35 = vadd.f32 %v3706_v29, %v5266_v48  ;;  %v3709_v36 = vadd.f32 %v3708_v33, %v3707_v31 }
 0x117   : > { %v3749_v37 = vadd.f32 %v3748_v34, %v3747_v32 }
 0x118   : > { %v2494_v38 = vadd.f32 %v3746_v30, %v2429_v35  ;;  %v2432_v39 = vadd.f32 %v3709_v36, %v5266_v48 }
 0x11a   : > { %v5296_v40 = vadd.f32 %v3749_v37, %v2432_v39  ;;  %v3766_v41 = vpop.f32.mrb[16].mxu0 }
 0x11b   : > { %v3767_v42 = vpop.f32.mrb[17].mxu0  ;;  %v3806_v43 = vpop.f32.mrb[16].mxu1 }
 0x11c   : > { %v3768_v44 = vadd.f32 %v3767_v42, %v3766_v41  ;;  %v3769_v45 = vpop.f32.mrb[18].mxu0  ;;  %v3807_v46 = vpop.f32.mrb[17].mxu1 }
 0x11d   : > { %v3770_v47 = vpop.f32.mrb[19].mxu0  ;;  %v3808_v50 = vadd.f32 %v3807_v46, %v3806_v43  ;;  %v3809_v51 = vpop.f32.mrb[18].mxu1 }
 0x11e   : > { %v2535_v49 = vadd.f32 %v3768_v44, %v2470_v59  ;;  %v3771_v52 = vadd.f32 %v3770_v47, %v3769_v45  ;;  %v3810_v53 = vpop.f32.mrb[19].mxu1 }
 0x11f   : > { %v3811_v56 = vadd.f32 %v3810_v53, %v3809_v51 }
 0x120   : > { %v2600_v54 = vadd.f32 %v3808_v50, %v2535_v49  ;;  %v2538_v55 = vadd.f32 %v3771_v52, %v5270_v60 }
 0x122   : > { %v5299_v57 = vadd.f32 %v3811_v56, %v2538_v55  ;;  %v3772_v48 = vpop.f32.mrb[20].mxu0 }
 0x123   : > { %v3812_v58 = vpop.f32.mrb[20].mxu1  ;;  %v3773_v61 = vpop.f32.mrb[21].mxu0 }
 0x124   : > { %v3774_v62 = vadd.f32 %v3773_v61, %v3772_v48  ;;  %v3813_v63 = vpop.f32.mrb[21].mxu1  ;;  %v3775_v0 = vpop.f32.mrb[22].mxu0 }
 0x125   : > { %v3814_v1 = vadd.f32 %v3813_v63, %v3812_v58  ;;  %v3815_v3 = vpop.f32.mrb[22].mxu1  ;;  %v3776_v4 = vpop.f32.mrb[23].mxu0 }
 0x126   : > { %v2543_v59 = vadd.f32 %v3774_v62, %v5274_v2  ;;  %v3777_v5 = vadd.f32 %v3776_v4, %v3775_v0  ;;  %v3816_v6 = vpop.f32.mrb[23].mxu1 }
 0x127   : > { %v3817_v7 = vadd.f32 %v3816_v6, %v3815_v3 }
 0x128   : > { %v2608_v8 = vadd.f32 %v3814_v1, %v2543_v59  ;;  %v2546_v60 = vadd.f32 %v3777_v5, %v5280_v12 }
 0x12a   : > { %v5303_v9 = vadd.f32 %v3817_v7, %v2546_v60  ;;  %v3778_v10 = vpop.f32.mrb[24].mxu0 }
 0x12b   : > { %v3818_v11 = vpop.f32.mrb[24].mxu1  ;;  %v3779_v13 = vpop.f32.mrb[25].mxu0 }
 0x12c   : > { %v3819_v14 = vpop.f32.mrb[25].mxu1  ;;  %v3780_v15 = vadd.f32 %v3779_v13, %v3778_v10  ;;  %v3781_v17 = vpop.f32.mrb[26].mxu0 }
 0x12d   : > { %v3820_v16 = vadd.f32 %v3819_v14, %v3818_v11  ;;  %v3821_v18 = vpop.f32.mrb[26].mxu1  ;;  %v3782_v19 = vpop.f32.mrb[27].mxu0 }
 0x12e   : > { %v3822_v21 = vpop.f32.mrb[27].mxu1  ;;  %v2551_v2 = vadd.f32 %v3780_v15, %v5284_v20  ;;  %v3783_v23 = vadd.f32 %v3782_v19, %v3781_v17 }
 0x12f   : > { %v3823_v24 = vadd.f32 %v3822_v21, %v3821_v18 }
 0x130   : > { %v2616_v25 = vadd.f32 %v3820_v16, %v2551_v2  ;;  %v2554_v26 = vadd.f32 %v3783_v23, %v5288_v22 }
 0x132   : > { %v5307_v12 = vadd.f32 %v3823_v24, %v2554_v26  ;;  %v3784_v27 = vpop.f32.mrb[28].mxu0 }
 0x133   : > { %v3824_v28 = vpop.f32.mrb[28].mxu1  ;;  %v3785_v29 = vpop.f32.mrb[29].mxu0 }
 0x134   : > { %v3786_v30 = vadd.f32 %v3785_v29, %v3784_v27  ;;  %v3825_v31 = vpop.f32.mrb[29].mxu1  ;;  %v3787_v32 = vpop.f32.mrb[30].mxu0 }
 0x135   : > { %v3826_v33 = vadd.f32 %v3825_v31, %v3824_v28  ;;  %v3827_v34 = vpop.f32.mrb[30].mxu1  ;;  %v3788_v35 = vpop.f32.mrb[31].mxu0 }
 0x136   : > { %v2559_v36 = vadd.f32 %v3786_v30, %v2494_v38  ;;  %v3789_v37 = vadd.f32 %v3788_v35, %v3787_v32  ;;  %v3828_v39 = vpop.f32.mrb[31].mxu1 }
 0x137   : > { %v3829_v20 = vadd.f32 %v3828_v39, %v3827_v34 }
 0x138   : > { %v2624_v41 = vadd.f32 %v3826_v33, %v2559_v36  ;;  %v2562_v42 = vadd.f32 %v3789_v37, %v5296_v40 }
 0x13a   : > { %v5310_v43 = vadd.f32 %v3829_v20, %v2562_v42  ;;  %v3846_v22 = vpop.f32.mrb[32].mxu0 }
 0x13b   : > { %v3886_v44 = vpop.f32.mrb[32].mxu1  ;;  %v3847_v45 = vpop.f32.mrb[33].mxu0 }
 0x13c   : > { %v3848_v46 = vadd.f32 %v3847_v45, %v3846_v22  ;;  %v3887_v47 = vpop.f32.mrb[33].mxu1  ;;  %v3849_v49 = vpop.f32.mrb[34].mxu0 }
 0x13d   : > { %v3888_v50 = vadd.f32 %v3887_v47, %v3886_v44  ;;  %v3889_v51 = vpop.f32.mrb[34].mxu1  ;;  %v3850_v52 = vpop.f32.mrb[35].mxu0 }
 0x13e   : > { %v2665_v53 = vadd.f32 %v3848_v46, %v2600_v54  ;;  %v3851_v55 = vadd.f32 %v3850_v52, %v3849_v49  ;;  %v3890_v38 = vpop.f32.mrb[35].mxu1 }
 0x13f   : > { %v3891_v56 = vadd.f32 %v3890_v38, %v3889_v51 }
 0x140   : > { %v2730_v48 = vadd.f32 %v3888_v50, %v2665_v53  ;;  %v2668_v58 = vadd.f32 %v3851_v55, %v5299_v57 }
 0x142   : > { %v5313_v61 = vadd.f32 %v3891_v56, %v2668_v58  ;;  %v3852_v40 = vpop.f32.mrb[36].mxu0 }
 0x143   : > { %v3892_v62 = vpop.f32.mrb[36].mxu1  ;;  %v3853_v63 = vpop.f32.mrb[37].mxu0 }
 0x144   : > { %v3893_v0 = vpop.f32.mrb[37].mxu1  ;;  %v3854_v1 = vadd.f32 %v3853_v63, %v3852_v40  ;;  %v3855_v4 = vpop.f32.mrb[38].mxu0 }
 0x145   : > { %v3894_v3 = vadd.f32 %v3893_v0, %v3892_v62  ;;  %v3895_v59 = vpop.f32.mrb[38].mxu1  ;;  %v3856_v5 = vpop.f32.mrb[39].mxu0 }
 0x146   : > { %v3896_v6 = vpop.f32.mrb[39].mxu1  ;;  %v2673_v7 = vadd.f32 %v3854_v1, %v2608_v8  ;;  %v3857_v54 = vadd.f32 %v3856_v5, %v3855_v4 }
 0x147   : > { %v3897_v60 = vadd.f32 %v3896_v6, %v3895_v59 }
 0x148   : > { %v2738_v10 = vadd.f32 %v3894_v3, %v2673_v7  ;;  %v2676_v11 = vadd.f32 %v3857_v54, %v5303_v9 }
 0x14a   : > { %v5316_v13 = vadd.f32 %v3897_v60, %v2676_v11  ;;  %v3858_v57 = vpop.f32.mrb[40].mxu0 }
 0x14b   : > { %v3898_v14 = vpop.f32.mrb[40].mxu1  ;;  %v3859_v15 = vpop.f32.mrb[41].mxu0 }
 0x14c   : > { %v3860_v16 = vadd.f32 %v3859_v15, %v3858_v57  ;;  %v3899_v17 = vpop.f32.mrb[41].mxu1  ;;  %v3861_v18 = vpop.f32.mrb[42].mxu0 }
 0x14d   : > { %v3900_v19 = vadd.f32 %v3899_v17, %v3898_v14  ;;  %v3901_v21 = vpop.f32.mrb[42].mxu1  ;;  %v3862_v2 = vpop.f32.mrb[43].mxu0 }
 0x14e   : > { %v2681_v23 = vadd.f32 %v3860_v16, %v2616_v25  ;;  %v3863_v24 = vadd.f32 %v3862_v2, %v3861_v18  ;;  %v3902_v26 = vpop.f32.mrb[43].mxu1 }
 0x14f   : > { %v3903_v8 = vadd.f32 %v3902_v26, %v3901_v21 }
 0x150   : > { %v2746_v27 = vadd.f32 %v3900_v19, %v2681_v23  ;;  %v2684_v28 = vadd.f32 %v3863_v24, %v5307_v12 }
 0x152   : > { %v5319_v29 = vadd.f32 %v3903_v8, %v2684_v28  ;;  %v3864_v9 = vpop.f32.mrb[44].mxu0 }
 0x153   : > { %v3904_v30 = vpop.f32.mrb[44].mxu1  ;;  %v3865_v31 = vpop.f32.mrb[45].mxu0 }
 0x154   : > { %v3866_v32 = vadd.f32 %v3865_v31, %v3864_v9  ;;  %v3905_v33 = vpop.f32.mrb[45].mxu1  ;;  %v3867_v34 = vpop.f32.mrb[46].mxu0 }
 0x155   : > { %v3906_v35 = vadd.f32 %v3905_v33, %v3904_v30  ;;  %v3907_v36 = vpop.f32.mrb[46].mxu1  ;;  %v3868_v37 = vpop.f32.mrb[47].mxu0 }
 0x156   : > { %v2689_v39 = vadd.f32 %v3866_v32, %v2624_v41  ;;  %v3869_v20 = vadd.f32 %v3868_v37, %v3867_v34  ;;  %v3908_v25 = vpop.f32.mrb[47].mxu1 }
 0x157   : > { %v3909_v42 = vadd.f32 %v3908_v25, %v3907_v36 }
 0x158   : > { %v2754_v22 = vadd.f32 %v3906_v35, %v2689_v39  ;;  %v2692_v44 = vadd.f32 %v3869_v20, %v5310_v43 }
 0x15a   : > { %v5322_v45 = vadd.f32 %v3909_v42, %v2692_v44  ;;  %v3926_v12 = vpop.f32.mrb[48].mxu0 }
 0x15b   : > { %v3966_v46 = vpop.f32.mrb[48].mxu1  ;;  %v3927_v47 = vpop.f32.mrb[49].mxu0 }
 0x15c   : > { %v3928_v49 = vadd.f32 %v3927_v47, %v3926_v12  ;;  %v3967_v50 = vpop.f32.mrb[49].mxu1  ;;  %v3929_v51 = vpop.f32.mrb[50].mxu0 }
 0x15d   : > { %v3968_v52 = vadd.f32 %v3967_v50, %v3966_v46  ;;  %v3969_v53 = vpop.f32.mrb[50].mxu1  ;;  %v3930_v55 = vpop.f32.mrb[51].mxu0 }
 0x15e   : > { %v2795_v38 = vadd.f32 %v3928_v49, %v2730_v48  ;;  %v3931_v56 = vadd.f32 %v3930_v55, %v3929_v51  ;;  %v3970_v41 = vpop.f32.mrb[51].mxu1 }
 0x15f   : > { %v3971_v58 = vadd.f32 %v3970_v41, %v3969_v53 }
 0x160   : > { %v2860_v40 = vadd.f32 %v3968_v52, %v2795_v38  ;;  %v2798_v62 = vadd.f32 %v3931_v56, %v5313_v61 }
 0x162   : > { %v2863_v63 = vadd.f32 %v3971_v58, %v2798_v62  ;;  %v3932_v43 = vpop.f32.mrb[52].mxu0 }
 0x163   : > { %v3972_v0 = vpop.f32.mrb[52].mxu1  ;;  %v3933_v1 = vpop.f32.mrb[53].mxu0 }
 0x164   : > { %v3934_v3 = vadd.f32 %v3933_v1, %v3932_v43  ;;  %v3973_v4 = vpop.f32.mrb[53].mxu1  ;;  %v3935_v59 = vpop.f32.mrb[54].mxu0 }
 0x165   : > { %v3974_v5 = vadd.f32 %v3973_v4, %v3972_v0  ;;  %v3975_v6 = vpop.f32.mrb[54].mxu1  ;;  %v3936_v7 = vpop.f32.mrb[55].mxu0 }
 0x166   : > { %v2803_v54 = vadd.f32 %v3934_v3, %v2738_v10  ;;  %v3937_v60 = vadd.f32 %v3936_v7, %v3935_v59  ;;  %v3976_v11 = vpop.f32.mrb[55].mxu1 }
 0x167   : > { %v3977_v48 = vadd.f32 %v3976_v11, %v3975_v6 }
 0x168   : > { %v2868_v57 = vadd.f32 %v3974_v5, %v2803_v54  ;;  %v2806_v14 = vadd.f32 %v3937_v60, %v5316_v13 }
 0x16a   : > { %v5326_v15 = vadd.f32 %v3977_v48, %v2806_v14  ;;  %v3938_v61 = vpop.f32.mrb[56].mxu0 }
 0x16b   : > { %v3978_v16 = vpop.f32.mrb[56].mxu1  ;;  %v3939_v17 = vpop.f32.mrb[57].mxu0 }
 0x16c   : > { %v3940_v18 = vadd.f32 %v3939_v17, %v3938_v61  ;;  %v3979_v19 = vpop.f32.mrb[57].mxu1  ;;  %v3941_v21 = vpop.f32.mrb[58].mxu0 }
 0x16d   : > { %v3980_v2 = vadd.f32 %v3979_v19, %v3978_v16  ;;  %v3981_v23 = vpop.f32.mrb[58].mxu1  ;;  %v3942_v24 = vpop.f32.mrb[59].mxu0 }
 0x16e   : > { %v2811_v26 = vadd.f32 %v3940_v18, %v2746_v27  ;;  %v3943_v8 = vadd.f32 %v3942_v24, %v3941_v21  ;;  %v3982_v10 = vpop.f32.mrb[59].mxu1 }
 0x16f   : > { %v3983_v28 = vadd.f32 %v3982_v10, %v3981_v23 }
 0x170   : > { %v2876_v9 = vadd.f32 %v3980_v2, %v2811_v26  ;;  %v2814_v30 = vadd.f32 %v3943_v8, %v5319_v29 }
 0x172   : > { %v5329_v31 = vadd.f32 %v3983_v28, %v2814_v30  ;;  %v3944_v13 = vpop.f32.mrb[60].mxu0 }
 0x173   : > { %v3984_v32 = vpop.f32.mrb[60].mxu1  ;;  %v3945_v33 = vpop.f32.mrb[61].mxu0 }
 0x174   : > { %v3985_v34 = vpop.f32.mrb[61].mxu1  ;;  %v3946_v35 = vadd.f32 %v3945_v33, %v3944_v13  ;;  %v3947_v37 = vpop.f32.mrb[62].mxu0 }
 0x175   : > { %v3986_v36 = vadd.f32 %v3985_v34, %v3984_v32  ;;  %v3987_v39 = vpop.f32.mrb[62].mxu1  ;;  %v3948_v20 = vpop.f32.mrb[63].mxu0 }
 0x176   : > { %v3988_v25 = vpop.f32.mrb[63].mxu1  ;;  %v2819_v42 = vadd.f32 %v3946_v35, %v2754_v22  ;;  %v3949_v27 = vadd.f32 %v3948_v20, %v3947_v37 }
 0x177   : > { %v3989_v44 = vadd.f32 %v3988_v25, %v3987_v39 }
 0x178   : > { %v2884_v12 = vadd.f32 %v3986_v36, %v2819_v42  ;;  %v2822_v46 = vadd.f32 %v3949_v27, %v5322_v45 }
 0x17a   : > { %v5332_v47 = vadd.f32 %v3989_v44, %v2822_v46  ;;  %v4006_v29 = vpop.f32.mrb[64].mxu0 }
 0x17b   : > { %v4007_v49 = vpop.f32.mrb[65].mxu0  ;;  %v4046_v50 = vpop.f32.mrb[64].mxu1 }
 0x17c   : > { %v4008_v51 = vadd.f32 %v4007_v49, %v4006_v29  ;;  %v4009_v52 = vpop.f32.mrb[66].mxu0  ;;  %v4047_v53 = vpop.f32.mrb[65].mxu1 }
 0x17d   : > { %v4010_v55 = vpop.f32.mrb[67].mxu0  ;;  %v4048_v56 = vadd.f32 %v4047_v53, %v4046_v50  ;;  %v4049_v41 = vpop.f32.mrb[66].mxu1 }
 0x17e   : > { %v2925_v38 = vadd.f32 %v4008_v51, %v2860_v40  ;;  %v4011_v58 = vadd.f32 %v4010_v55, %v4009_v52  ;;  %v4050_v62 = vpop.f32.mrb[67].mxu1 }
 0x17f   : > { %v4051_v0 = vadd.f32 %v4050_v62, %v4049_v41 }
 0x180   : > { %v2990_v22 = vadd.f32 %v4048_v56, %v2925_v38  ;;  %v2928_v43 = vadd.f32 %v4011_v58, %v2863_v63 }
 0x182   : > { %v2993_v1 = vadd.f32 %v4051_v0, %v2928_v43  ;;  %v4012_v3 = vpop.f32.mrb[68].mxu0 }
 0x183   : > { %v4052_v45 = vpop.f32.mrb[68].mxu1  ;;  %v4013_v4 = vpop.f32.mrb[69].mxu0 }
 0x184   : > { %v4014_v59 = vadd.f32 %v4013_v4, %v4012_v3  ;;  %v4053_v5 = vpop.f32.mrb[69].mxu1  ;;  %v4015_v6 = vpop.f32.mrb[70].mxu0 }
 0x185   : > { %v4054_v7 = vadd.f32 %v4053_v5, %v4052_v45  ;;  %v4055_v54 = vpop.f32.mrb[70].mxu1  ;;  %v4016_v60 = vpop.f32.mrb[71].mxu0 }
 0x186   : > { %v2933_v11 = vadd.f32 %v4014_v59, %v2868_v57  ;;  %v4017_v48 = vadd.f32 %v4016_v60, %v4015_v6  ;;  %v4056_v40 = vpop.f32.mrb[71].mxu1 }
 0x187   : > { %v4057_v14 = vadd.f32 %v4056_v40, %v4055_v54 }
 0x188   : > { %v2998_v61 = vadd.f32 %v4054_v7, %v2933_v11  ;;  %v2936_v16 = vadd.f32 %v4017_v48, %v5326_v15 }
 0x18a   : > { %v3001_v17 = vadd.f32 %v4057_v14, %v2936_v16  ;;  %v4018_v63 = vpop.f32.mrb[72].mxu0 }
 0x18b   : > { %v4058_v18 = vpop.f32.mrb[72].mxu1  ;;  %v4019_v19 = vpop.f32.mrb[73].mxu0 }
 0x18c   : > { %v4059_v21 = vpop.f32.mrb[73].mxu1  ;;  %v4020_v2 = vadd.f32 %v4019_v19, %v4018_v63  ;;  %v4021_v24 = vpop.f32.mrb[74].mxu0 }
 0x18d   : > { %v4060_v23 = vadd.f32 %v4059_v21, %v4058_v18  ;;  %v4061_v26 = vpop.f32.mrb[74].mxu1  ;;  %v4022_v8 = vpop.f32.mrb[75].mxu0 }
 0x18e   : > { %v4062_v10 = vpop.f32.mrb[75].mxu1  ;;  %v2941_v28 = vadd.f32 %v4020_v2, %v2876_v9  ;;  %v4023_v30 = vadd.f32 %v4022_v8, %v4021_v24 }
 0x18f   : > { %v4063_v57 = vadd.f32 %v4062_v10, %v4061_v26 }
 0x190   : > { %v3006_v13 = vadd.f32 %v4060_v23, %v2941_v28  ;;  %v2944_v32 = vadd.f32 %v4023_v30, %v5329_v31 }
 0x192   : > { %v3009_v33 = vadd.f32 %v4063_v57, %v2944_v32  ;;  %v4024_v34 = vpop.f32.mrb[76].mxu0 }
 0x193   : > { %v4064_v15 = vpop.f32.mrb[76].mxu1  ;;  %v4025_v35 = vpop.f32.mrb[77].mxu0 }
 0x194   : > { %v4026_v36 = vadd.f32 %v4025_v35, %v4024_v34  ;;  %v4065_v37 = vpop.f32.mrb[77].mxu1  ;;  %v4027_v39 = vpop.f32.mrb[78].mxu0 }
 0x195   : > { %v4066_v20 = vadd.f32 %v4065_v37, %v4064_v15  ;;  %v4067_v25 = vpop.f32.mrb[78].mxu1  ;;  %v4028_v42 = vpop.f32.mrb[79].mxu0 }
 0x196   : > { %v2949_v27 = vadd.f32 %v4026_v36, %v2884_v12  ;;  %v4029_v44 = vadd.f32 %v4028_v42, %v4027_v39  ;;  %v4068_v46 = vpop.f32.mrb[79].mxu1 }
 0x197   : > { %v4069_v29 = vadd.f32 %v4068_v46, %v4067_v25 }
 0x198   : > { %v3014_v9 = vadd.f32 %v4066_v20, %v2949_v27  ;;  %v2952_v49 = vadd.f32 %v4029_v44, %v5332_v47 }
 0x19a   : > { %v3017_v50 = vadd.f32 %v4069_v29, %v2952_v49  ;;  %v4086_v51 = vpop.f32.mrb[80].mxu0 }
 0x19b   : > { %v4126_v31 = vpop.f32.mrb[80].mxu1  ;;  %v4087_v52 = vpop.f32.mrb[81].mxu0 }
 0x19c   : > { %v4088_v53 = vadd.f32 %v4087_v52, %v4086_v51  ;;  %v4127_v55 = vpop.f32.mrb[81].mxu1  ;;  %v4089_v38 = vpop.f32.mrb[82].mxu0 }
 0x19d   : > { %v4128_v56 = vadd.f32 %v4127_v55, %v4126_v31  ;;  %v4129_v41 = vpop.f32.mrb[82].mxu1  ;;  %v4090_v58 = vpop.f32.mrb[83].mxu0 }
 0x19e   : > { %v3055_v62 = vadd.f32 %v4088_v53, %v2990_v22  ;;  %v4091_v43 = vadd.f32 %v4090_v58, %v4089_v38  ;;  %v4130_v0 = vpop.f32.mrb[83].mxu1 }
 0x19f   : > { %v4131_v12 = vadd.f32 %v4130_v0, %v4129_v41 }
 0x1a0   : > { %v3058_v3 = vadd.f32 %v4091_v43, %v2993_v1  ;;  %v3120_v45 = vadd.f32 %v4128_v56, %v3055_v62 }
 0x1a2   : > { %v4092_v4 = vpop.f32.mrb[84].mxu0  ;;  %v3123_v59 = vadd.f32 %v4131_v12, %v3058_v3 }
 0x1a3   : > { %v4132_v5 = vpop.f32.mrb[84].mxu1  ;;  %v4093_v47 = vpop.f32.mrb[85].mxu0 }
 0x1a4   : > { %v4094_v6 = vadd.f32 %v4093_v47, %v4092_v4  ;;  %v4133_v7 = vpop.f32.mrb[85].mxu1  ;;  %v4095_v54 = vpop.f32.mrb[86].mxu0 }
 0x1a5   : > { %v4134_v60 = vadd.f32 %v4133_v7, %v4132_v5  ;;  %v4135_v11 = vpop.f32.mrb[86].mxu1  ;;  %v4096_v48 = vpop.f32.mrb[87].mxu0 }
 0x1a6   : > { %v3063_v40 = vadd.f32 %v4094_v6, %v2998_v61  ;;  %v4097_v14 = vadd.f32 %v4096_v48, %v4095_v54  ;;  %v4136_v16 = vpop.f32.mrb[87].mxu1 }
 0x1a7   : > { %v4137_v63 = vadd.f32 %v4136_v16, %v4135_v11 }
 0x1a8   : > { %v3066_v22 = vadd.f32 %v4097_v14, %v3001_v17  ;;  %v3128_v18 = vadd.f32 %v4134_v60, %v3063_v40 }
 0x1aa   : > { %v4098_v19 = vpop.f32.mrb[88].mxu0  ;;  %v3131_v21 = vadd.f32 %v4137_v63, %v3066_v22 }
 0x1ab   : > { %v4138_v1 = vpop.f32.mrb[88].mxu1  ;;  %v4099_v2 = vpop.f32.mrb[89].mxu0 }
 0x1ac   : > { %v4100_v23 = vadd.f32 %v4099_v2, %v4098_v19  ;;  %v4139_v24 = vpop.f32.mrb[89].mxu1  ;;  %v4101_v26 = vpop.f32.mrb[90].mxu0 }
 0x1ad   : > { %v4140_v8 = vadd.f32 %v4139_v24, %v4138_v1  ;;  %v4141_v10 = vpop.f32.mrb[90].mxu1  ;;  %v4102_v28 = vpop.f32.mrb[91].mxu0 }
 0x1ae   : > { %v3071_v30 = vadd.f32 %v4100_v23, %v3006_v13  ;;  %v4103_v57 = vadd.f32 %v4102_v28, %v4101_v26  ;;  %v4142_v32 = vpop.f32.mrb[91].mxu1 }
 0x1af   : > { %v4143_v34 = vadd.f32 %v4142_v32, %v4141_v10 }
 0x1b0   : > { %v3074_v61 = vadd.f32 %v4103_v57, %v3009_v33  ;;  %v3136_v15 = vadd.f32 %v4140_v8, %v3071_v30 }
 0x1b2   : > { %v4104_v35 = vpop.f32.mrb[92].mxu0  ;;  %v3139_v36 = vadd.f32 %v4143_v34, %v3074_v61 }
 0x1b3   : > { %v4144_v17 = vpop.f32.mrb[92].mxu1  ;;  %v4105_v37 = vpop.f32.mrb[93].mxu0 }
 0x1b4   : > { %v4106_v39 = vadd.f32 %v4105_v37, %v4104_v35  ;;  %v4145_v20 = vpop.f32.mrb[93].mxu1  ;;  %v4107_v25 = vpop.f32.mrb[94].mxu0 }
 0x1b5   : > { %v4146_v42 = vadd.f32 %v4145_v20, %v4144_v17  ;;  %v4147_v27 = vpop.f32.mrb[94].mxu1  ;;  %v4108_v44 = vpop.f32.mrb[95].mxu0 }
 0x1b6   : > { %v3079_v46 = vadd.f32 %v4106_v39, %v3014_v9  ;;  %v4109_v29 = vadd.f32 %v4108_v44, %v4107_v25  ;;  %v4148_v49 = vpop.f32.mrb[95].mxu1 }
 0x1b7   : > { %v4149_v13 = vadd.f32 %v4148_v49, %v4147_v27 }
 0x1b8   : > { %v3082_v51 = vadd.f32 %v4109_v29, %v3017_v50  ;;  %v3144_v31 = vadd.f32 %v4146_v42, %v3079_v46 }
 0x1ba   : > { %v4168_v52 = vpop.f32.mrb[96].mxu0  ;;  %v3147_v33 = vadd.f32 %v4149_v13, %v3082_v51 }
 0x1bb   : > { %v3193_v53 = vadd.f32 %v4168_v52, %v3128_v18  ;;  %v3184_v38 = vpop.f32.mrb[97].mxu0 }
 0x1bc   : > { %v3185_v41 = vadd.f32 %v3184_v38, %v3120_v45  ;;  %v4169_v62 = vpop.f32.mrb[98].mxu0 }
 0x1bd   : > { %v3196_v0 = vadd.f32 %v4169_v62, %v3131_v21  ;;  %v3187_v9 = vpop.f32.mrb[99].mxu0  ;;  %v3217_v47 = vmax.f32 %v3193_v53, 0.0 }
 0x1be   : > { %v3188_v4 = vadd.f32 %v3187_v9, %v3123_v59  ;;  %v3215_v54 = vmax.f32 %v3185_v41, 0.0 }
 0x1bf   : > { %v3218_v50 = vmax.f32 %v3196_v0, 0.0 }
 0x1c0   : > { %v3216_v60 = vmax.f32 %v3188_v4, 0.0 }
 0x1c1   : > { %v3655_v48 = vpack.c.bf16 %v3218_v50, %v3217_v47 }
 0x1c2   : > { %v3650_v16 = vpack.c.bf16 %v3216_v60, %v3215_v54 }
 0x1c3   : > { %3667 = vst [vmem:[%s175_s28 + $0x8] sm:$0xff] %v3655_v48  }
 0x1c4   : > { %3651 = vst [vmem:[%s175_s28] sm:$0xff] %v3650_v16  }
 0x1d0   : > { %v4172_v55 = vpop.f32.mrb[96].mxu1 }
 0x1d1   : > { %v3209_v56 = vadd.f32 %v4172_v55, %v3144_v31  ;;  %v3200_v58 = vpop.f32.mrb[97].mxu1 }
 0x1d2   : > { %v3201_v43 = vadd.f32 %v3200_v58, %v3136_v15  ;;  %v4173_v12 = vpop.f32.mrb[98].mxu1 }
 0x1d3   : > { %v3212_v3 = vadd.f32 %v4173_v12, %v3147_v33  ;;  %v3203_v5 = vpop.f32.mrb[99].mxu1  ;;  %v3221_v7 = vmax.f32 %v3209_v56, 0.0 }
 0x1d4   : > { %v3204_v6 = vadd.f32 %v3203_v5, %v3139_v36  ;;  %v3219_v11 = vmax.f32 %v3201_v43, 0.0 }
 0x1d5   : > { %v3222_v45 = vmax.f32 %v3212_v3, 0.0 }
 0x1d6   : > { %v3220_v40 = vmax.f32 %v3204_v6, 0.0 }
 0x1d7   : > { %v3665_v14 = vpack.c.bf16 %v3222_v45, %v3221_v7 }
 0x1d8   : > { %v3660_v63 = vpack.c.bf16 %v3220_v40, %v3219_v11 }
 0x1d9   : > { %3669 = vst [vmem:[%s175_s28 + $0x18] sm:$0xff] %v3665_v14  }
 0x1da   : > { %3668 = vst [vmem:[%s175_s28 + $0x10] sm:$0xff] %v3660_v63  }
 0x1db PF: > { %s13_s12 = sadd.s32 1, %s4541_s12  }
 0x1dc   : > { %p10_p4 = scmp.ge.s32.totalorder %s13_s12, 4  }
 0x1de   :  { %12 = sbr.rel (!%p10_p4) target bundleno = 1 (0x1), region = 62 }

// kernel: conv_forward.6
= control target key start
LH: loop header
LB: loop body
LE: loop exit
PB: predicated region body
PF: predicated region fallthrough
CT: control target
= control target key end

     0   :  { %s1946_s12 = smov 0   ;;  %s2226_s0 = inlined_call_operand.vmem [shape: bf16[128,1152], index: 0, kind: input, shape index: {}]   ;;  %s2227_s1 = inlined_call_operand.vmem [shape: bf16[1152,128], index: 1, kind: input, shape index: {}]   ;;  %s2228_s2 = inlined_call_operand.vmem [shape: f32[1,128], index: 2, kind: input, shape index: {}]   ;;  %s2229_s3 = inlined_call_operand.vmem [shape: bf16[128,128], index: 3, kind: output, shape index: {}]  }
   0x1 LB: > { %s1414_s13 = sadd.s32 4294967295, %s1924_s12   ;;  %p1418_p0 = scmp.ge.s32.totalorder %s1924_s12, 1  ;;  %s1924_s12 = sphi %s1946_s12, %s13_s12  }
   0x2   : > { %p139_p1 = scmp.lt.s32.totalorder %s1924_s12, 3 }
   0x4   : > { %p140_p2 = pnand %p1418_p0, %p139_p1 }
   0x5   : > { %v1794_v0 = vld [vmem:[%s2227_s1 + $0x40] sm:$0xff] (!%p140_p2)   ;;  %v1798_v4 = vld [vmem:[%s2227_s1 + $0x48] sm:$0xff] (!%p140_p2)   ;;  %v1802_v8 = vld [vmem:[%s2227_s1 + $0x50] sm:$0xff] (!%p140_p2)   ;;  %s1419_s19 = sshll.u32 (!%p140_p2), %s1414_s13, 3 }
   0x6   : > { %143 = sbr.rel (%p140_p2) target bundleno = 327 (0x147), region = 32  ;;  %v1795_v1 = vld [vmem:[%s2227_s1 + $0xc0] sm:$0xff] (!%p140_p2)   ;;  %1573 = vmatprep.subr.bf16.mxu0 (!%p140_p2), %v1794_v0  ;;  %v1799_v5 = vld [vmem:[%s2227_s1 + $0xc8] sm:$0xff] (!%p140_p2)   ;;  %v1803_v9 = vld [vmem:[%s2227_s1 + $0xd0] sm:$0xff] (!%p140_p2)   ;;  %p165_p3 = scmp.lt.s32.totalorder (!%p140_p2), %s1419_s19, 15 }
   0x7   : > { %v1796_v2 = vld [vmem:[%s2227_s1] sm:$0xff] (!%p140_p2)   ;;  %1613 = vmatprep.subr.bf16.mxu1 (!%p140_p2), %v1795_v1  ;;  %v1800_v6 = vld [vmem:[%s2227_s1 + $0x8] sm:$0xff] (!%p140_p2)   ;;  %v1804_v10 = vld [vmem:[%s2227_s1 + $0x10] sm:$0xff] (!%p140_p2)  }
   0x8   : > { %v1797_v3 = vld [vmem:[%s2227_s1 + $0x80] sm:$0xff] (!%p140_p2)   ;;  %1574 = vmatpush3.bf16.msra.mxu0 (!%p140_p2), %v1796_v2  ;;  %v1801_v7 = vld [vmem:[%s2227_s1 + $0x88] sm:$0xff] (!%p140_p2)   ;;  %v1805_v11 = vld [vmem:[%s2227_s1 + $0x90] sm:$0xff] (!%p140_p2)  }
   0x9   : > { %1614 = vmatpush3.bf16.msra.mxu1 (!%p140_p2), %v1797_v3  ;;  %1575 = vmatprep.subr.bf16.mxu0 (!%p140_p2), %v1798_v4  ;;  %v1806_v12 = vld [vmem:[%s2227_s1 + $0x58] sm:$0xff] (!%p140_p2)   ;;  %v1810_v16 = vld [vmem:[%s2227_s1 + $0x60] sm:$0xff] (!%p140_p2)   ;;  %v1814_v20 = vld [vmem:[%s2227_s1 + $0x68] sm:$0xff] (!%p140_p2)  }
   0xa   : > { %1615 = vmatprep.subr.bf16.mxu1 (!%p140_p2), %v1799_v5  ;;  %v1807_v13 = vld [vmem:[%s2227_s1 + $0xd8] sm:$0xff] (!%p140_p2)   ;;  %v1811_v17 = vld [vmem:[%s2227_s1 + $0xe0] sm:$0xff] (!%p140_p2)   ;;  %v1815_v21 = vld [vmem:[%s2227_s1 + $0xe8] sm:$0xff] (!%p140_p2)  }
   0xb   : > { %v1808_v14 = vld [vmem:[%s2227_s1 + $0x18] sm:$0xff] (!%p140_p2)   ;;  %v1812_v18 = vld [vmem:[%s2227_s1 + $0x20] sm:$0xff] (!%p140_p2)   ;;  %v1816_v22 = vld [vmem:[%s2227_s1 + $0x28] sm:$0xff] (!%p140_p2)  }
   0xc   : > { %1576 = vmatpush3.bf16.msra.mxu0 (!%p140_p2), %v1800_v6  ;;  %v1809_v15 = vld [vmem:[%s2227_s1 + $0x98] sm:$0xff] (!%p140_p2)   ;;  %v1813_v19 = vld [vmem:[%s2227_s1 + $0xa0] sm:$0xff] (!%p140_p2)   ;;  %v1817_v23 = vld [vmem:[%s2227_s1 + $0xa8] sm:$0xff] (!%p140_p2)  }
   0xd   : > { %1616 = vmatpush3.bf16.msra.mxu1 %v1801_v7  ;;  %1577 = vmatprep.subr.bf16.mxu0 %v1802_v8  ;;  %s2231_s19 = smov (!%p165_p3, %s1419_s19), 15  ;;  %v1818_v24 = vld [vmem:[%s2227_s1 + $0x70] sm:$0xff]   ;;  %v1822_v28 = vld [vmem:[%s2227_s1 + $0x78] sm:$0xff]   ;;  %v1832_v36 = vld [vmem:[%s2227_s1 + $0x140] sm:$0xff]  }
   0xe   : > { %1617 = vmatprep.subr.bf16.mxu1 %v1803_v9  ;;  %v1819_v25 = vld [vmem:[%s2227_s1 + $0xf0] sm:$0xff]   ;;  %s1785_s16 = smul.u32 36, %s2231_s19  ;;  %v1823_v29 = vld [vmem:[%s2227_s1 + $0xf8] sm:$0xff]   ;;  %v1833_v37 = vld [vmem:[%s2227_s1 + $0x1c0] sm:$0xff]  }
   0xf   : > { %v1820_v26 = vld [vmem:[%s2227_s1 + $0x30] sm:$0xff]   ;;  %v1824_v30 = vld [vmem:[%s2227_s1 + $0x38] sm:$0xff]   ;;  %v1834_v38 = vld [vmem:[%s2227_s1 + $0x100] sm:$0xff]  }
  0x10   : > { %1578 = vmatpush3.bf16.msra.mxu0 %v1804_v10  ;;  %v1821_v27 = vld [vmem:[%s2227_s1 + $0xb0] sm:$0xff]   ;;  %s2052_s13 = scalar_lea.vmem %s2226_s0, %s1785_s16  ;;  %v1825_v31 = vld [vmem:[%s2227_s1 + $0xb8] sm:$0xff]   ;;  %v1835_v39 = vld [vmem:[%s2227_s1 + $0x180] sm:$0xff]  }
  0x11   : > { %1618 = vmatpush3.bf16.msra.mxu1 %v1805_v11  ;;  %1579 = vmatprep.subr.bf16.mxu0 %v1806_v12  ;;  %v1826_v32 = vld [vmem:[%s2052_s13] ss:$36 sps:$4 sm:$0xff]   ;;  %v1829_v34 = vld [vmem:[%s2052_s13 + $0x8] ss:$36 sps:$4 sm:$0xff]   ;;  %v1842_v45 = vld [vmem:[%s2052_s13 + $0x54] ss:$36 sps:$4 sm:$0xff]  }
  0x12   : > { %1619 = vmatprep.subr.bf16.mxu1 %v1807_v13  ;;  %v1828_v33 = vld [vmem:[%s2052_s13 + $0x4] ss:$36 sps:$4 sm:$0xff]   ;;  %v1831_v35 = vld [vmem:[%s2052_s13 + $0xc] ss:$36 sps:$4 sm:$0xff]   ;;  %v1850_v52 = vld [vmem:[%s2227_s1 + $0x158] sm:$0xff]  }
  0x13   : > { %1017 = vmatprep.mubr.bf16.mxu0 %v1828_v33  ;;  %1082 = vmatprep.mubr.bf16.mxu1 %v1831_v35  ;;  %v1836_v40 = vld [vmem:[%s2227_s1 + $0x148] sm:$0xff]   ;;  %v1845_v47 = vld [vmem:[%s2052_s13 + $0x50] ss:$36 sps:$4 sm:$0xff]   ;;  %v1851_v53 = vld [vmem:[%s2227_s1 + $0x1d8] sm:$0xff]  }
  0x14   : > { %1580 = vmatpush3.bf16.msra.mxu0 %v1808_v14  ;;  %v1837_v41 = vld [vmem:[%s2227_s1 + $0x1c8] sm:$0xff]   ;;  %v1846_v48 = vld [vmem:[%s2227_s1 + $0x150] sm:$0xff]   ;;  %v1852_v54 = vld [vmem:[%s2227_s1 + $0x118] sm:$0xff]  }
  0x15   : > { %1620 = vmatpush3.bf16.msra.mxu1 %v1809_v15  ;;  %1581 = vmatprep.subr.bf16.mxu0 %v1810_v16  ;;  %v1838_v42 = vld [vmem:[%s2227_s1 + $0x108] sm:$0xff]   ;;  %v1847_v49 = vld [vmem:[%s2227_s1 + $0x1d0] sm:$0xff]   ;;  %v1853_v55 = vld [vmem:[%s2227_s1 + $0x198] sm:$0xff]  }
  0x16   : > { %1621 = vmatprep.subr.bf16.mxu1 %v1811_v17  ;;  %v1839_v43 = vld [vmem:[%s2227_s1 + $0x188] sm:$0xff]   ;;  %v1848_v50 = vld [vmem:[%s2227_s1 + $0x110] sm:$0xff]   ;;  %v1856_v57 = vld [vmem:[%s2052_s13 + $0x9c] ss:$36 sps:$4 sm:$0xff]  }
  0x17   : > { %v1840_v44 = vld [vmem:[%s2052_s13 + $0x4c] ss:$36 sps:$4 sm:$0xff]   ;;  %v1854_v56 = vld [vmem:[%s2052_s13 + $0x94] ss:$36 sps:$4 sm:$0xff]   ;;  %v1860_v60 = vld [vmem:[%s2227_s1 + $0x160] sm:$0xff]  }
  0x18   : > { %1582 = vmatpush3.bf16.msra.mxu0 %v1812_v18  ;;  %v1844_v46 = vld [vmem:[%s2052_s13 + $0x48] ss:$36 sps:$4 sm:$0xff]   ;;  %v1849_v51 = vld [vmem:[%s2227_s1 + $0x190] sm:$0xff]   ;;  %v1859_v59 = vld [vmem:[%s2052_s13 + $0x98] ss:$36 sps:$4 sm:$0xff]  }
  0x19   : > { %1622 = vmatpush3.bf16.msra.mxu1 %v1813_v19  ;;  %1583 = vmatprep.subr.bf16.mxu0 %v1814_v20  ;;  %v1858_v58 = vld [vmem:[%s2052_s13 + $0x90] ss:$36 sps:$4 sm:$0xff]   ;;  %v1861_v61 = vld [vmem:[%s2227_s1 + $0x1e0] sm:$0xff]   ;;  %v1864_v0 = vld [vmem:[%s2227_s1 + $0x168] sm:$0xff]  }
  0x1a   : > { %1623 = vmatprep.subr.bf16.mxu1 %v1815_v21  ;;  %v1862_v62 = vld [vmem:[%s2227_s1 + $0x120] sm:$0xff]   ;;  %v1865_v1 = vld [vmem:[%s2227_s1 + $0x1e8] sm:$0xff]   ;;  %v1872_v6 = vld [vmem:[%s2052_s13 + $0xd8] ss:$36 sps:$4 sm:$0xff]  }
  0x1b   : > { %v1863_v63 = vld [vmem:[%s2227_s1 + $0x1a0] sm:$0xff]   ;;  %v1866_v2 = vld [vmem:[%s2227_s1 + $0x128] sm:$0xff]   ;;  %v1874_v8 = vld [vmem:[%s2227_s1 + $0x170] sm:$0xff]  }
  0x1c   : > { %1584 = vmatpush3.bf16.msra.mxu0 %v1816_v22  ;;  %v1867_v3 = vld [vmem:[%s2227_s1 + $0x1a8] sm:$0xff]   ;;  %v1868_v4 = vld [vmem:[%s2052_s13 + $0xdc] ss:$36 sps:$4 sm:$0xff]   ;;  %v1875_v9 = vld [vmem:[%s2227_s1 + $0x1f0] sm:$0xff]  }
  0x1d   : > { %1624 = vmatpush3.bf16.msra.mxu1 %v1817_v23  ;;  %1585 = vmatprep.subr.bf16.mxu0 %v1818_v24  ;;  %v1870_v5 = vld [vmem:[%s2052_s13 + $0xe4] ss:$36 sps:$4 sm:$0xff]   ;;  %v1876_v10 = vld [vmem:[%s2227_s1 + $0x130] sm:$0xff]   ;;  %v1878_v12 = vld [vmem:[%s2227_s1 + $0x178] sm:$0xff]  }
  0x1e   : > { %1625 = vmatprep.subr.bf16.mxu1 %v1819_v25  ;;  %v1873_v7 = vld [vmem:[%s2052_s13 + $0xe0] ss:$36 sps:$4 sm:$0xff]   ;;  %v1877_v11 = vld [vmem:[%s2227_s1 + $0x1b0] sm:$0xff]   ;;  %v1879_v13 = vld [vmem:[%s2227_s1 + $0x1f8] sm:$0xff]  }
  0x1f   : > { %v1880_v14 = vld [vmem:[%s2227_s1 + $0x138] sm:$0xff]   ;;  %v1882_v16 = vld [vmem:[%s2052_s13 + $0x10] ss:$36 sps:$4 sm:$0xff]   ;;  %v1888_v20 = vld [vmem:[%s2227_s1 + $0x200] sm:$0xff]  }
  0x20   : > { %1586 = vmatpush3.bf16.msra.mxu0 %v1820_v26  ;;  %v1881_v15 = vld [vmem:[%s2227_s1 + $0x1b8] sm:$0xff]   ;;  %v1889_v21 = vld [vmem:[%s2227_s1 + $0x208] sm:$0xff]   ;;  %v1895_v25 = vld [vmem:[%s2052_s13 + $0x60] ss:$36 sps:$4 sm:$0xff]  }
  0x21   : > { %1626 = vmatpush3.bf16.msra.mxu1 %v1821_v27  ;;  %1587 = vmatprep.subr.bf16.mxu0 %v1822_v28  ;;  %v1884_v17 = vld [vmem:[%s2052_s13 + $0x14] ss:$36 sps:$4 sm:$0xff]   ;;  %v1887_v19 = vld [vmem:[%s2052_s13 + $0x1c] ss:$36 sps:$4 sm:$0xff]   ;;  %v1892_v23 = vld [vmem:[%s2052_s13 + $0x64] ss:$36 sps:$4 sm:$0xff]  }
  0x22   : > { %1627 = vmatprep.subr.bf16.mxu1 %v1823_v29  ;;  %v1885_v18 = vld [vmem:[%s2052_s13 + $0x18] ss:$36 sps:$4 sm:$0xff]   ;;  %v1896_v26 = vld [vmem:[%s2227_s1 + $0x210] sm:$0xff]   ;;  %v1898_v27 = vld [vmem:[%s2052_s13 + $0xa4] ss:$36 sps:$4 sm:$0xff]  }
  0x23   : > { %v1890_v22 = vld [vmem:[%s2052_s13 + $0x5c] ss:$36 sps:$4 sm:$0xff]   ;;  %v1900_v28 = vld [vmem:[%s2052_s13 + $0xac] ss:$36 sps:$4 sm:$0xff]  }
  0x24   : > { %1588 = vmatpush3.bf16.msra.mxu0 %v1824_v30  ;;  %v1894_v24 = vld [vmem:[%s2052_s13 + $0x58] ss:$36 sps:$4 sm:$0xff]   ;;  %v1902_v30 = vld [vmem:[%s2052_s13 + $0xa0] ss:$36 sps:$4 sm:$0xff]   ;;  %v1906_v33 = vld [vmem:[%s2052_s13 + $0xec] ss:$36 sps:$4 sm:$0xff]  }
  0x25   : > { %1628 = vmatpush3.bf16.msra.mxu1 %v1825_v31  ;;  %1653 = vmatprep.subr.bf16.mxu0 %v1832_v36  ;;  %v1897_v29 = vld [vmem:[%s2227_s1 + $0x218] sm:$0xff]   ;;  %v1903_v31 = vld [vmem:[%s2052_s13 + $0xa8] ss:$36 sps:$4 sm:$0xff]  }
  0x26   : > { %1693 = vmatprep.subr.bf16.mxu1 %v1833_v37  ;;  %v1905_v35 = vld [vmem:[%s2227_s1 + $0x228] sm:$0xff]   ;;  %v1912_v37 = vld [vmem:[%s2227_s1 + $0x230] sm:$0xff]  }
  0x27   : > { %1018 = vmatmul.mubr.bf16.vlgmr.msra.gmra.mrb[0].mxu0 %v1826_v32  ;;  %v1904_v32 = vld [vmem:[%s2227_s1 + $0x220] sm:$0xff]   ;;  %v1910_v36 = vld [vmem:[%s2052_s13 + $0xe8] ss:$36 sps:$4 sm:$0xff]  }
  0x28   : > { %1083 = vmatmul.mubr.bf16.vlgmr.msra.gmra.mrb[0].mxu1 %v1829_v34  ;;  %1654 = vmatpush3.bf16.msra.mxu0 %v1834_v38  ;;  %v1908_v34 = vld [vmem:[%s2052_s13 + $0xf4] ss:$36 sps:$4 sm:$0xff]  }
  0x29   : > { %1694 = vmatpush3.bf16.msra.mxu1 %v1835_v39  ;;  %1655 = vmatprep.subr.bf16.mxu0 %v1836_v40  ;;  %v1911_v38 = vld [vmem:[%s2052_s13 + $0xf0] ss:$36 sps:$4 sm:$0xff]   ;;  %v1914_v39 = vld [vmem:[%s2052_s13 + $0x20] ss:$36 sps:$4 sm:$0xff]  }
  0x2a   : > { %1695 = vmatprep.subr.bf16.mxu1 %v1837_v41  ;;  %1025 = vmatprep.mubr.bf16.mxu0 %v1840_v44  ;;  %v1915_v40 = vld [vmem:[%s2052_s13 + $0xb0] ss:$36 sps:$4 sm:$0xff]   ;;  %v1913_v41 = vld [vmem:[%s2227_s1 + $0x238] sm:$0xff]  }
  0x2b   : > { %1090 = vmatprep.mubr.bf16.mxu1 %v1842_v45 }
  0x2c   : > { %1656 = vmatpush3.bf16.msra.mxu0 %v1838_v42  ;;  %v1916_v42 = vld [vmem:[%s2052_s13 + $0x68] ss:$36 sps:$4 sm:$0xff]  }
  0x2d   : > { %1696 = vmatpush3.bf16.msra.mxu1 %v1839_v43  ;;  %1657 = vmatprep.subr.bf16.mxu0 %v1846_v48  ;;  %v1917_v43 = vld [vmem:[%s2052_s13 + $0xf8] ss:$36 sps:$4 sm:$0xff]   ;;  %s1422_s13 = sshll.u32 %s2231_s19, 2 }
  0x2e   : > { %1697 = vmatprep.subr.bf16.mxu1 %v1847_v49  ;;  %s175_s20 = scalar_lea.vmem %s2229_s3, %s1422_s13 }
  0x2f   : > { %1026 = vmatmul.mubr.bf16.gmra.mrb[4].mxu0 %v1844_v46  ;;  %v1423_v46 = vld [vmem:[%s2228_s2] ss:$0 sm:$0xff] }
  0x30   : > { %1091 = vmatmul.mubr.bf16.gmra.mrb[4].mxu1 %v1845_v47  ;;  %1658 = vmatpush3.bf16.msra.mxu0 %v1848_v50 }
  0x31   : > { %1698 = vmatpush3.bf16.msra.mxu1 %v1849_v51  ;;  %1659 = vmatprep.subr.bf16.mxu0 %v1850_v52 }
  0x32   : > { %1699 = vmatprep.subr.bf16.mxu1 %v1851_v53  ;;  %1033 = vmatprep.mubr.bf16.mxu0 %v1854_v56 }
  0x33   : > { %1098 = vmatprep.mubr.bf16.mxu1 %v1856_v57 }
  0x34   : > { %1660 = vmatpush3.bf16.msra.mxu0 %v1852_v54 }
  0x35   : > { %1700 = vmatpush3.bf16.msra.mxu1 %v1853_v55  ;;  %1661 = vmatprep.subr.bf16.mxu0 %v1860_v60 }
  0x36   : > { %1701 = vmatprep.subr.bf16.mxu1 %v1861_v61 }
  0x37   : > { %1034 = vmatmul.mubr.bf16.gmra.mrb[8].mxu0 %v1858_v58 }
  0x38   : > { %1099 = vmatmul.mubr.bf16.gmra.mrb[8].mxu1 %v1859_v59  ;;  %1662 = vmatpush3.bf16.msra.mxu0 %v1862_v62 }
  0x39   : > { %1702 = vmatpush3.bf16.msra.mxu1 %v1863_v63  ;;  %1663 = vmatprep.subr.bf16.mxu0 %v1864_v0 }
  0x3a   : > { %1703 = vmatprep.subr.bf16.mxu1 %v1865_v1  ;;  %1041 = vmatprep.mubr.bf16.mxu0 %v1868_v4 }
  0x3b   : > { %1106 = vmatprep.mubr.bf16.mxu1 %v1870_v5 }
  0x3c   : > { %1664 = vmatpush3.bf16.msra.mxu0 %v1866_v2 }
  0x3d   : > { %1704 = vmatpush3.bf16.msra.mxu1 %v1867_v3  ;;  %1665 = vmatprep.subr.bf16.mxu0 %v1874_v8 }
  0x3e   : > { %1705 = vmatprep.subr.bf16.mxu1 %v1875_v9 }
  0x3f   : > { %1042 = vmatmul.mubr.bf16.gmra.mrb[12].mxu0 %v1872_v6 }
  0x40   : > { %1107 = vmatmul.mubr.bf16.gmra.mrb[12].mxu1 %v1873_v7  ;;  %1666 = vmatpush3.bf16.msra.mxu0 %v1876_v10 }
  0x41   : > { %1706 = vmatpush3.bf16.msra.mxu1 %v1877_v11  ;;  %1667 = vmatprep.subr.bf16.mxu0 %v1878_v12 }
  0x42   : > { %1707 = vmatprep.subr.bf16.mxu1 %v1879_v13  ;;  %1147 = vmatprep.mubr.bf16.mxu0 %v1884_v17 }
  0x43   : > { %1212 = vmatprep.mubr.bf16.mxu1 %v1887_v19 }
  0x44   : > { %1668 = vmatpush3.bf16.msra.mxu0 %v1880_v14 }
  0x45   : > { %1708 = vmatpush3.bf16.msra.mxu1 %v1881_v15  ;;  %1745 = vmatprep.subr.bf16.mxu0 %v1888_v20 }
  0x46   : > { %1769 = vmatprep.subr.bf16.mxu1 %v1888_v20 }
  0x47   : > { %1148 = vmatmul.mubr.bf16.vlgmr.msra.gmra.mrb[16].mxu0 %v1882_v16 }
  0x48   : > { %1213 = vmatmul.mubr.bf16.vlgmr.msra.gmra.mrb[16].mxu1 %v1885_v18  ;;  %1746 = vmatpush3.bf16.msra.mxu0 %v1888_v20 }
  0x49   : > { %1777 = vmatpush3.bf16.msra.mxu1 %v1888_v20  ;;  %1747 = vmatprep.subr.bf16.mxu0 %v1889_v21 }
  0x4a   : > { %1770 = vmatprep.subr.bf16.mxu1 %v1889_v21  ;;  %1155 = vmatprep.mubr.bf16.mxu0 %v1890_v22 }
  0x4b   : > { %1220 = vmatprep.mubr.bf16.mxu1 %v1892_v23 }
  0x4c   : > { %1748 = vmatpush3.bf16.msra.mxu0 %v1889_v21 }
  0x4d   : > { %1778 = vmatpush3.bf16.msra.mxu1 %v1889_v21  ;;  %1749 = vmatprep.subr.bf16.mxu0 %v1896_v26 }
  0x4e   : > { %1771 = vmatprep.subr.bf16.mxu1 %v1896_v26 }
  0x4f   : > { %1156 = vmatmul.mubr.bf16.gmra.mrb[20].mxu0 %v1894_v24 }
  0x50   : > { %1221 = vmatmul.mubr.bf16.gmra.mrb[20].mxu1 %v1895_v25  ;;  %1163 = vmatprep.mubr.bf16.mxu0 %v1898_v27 }
  0x51   : > { %1750 = vmatpush3.bf16.msra.mxu0 %v1896_v26  ;;  %1228 = vmatprep.mubr.bf16.mxu1 %v1900_v28 }
  0x52   : > { %1779 = vmatpush3.bf16.msra.mxu1 %v1896_v26  ;;  %1751 = vmatprep.subr.bf16.mxu0 %v1897_v29 }
  0x53   : > { %1772 = vmatprep.subr.bf16.mxu1 %v1897_v29 }
  0x55   : > { %1752 = vmatpush3.bf16.msra.mxu0 %v1897_v29 }
  0x56   : > { %1780 = vmatpush3.bf16.msra.mxu1 %v1897_v29  ;;  %1753 = vmatprep.subr.bf16.mxu0 %v1904_v32 }
  0x57   : > { %1164 = vmatmul.mubr.bf16.gmra.mrb[24].mxu0 %v1902_v30  ;;  %1773 = vmatprep.subr.bf16.mxu1 %v1904_v32 }
  0x58   : > { %1229 = vmatmul.mubr.bf16.gmra.mrb[24].mxu1 %v1903_v31  ;;  %1171 = vmatprep.mubr.bf16.mxu0 %v1906_v33 }
  0x59   : > { %1754 = vmatpush3.bf16.msra.mxu0 %v1904_v32  ;;  %1236 = vmatprep.mubr.bf16.mxu1 %v1908_v34 }
  0x5a   : > { %1781 = vmatpush3.bf16.msra.mxu1 %v1904_v32  ;;  %1755 = vmatprep.subr.bf16.mxu0 %v1905_v35 }
  0x5b   : > { %1774 = vmatprep.subr.bf16.mxu1 %v1905_v35 }
  0x5d   : > { %1756 = vmatpush3.bf16.msra.mxu0 %v1905_v35 }
  0x5e   : > { %1782 = vmatpush3.bf16.msra.mxu1 %v1905_v35  ;;  %1757 = vmatprep.subr.bf16.mxu0 %v1912_v37 }
  0x5f   : > { %1172 = vmatmul.mubr.bf16.gmra.mrb[28].mxu0 %v1910_v36  ;;  %1775 = vmatprep.subr.bf16.mxu1 %v1912_v37 }
  0x60   : > { %1237 = vmatmul.mubr.bf16.gmra.mrb[28].mxu1 %v1911_v38  ;;  %1761 = vmatprep.mubr.bf16.mxu0 %v1914_v39 }
  0x61   : > { %1758 = vmatpush3.bf16.msra.mxu0 %v1912_v37  ;;  %1765 = vmatprep.mubr.bf16.mxu1 %v1915_v40 }
  0x62   : > { %1783 = vmatpush3.bf16.msra.mxu1 %v1912_v37  ;;  %1759 = vmatprep.subr.bf16.mxu0 %v1913_v41 }
  0x63   : > { %1776 = vmatprep.subr.bf16.mxu1 %v1913_v41 }
  0x65   : > { %1760 = vmatpush3.bf16.msra.mxu0 %v1913_v41 }
  0x66   : > { %1784 = vmatpush3.bf16.msra.mxu1 %v1913_v41 }
  0x68   : > { %1762 = vmatmul.mubr.bf16.vlgmr.msra.gmra.mrb[32].mxu0 %v1916_v42 }
  0x69   : > { %1766 = vmatmul.mubr.bf16.vlgmr.msra.gmra.mrb[32].mxu1 %v1917_v43 }
  0xfa   : > { %v1589_v44 = vpop.f32.mrb[0].mxu0 }
  0xfb   : > { %v1629_v45 = vpop.f32.mrb[0].mxu1  ;;  %v1590_v47 = vpop.f32.mrb[1].mxu0 }
  0xfc   : > { %v1591_v48 = vadd.f32 %v1590_v47, %v1589_v44  ;;  %v1630_v49 = vpop.f32.mrb[1].mxu1  ;;  %v1592_v50 = vpop.f32.mrb[2].mxu0 }
  0xfd   : > { %v1631_v51 = vadd.f32 %v1630_v49, %v1629_v45  ;;  %v1632_v52 = vpop.f32.mrb[2].mxu1  ;;  %v1593_v53 = vpop.f32.mrb[3].mxu0 }
  0xfe   : > { %v1020_v54 = vadd.f32 %v1591_v48, %v1423_v46  ;;  %v1594_v55 = vadd.f32 %v1593_v53, %v1592_v50  ;;  %v1633_v56 = vpop.f32.mrb[3].mxu1 }
  0xff   : > { %v1634_v57 = vadd.f32 %v1633_v56, %v1632_v52 }
 0x100   : > { %v1085_v58 = vadd.f32 %v1631_v51, %v1020_v54  ;;  %v1023_v59 = vadd.f32 %v1594_v55, %v1423_v46 }
 0x102   : > { %v1088_v60 = vadd.f32 %v1634_v57, %v1023_v59  ;;  %v1595_v61 = vpop.f32.mrb[4].mxu0 }
 0x103   : > { %v1635_v62 = vpop.f32.mrb[4].mxu1  ;;  %v1596_v63 = vpop.f32.mrb[5].mxu0 }
 0x104   : > { %v1597_v0 = vadd.f32 %v1596_v63, %v1595_v61  ;;  %v1636_v1 = vpop.f32.mrb[5].mxu1  ;;  %v1598_v2 = vpop.f32.mrb[6].mxu0 }
 0x105   : > { %v1637_v3 = vadd.f32 %v1636_v1, %v1635_v62  ;;  %v1638_v4 = vpop.f32.mrb[6].mxu1  ;;  %v1599_v5 = vpop.f32.mrb[7].mxu0 }
 0x106   : > { %v1028_v6 = vadd.f32 %v1597_v0, %v1423_v46  ;;  %v1600_v7 = vadd.f32 %v1599_v5, %v1598_v2  ;;  %v1639_v8 = vpop.f32.mrb[7].mxu1 }
 0x107   : > { %v1640_v9 = vadd.f32 %v1639_v8, %v1638_v4 }
 0x108   : > { %v1093_v10 = vadd.f32 %v1637_v3, %v1028_v6  ;;  %v1031_v11 = vadd.f32 %v1600_v7, %v1423_v46 }
 0x10a   : > { %v1096_v12 = vadd.f32 %v1640_v9, %v1031_v11  ;;  %v1601_v13 = vpop.f32.mrb[8].mxu0 }
 0x10b   : > { %v1641_v14 = vpop.f32.mrb[8].mxu1  ;;  %v1602_v15 = vpop.f32.mrb[9].mxu0 }
 0x10c   : > { %v1603_v16 = vadd.f32 %v1602_v15, %v1601_v13  ;;  %v1642_v17 = vpop.f32.mrb[9].mxu1  ;;  %v1604_v18 = vpop.f32.mrb[10].mxu0 }
 0x10d   : > { %v1643_v19 = vadd.f32 %v1642_v17, %v1641_v14  ;;  %v1644_v20 = vpop.f32.mrb[10].mxu1  ;;  %v1605_v21 = vpop.f32.mrb[11].mxu0 }
 0x10e   : > { %v1036_v22 = vadd.f32 %v1603_v16, %v1423_v46  ;;  %v1606_v23 = vadd.f32 %v1605_v21, %v1604_v18  ;;  %v1645_v24 = vpop.f32.mrb[11].mxu1 }
 0x10f   : > { %v1646_v25 = vadd.f32 %v1645_v24, %v1644_v20 }
 0x110   : > { %v1101_v26 = vadd.f32 %v1643_v19, %v1036_v22  ;;  %v1039_v27 = vadd.f32 %v1606_v23, %v1423_v46 }
 0x112   : > { %v1104_v28 = vadd.f32 %v1646_v25, %v1039_v27  ;;  %v1607_v29 = vpop.f32.mrb[12].mxu0 }
 0x113   : > { %v1647_v30 = vpop.f32.mrb[12].mxu1  ;;  %v1608_v31 = vpop.f32.mrb[13].mxu0 }
 0x114   : > { %v1648_v32 = vpop.f32.mrb[13].mxu1  ;;  %v1609_v33 = vadd.f32 %v1608_v31, %v1607_v29  ;;  %v1610_v35 = vpop.f32.mrb[14].mxu0 }
 0x115   : > { %v1649_v34 = vadd.f32 %v1648_v32, %v1647_v30  ;;  %v1650_v36 = vpop.f32.mrb[14].mxu1  ;;  %v1611_v37 = vpop.f32.mrb[15].mxu0 }
 0x116   : > { %v1651_v38 = vpop.f32.mrb[15].mxu1  ;;  %v1044_v39 = vadd.f32 %v1609_v33, %v1423_v46  ;;  %v1612_v40 = vadd.f32 %v1611_v37, %v1610_v35 }
 0x117   : > { %v1652_v41 = vadd.f32 %v1651_v38, %v1650_v36 }
 0x118   : > { %v1109_v42 = vadd.f32 %v1649_v34, %v1044_v39  ;;  %v1047_v43 = vadd.f32 %v1612_v40, %v1423_v46 }
 0x11a   : > { %v1112_v44 = vadd.f32 %v1652_v41, %v1047_v43  ;;  %v1669_v45 = vpop.f32.mrb[16].mxu0 }
 0x11b   : > { %v1670_v47 = vpop.f32.mrb[17].mxu0  ;;  %v1709_v48 = vpop.f32.mrb[16].mxu1 }
 0x11c   : > { %v1671_v49 = vadd.f32 %v1670_v47, %v1669_v45  ;;  %v1672_v50 = vpop.f32.mrb[18].mxu0  ;;  %v1710_v51 = vpop.f32.mrb[17].mxu1 }
 0x11d   : > { %v1673_v52 = vpop.f32.mrb[19].mxu0  ;;  %v1711_v54 = vadd.f32 %v1710_v51, %v1709_v48  ;;  %v1712_v55 = vpop.f32.mrb[18].mxu1 }
 0x11e   : > { %v1150_v53 = vadd.f32 %v1671_v49, %v1085_v58  ;;  %v1674_v56 = vadd.f32 %v1673_v52, %v1672_v50  ;;  %v1713_v57 = vpop.f32.mrb[19].mxu1 }
 0x11f   : > { %v1714_v61 = vadd.f32 %v1713_v57, %v1712_v55 }
 0x120   : > { %v1153_v59 = vadd.f32 %v1674_v56, %v1088_v60  ;;  %v1215_v62 = vadd.f32 %v1711_v54, %v1150_v53 }
 0x122   : > { %v1675_v63 = vpop.f32.mrb[20].mxu0  ;;  %v1218_v0 = vadd.f32 %v1714_v61, %v1153_v59 }
 0x123   : > { %v1676_v1 = vpop.f32.mrb[21].mxu0  ;;  %v1715_v46 = vpop.f32.mrb[20].mxu1 }
 0x124   : > { %v1677_v2 = vadd.f32 %v1676_v1, %v1675_v63  ;;  %v1678_v3 = vpop.f32.mrb[22].mxu0  ;;  %v1716_v4 = vpop.f32.mrb[21].mxu1 }
 0x125   : > { %v1679_v5 = vpop.f32.mrb[23].mxu0  ;;  %v1717_v7 = vadd.f32 %v1716_v4, %v1715_v46  ;;  %v1718_v8 = vpop.f32.mrb[22].mxu1 }
 0x126   : > { %v1158_v6 = vadd.f32 %v1677_v2, %v1093_v10  ;;  %v1680_v9 = vadd.f32 %v1679_v5, %v1678_v3  ;;  %v1719_v58 = vpop.f32.mrb[23].mxu1 }
 0x127   : > { %v1720_v13 = vadd.f32 %v1719_v58, %v1718_v8 }
 0x128   : > { %v1161_v11 = vadd.f32 %v1680_v9, %v1096_v12  ;;  %v1223_v14 = vadd.f32 %v1717_v7, %v1158_v6 }
 0x12a   : > { %v1681_v15 = vpop.f32.mrb[24].mxu0  ;;  %v1226_v60 = vadd.f32 %v1720_v13, %v1161_v11 }
 0x12b   : > { %v1682_v16 = vpop.f32.mrb[25].mxu0  ;;  %v1721_v17 = vpop.f32.mrb[24].mxu1 }
 0x12c   : > { %v1683_v18 = vadd.f32 %v1682_v16, %v1681_v15  ;;  %v1684_v19 = vpop.f32.mrb[26].mxu0  ;;  %v1722_v20 = vpop.f32.mrb[25].mxu1 }
 0x12d   : > { %v1685_v21 = vpop.f32.mrb[27].mxu0  ;;  %v1723_v23 = vadd.f32 %v1722_v20, %v1721_v17  ;;  %v1724_v24 = vpop.f32.mrb[26].mxu1 }
 0x12e   : > { %v1166_v22 = vadd.f32 %v1683_v18, %v1101_v26  ;;  %v1686_v25 = vadd.f32 %v1685_v21, %v1684_v19  ;;  %v1725_v10 = vpop.f32.mrb[27].mxu1 }
 0x12f   : > { %v1726_v29 = vadd.f32 %v1725_v10, %v1724_v24 }
 0x130   : > { %v1169_v27 = vadd.f32 %v1686_v25, %v1104_v28  ;;  %v1231_v30 = vadd.f32 %v1723_v23, %v1166_v22 }
 0x132   : > { %v1687_v31 = vpop.f32.mrb[28].mxu0  ;;  %v1234_v12 = vadd.f32 %v1726_v29, %v1169_v27 }
 0x133   : > { %v1688_v32 = vpop.f32.mrb[29].mxu0  ;;  %v1727_v33 = vpop.f32.mrb[28].mxu1 }
 0x134   : > { %v1689_v34 = vadd.f32 %v1688_v32, %v1687_v31  ;;  %v1690_v35 = vpop.f32.mrb[30].mxu0  ;;  %v1728_v36 = vpop.f32.mrb[29].mxu1 }
 0x135   : > { %v1691_v37 = vpop.f32.mrb[31].mxu0  ;;  %v1729_v39 = vadd.f32 %v1728_v36, %v1727_v33  ;;  %v1730_v40 = vpop.f32.mrb[30].mxu1 }
 0x136   : > { %v1174_v38 = vadd.f32 %v1689_v34, %v1109_v42  ;;  %v1692_v26 = vadd.f32 %v1691_v37, %v1690_v35  ;;  %v1731_v41 = vpop.f32.mrb[31].mxu1 }
 0x137   : > { %v1732_v45 = vadd.f32 %v1731_v41, %v1730_v40 }
 0x138   : > { %v1177_v43 = vadd.f32 %v1692_v26, %v1112_v44  ;;  %v1239_v47 = vadd.f32 %v1729_v39, %v1174_v38 }
 0x13a   : > { %v1242_v28 = vadd.f32 %v1732_v45, %v1177_v43 }
 0x13b   : > { %v1763_v48 = vpop.f32.mrb[32].mxu0 }
 0x13c   : > { %v1288_v49 = vadd.f32 %v1763_v48, %v1223_v14  ;;  %v1767_v50 = vpop.f32.mrb[32].mxu1  ;;  %v1279_v51 = vpop.f32.mrb[33].mxu0 }
 0x13d   : > { %v1304_v52 = vadd.f32 %v1767_v50, %v1239_v47  ;;  %v1280_v53 = vadd.f32 %v1279_v51, %v1215_v62  ;;  %v1295_v54 = vpop.f32.mrb[33].mxu1  ;;  %v1764_v55 = vpop.f32.mrb[34].mxu0 }
 0x13e   : > { %v1296_v56 = vadd.f32 %v1295_v54, %v1231_v30  ;;  %v1291_v42 = vadd.f32 %v1764_v55, %v1226_v60  ;;  %v1768_v57 = vpop.f32.mrb[34].mxu1  ;;  %v1282_v59 = vpop.f32.mrb[35].mxu0  ;;  %v1312_v44 = vmax.f32 %v1288_v49, 0.0 }
 0x13f   : > { %v1307_v61 = vadd.f32 %v1768_v57, %v1242_v28  ;;  %v1283_v63 = vadd.f32 %v1282_v59, %v1218_v0  ;;  %v1298_v1 = vpop.f32.mrb[35].mxu1  ;;  %v1316_v3 = vmax.f32 %v1304_v52, 0.0  ;;  %v1310_v4 = vmax.f32 %v1280_v53, 0.0 }
 0x140   : > { %v1313_v46 = vmax.f32 %v1291_v42, 0.0  ;;  %v1299_v2 = vadd.f32 %v1298_v1, %v1234_v12  ;;  %v1314_v6 = vmax.f32 %v1296_v56, 0.0 }
 0x141   : > { %v1317_v62 = vmax.f32 %v1307_v61, 0.0  ;;  %v1311_v5 = vmax.f32 %v1283_v63, 0.0 }
 0x142   : > { %v1558_v7 = vpack.c.bf16 %v1313_v46, %v1312_v44  ;;  %v1315_v8 = vmax.f32 %v1299_v2, 0.0 }
 0x143   : > { %v1568_v9 = vpack.c.bf16 %v1317_v62, %v1316_v3  ;;  %v1553_v58 = vpack.c.bf16 %v1311_v5, %v1310_v4 }
 0x144   : > { %1570 = vst [vmem:[%s175_s20 + $0x8] sm:$0xff] %v1558_v7   ;;  %v1563_v11 = vpack.c.bf16 %v1315_v8, %v1314_v6 }
 0x145   : > { %1572 = vst [vmem:[%s175_s20 + $0x18] sm:$0xff] %v1568_v9   ;;  %1554 = vst [vmem:[%s175_s20] sm:$0xff] %v1553_v58  }
 0x146   : > { %1571 = vst [vmem:[%s175_s20 + $0x10] sm:$0xff] %v1563_v11  }
 0x147 PF: > { %s13_s12 = sadd.s32 1, %s1924_s12  }
 0x148   : > { %p10_p4 = scmp.ge.s32.totalorder %s13_s12, 4  }
 0x14a   :  { %12 = sbr.rel (!%p10_p4) target bundleno = 1 (0x1), region = 62 }

// kernel: conv_forward.7
= control target key start
LH: loop header
LB: loop body
LE: loop exit
PB: predicated region body
PF: predicated region fallthrough
CT: control target
= control target key end

     0   :  { %s1555_s1 = inlined_call_operand.vmem [shape: bf16[1152,128], index: 1, kind: input, shape index: {}]   ;;  %s1556_s0 = inlined_call_operand.vmem [shape: bf16[18,1152], index: 0, kind: input, shape index: {}]   ;;  %s1557_s2 = inlined_call_operand.vmem [shape: f32[1,128], index: 2, kind: input, shape index: {}]   ;;  %s1558_s3 = inlined_call_operand.vmem [shape: f32[18,128], index: 3, kind: output, shape index: {}]  }
   0x1   :  { %v1171_v0 = vld [vmem:[%s1555_s1 + $0x40] sm:$0xff]   ;;  %v1175_v4 = vld [vmem:[%s1555_s1 + $0x48] sm:$0xff]   ;;  %v1179_v8 = vld [vmem:[%s1555_s1 + $0x50] sm:$0xff]  }
   0x2   :  { %v1172_v1 = vld [vmem:[%s1555_s1] sm:$0xff]   ;;  %1029 = vmatprep.subr.bf16.mxu0 %v1171_v0  ;;  %v1176_v5 = vld [vmem:[%s1555_s1 + $0x8] sm:$0xff]   ;;  %v1180_v9 = vld [vmem:[%s1555_s1 + $0x10] sm:$0xff]  }
   0x3   :  { %v1173_v2 = vld [vmem:[%s1555_s1 + $0xc0] sm:$0xff]   ;;  %1030 = vmatpush3.bf16.msra.mxu0 %v1172_v1  ;;  %v1177_v6 = vld [vmem:[%s1555_s1 + $0xc8] sm:$0xff]   ;;  %v1181_v10 = vld [vmem:[%s1555_s1 + $0xd0] sm:$0xff]  }
   0x4   :  { %v1174_v3 = vld [vmem:[%s1555_s1 + $0x80] sm:$0xff]   ;;  %1057 = vmatprep.subr.bf16.mxu1 %v1173_v2  ;;  %1031 = vmatprep.subr.bf16.mxu0 %v1175_v4  ;;  %v1178_v7 = vld [vmem:[%s1555_s1 + $0x88] sm:$0xff]   ;;  %v1182_v11 = vld [vmem:[%s1555_s1 + $0x90] sm:$0xff]  }
   0x5   :  { %1058 = vmatpush3.bf16.msra.mxu1 %v1174_v3  ;;  %v1183_v12 = vld [vmem:[%s1555_s1 + $0x58] sm:$0xff]   ;;  %v1187_v16 = vld [vmem:[%s1555_s1 + $0x60] sm:$0xff]   ;;  %v1191_v20 = vld [vmem:[%s1555_s1 + $0x68] sm:$0xff]  }
   0x6   :  { %1059 = vmatprep.subr.bf16.mxu1 %v1177_v6  ;;  %v1184_v13 = vld [vmem:[%s1555_s1 + $0x18] sm:$0xff]   ;;  %v1188_v17 = vld [vmem:[%s1555_s1 + $0x20] sm:$0xff]   ;;  %v1192_v21 = vld [vmem:[%s1555_s1 + $0x28] sm:$0xff]  }
   0x7   :  { %1032 = vmatpush3.bf16.msra.mxu0 %v1176_v5  ;;  %v1185_v14 = vld [vmem:[%s1555_s1 + $0xd8] sm:$0xff]   ;;  %v1189_v18 = vld [vmem:[%s1555_s1 + $0xe0] sm:$0xff]   ;;  %v1193_v22 = vld [vmem:[%s1555_s1 + $0xe8] sm:$0xff]  }
   0x8   :  { %1033 = vmatprep.subr.bf16.mxu0 %v1179_v8  ;;  %v1186_v15 = vld [vmem:[%s1555_s1 + $0x98] sm:$0xff]   ;;  %v1190_v19 = vld [vmem:[%s1555_s1 + $0xa0] sm:$0xff]   ;;  %v1194_v23 = vld [vmem:[%s1555_s1 + $0xa8] sm:$0xff]  }
   0x9   :  { %1060 = vmatpush3.bf16.msra.mxu1 %v1178_v7  ;;  %v1195_v24 = vld [vmem:[%s1555_s1 + $0x70] sm:$0xff]   ;;  %v1199_v28 = vld [vmem:[%s1555_s1 + $0x78] sm:$0xff]   ;;  %v1202_v31 = vld [vmem:[%s1556_s0] ss:$36 sps:$4 sm:$0xff]  }
   0xa   :  { %1061 = vmatprep.subr.bf16.mxu1 %v1181_v10  ;;  %v1196_v25 = vld [vmem:[%s1555_s1 + $0x30] sm:$0xff]   ;;  %v1200_v29 = vld [vmem:[%s1555_s1 + $0x38] sm:$0xff]   ;;  %v1204_v32 = vld [vmem:[%s1556_s0 + $0x4] ss:$36 sps:$4 sm:$0xff]  }
   0xb   :  { %1034 = vmatpush3.bf16.msra.mxu0 %v1180_v9  ;;  %v1197_v26 = vld [vmem:[%s1555_s1 + $0xf0] sm:$0xff]   ;;  %v1201_v30 = vld [vmem:[%s1555_s1 + $0xf8] sm:$0xff]   ;;  %723 = vmatprep.mubr.bf16.mxu0 %v1204_v32  ;;  %v1206_v34 = vld [vmem:[%s1555_s1 + $0x140] sm:$0xff]  }
   0xc   :  { %1035 = vmatprep.subr.bf16.mxu0 %v1183_v12  ;;  %v1198_v27 = vld [vmem:[%s1555_s1 + $0xb0] sm:$0xff]   ;;  %v1205_v33 = vld [vmem:[%s1555_s1 + $0xb8] sm:$0xff]   ;;  %v1207_v35 = vld [vmem:[%s1556_s0 + $0x8] ss:$36 sps:$4 sm:$0xff]  }
   0xd   :  { %1062 = vmatpush3.bf16.msra.mxu1 %v1182_v11  ;;  %v1209_v36 = vld [vmem:[%s1556_s0 + $0xc] ss:$36 sps:$4 sm:$0xff]   ;;  %v1210_v37 = vld [vmem:[%s1555_s1 + $0x100] sm:$0xff]   ;;  %v1221_v48 = vld [vmem:[%s1555_s1 + $0x158] sm:$0xff]  }
   0xe   :  { %1063 = vmatprep.subr.bf16.mxu1 %v1185_v14  ;;  %771 = vmatprep.mubr.bf16.mxu1 %v1209_v36  ;;  %v1211_v38 = vld [vmem:[%s1555_s1 + $0x1c0] sm:$0xff]   ;;  %v1213_v40 = vld [vmem:[%s1555_s1 + $0x148] sm:$0xff]   ;;  %v1217_v44 = vld [vmem:[%s1555_s1 + $0x150] sm:$0xff]  }
   0xf   :  { %1036 = vmatpush3.bf16.msra.mxu0 %v1184_v13  ;;  %v1212_v39 = vld [vmem:[%s1555_s1 + $0x180] sm:$0xff]   ;;  %v1214_v41 = vld [vmem:[%s1555_s1 + $0x108] sm:$0xff]   ;;  %v1218_v45 = vld [vmem:[%s1555_s1 + $0x110] sm:$0xff]  }
  0x10   :  { %1037 = vmatprep.subr.bf16.mxu0 %v1187_v16  ;;  %v1215_v42 = vld [vmem:[%s1555_s1 + $0x1c8] sm:$0xff]   ;;  %v1219_v46 = vld [vmem:[%s1555_s1 + $0x1d0] sm:$0xff]   ;;  %v1222_v49 = vld [vmem:[%s1555_s1 + $0x118] sm:$0xff]  }
  0x11   :  { %1064 = vmatpush3.bf16.msra.mxu1 %v1186_v15  ;;  %v1216_v43 = vld [vmem:[%s1555_s1 + $0x188] sm:$0xff]   ;;  %v1220_v47 = vld [vmem:[%s1555_s1 + $0x190] sm:$0xff]   ;;  %v1223_v50 = vld [vmem:[%s1555_s1 + $0x1d8] sm:$0xff]  }
  0x12   :  { %1065 = vmatprep.subr.bf16.mxu1 %v1189_v18  ;;  %v1224_v51 = vld [vmem:[%s1555_s1 + $0x198] sm:$0xff]   ;;  %v1225_v52 = vld [vmem:[%s1555_s1 + $0x160] sm:$0xff]   ;;  %v1229_v56 = vld [vmem:[%s1555_s1 + $0x168] sm:$0xff]  }
  0x13   :  { %1038 = vmatpush3.bf16.msra.mxu0 %v1188_v17  ;;  %v1226_v53 = vld [vmem:[%s1555_s1 + $0x120] sm:$0xff]   ;;  %v25_v57 = vld [vmem:[%s1556_s0 + $0x48] sm:$0x11]  ;;  %v1235_v63 = vld [vmem:[%s1555_s1 + $0x170] sm:$0xff]  }
  0x14   :  { %1039 = vmatprep.subr.bf16.mxu0 %v1191_v20  ;;  %v1227_v54 = vld [vmem:[%s1555_s1 + $0x1e0] sm:$0xff]   ;;  %v949_v58 = vcombine.high %v25_v57, %v25_v57  ;;  %v1231_v59 = vld [vmem:[%s1555_s1 + $0x128] sm:$0xff]   ;;  %v948_v60 = vcombine.low %v25_v57, %v25_v57  ;;  %v26_v0 = vld [vmem:[%s1556_s0 + $0x50] sm:$0x11] }
  0x15   :  { %1066 = vmatpush3.bf16.msra.mxu1 %v1190_v19  ;;  %v1228_v55 = vld [vmem:[%s1555_s1 + $0x1a0] sm:$0xff]   ;;  %v1233_v61 = vld [vmem:[%s1555_s1 + $0x1e8] sm:$0xff]   ;;  %v951_v1 = vcombine.high %v26_v0, %v26_v0  ;;  %v1237_v2 = vld [vmem:[%s1555_s1 + $0x130] sm:$0xff]   ;;  %v950_v3 = vcombine.low %v26_v0, %v26_v0 }
  0x16   :  { %1067 = vmatprep.subr.bf16.mxu1 %v1193_v22  ;;  %v1234_v62 = vld [vmem:[%s1555_s1 + $0x1a8] sm:$0xff]   ;;  %v1239_v4 = vld [vmem:[%s1555_s1 + $0x1f0] sm:$0xff]   ;;  %v1241_v6 = vld [vmem:[%s1555_s1 + $0x178] sm:$0xff]  }
  0x17   :  { %1040 = vmatpush3.bf16.msra.mxu0 %v1192_v21  ;;  %v1240_v5 = vld [vmem:[%s1555_s1 + $0x1b0] sm:$0xff]   ;;  %v1242_v7 = vld [vmem:[%s1555_s1 + $0x138] sm:$0xff]   ;;  %v1248_v12 = vld [vmem:[%s1555_s1 + $0x200] sm:$0xff]  }
  0x18   :  { %1041 = vmatprep.subr.bf16.mxu0 %v1195_v24  ;;  %v1243_v8 = vld [vmem:[%s1555_s1 + $0x1f8] sm:$0xff]   ;;  %v1244_v9 = vld [vmem:[%s1556_s0 + $0x10] ss:$36 sps:$4 sm:$0xff]   ;;  %v1252_v15 = vld [vmem:[%s1555_s1 + $0x208] sm:$0xff]  }
  0x19   :  { %1068 = vmatpush3.bf16.msra.mxu1 %v1194_v23  ;;  %v1246_v10 = vld [vmem:[%s1556_s0 + $0x14] ss:$36 sps:$4 sm:$0xff]   ;;  %v1251_v14 = vld [vmem:[%s1556_s0 + $0x1c] ss:$36 sps:$4 sm:$0xff]  }
  0x1a   :  { %1069 = vmatprep.subr.bf16.mxu1 %v1197_v26  ;;  %v1247_v11 = vld [vmem:[%s1555_s1 + $0x1b8] sm:$0xff]   ;;  %v1255_v18 = vld [vmem:[%s1555_s1 + $0x210] sm:$0xff]   ;;  %v28_v19 = vld [vmem:[%s1556_s0 + $0x60] sm:$0x11] }
  0x1b   :  { %1042 = vmatpush3.bf16.msra.mxu0 %v1196_v25  ;;  %v1249_v13 = vld [vmem:[%s1556_s0 + $0x18] ss:$36 sps:$4 sm:$0xff]   ;;  %v955_v21 = vcombine.high %v28_v19, %v28_v19  ;;  %v954_v22 = vcombine.low %v28_v19, %v28_v19  ;;  %v1263_v24 = vld [vmem:[%s1556_s0 + $0x20] ss:$36 sps:$4 sm:$0xff]   ;;  %v1260_v26 = vld [vmem:[%s1555_s1 + $0x228] sm:$0xff]  }
  0x1c   :  { %1043 = vmatprep.subr.bf16.mxu0 %v1199_v28  ;;  %v27_v16 = vld [vmem:[%s1556_s0 + $0x58] sm:$0x11]  ;;  %v1259_v25 = vld [vmem:[%s1555_s1 + $0x220] sm:$0xff]  }
  0x1d   :  { %1070 = vmatpush3.bf16.msra.mxu1 %v1198_v27  ;;  %v953_v17 = vcombine.high %v27_v16, %v27_v16  ;;  %v952_v20 = vcombine.low %v27_v16, %v27_v16  ;;  %v1258_v23 = vld [vmem:[%s1555_s1 + $0x218] sm:$0xff]   ;;  %v1261_v27 = vld [vmem:[%s1555_s1 + $0x230] sm:$0xff]  }
  0x1e   :  { %1071 = vmatprep.subr.bf16.mxu1 %v1201_v30  ;;  %v1262_v28 = vld [vmem:[%s1555_s1 + $0x238] sm:$0xff]  }
  0x1f   :  { %1044 = vmatpush3.bf16.msra.mxu0 %v1200_v29  ;;  %v1264_v29 = vld [vmem:[%s1556_s0 + $0x68] ss:$0 sps:$4 sm:$0x11]  }
  0x20   :  { %1085 = vmatprep.subr.bf16.mxu0 %v1206_v34 }
  0x21   :  { %1072 = vmatpush3.bf16.msra.mxu1 %v1205_v33 }
  0x22   :  { %724 = vmatmul.mubr.bf16.vlgmr.msra.gmra.mrb[0].mxu0 %v1202_v31  ;;  %1113 = vmatprep.subr.bf16.mxu1 %v1211_v38  ;;  %v938_v31 = vld [vmem:[%s1557_s2] ss:$0 sm:$0xff] }
  0x23   :  { %1086 = vmatpush3.bf16.msra.mxu0 %v1210_v37  ;;  %731 = vmatprep.mubr.bf16.mxu0 %v949_v58 }
  0x24   :  { %772 = vmatmul.mubr.bf16.vlgmr.msra.gmra.mrb[0].mxu1 %v1207_v35  ;;  %1087 = vmatprep.subr.bf16.mxu0 %v1213_v40 }
  0x25   :  { %1114 = vmatpush3.bf16.msra.mxu1 %v1212_v39  ;;  %779 = vmatprep.mubr.bf16.mxu1 %v951_v1 }
  0x26   :  { %1115 = vmatprep.subr.bf16.mxu1 %v1215_v42 }
  0x27   :  { %1088 = vmatpush3.bf16.msra.mxu0 %v1214_v41 }
  0x28   :  { %1089 = vmatprep.subr.bf16.mxu0 %v1217_v44 }
  0x29   :  { %1116 = vmatpush3.bf16.msra.mxu1 %v1216_v43 }
  0x2a   :  { %1117 = vmatprep.subr.bf16.mxu1 %v1219_v46  ;;  %732 = vmatmul.mubr.bf16.gmra.mrb[4].mxu0 %v948_v60 }
  0x2b   :  { %1090 = vmatpush3.bf16.msra.mxu0 %v1218_v45  ;;  %819 = vmatprep.mubr.bf16.mxu0 %v1246_v10 }
  0x2c   :  { %1091 = vmatprep.subr.bf16.mxu0 %v1221_v48  ;;  %780 = vmatmul.mubr.bf16.gmra.mrb[4].mxu1 %v950_v3 }
  0x2d   :  { %1118 = vmatpush3.bf16.msra.mxu1 %v1220_v47  ;;  %867 = vmatprep.mubr.bf16.mxu1 %v1251_v14 }
  0x2e   :  { %1119 = vmatprep.subr.bf16.mxu1 %v1223_v50 }
  0x2f   :  { %1092 = vmatpush3.bf16.msra.mxu0 %v1222_v49 }
  0x30   :  { %1093 = vmatprep.subr.bf16.mxu0 %v1225_v52 }
  0x31   :  { %1120 = vmatpush3.bf16.msra.mxu1 %v1224_v51 }
  0x32   :  { %1121 = vmatprep.subr.bf16.mxu1 %v1227_v54 }
  0x33   :  { %1094 = vmatpush3.bf16.msra.mxu0 %v1226_v53 }
  0x34   :  { %1095 = vmatprep.subr.bf16.mxu0 %v1229_v56 }
  0x35   :  { %1122 = vmatpush3.bf16.msra.mxu1 %v1228_v55 }
  0x36   :  { %1123 = vmatprep.subr.bf16.mxu1 %v1233_v61 }
  0x37   :  { %1096 = vmatpush3.bf16.msra.mxu0 %v1231_v59 }
  0x38   :  { %1097 = vmatprep.subr.bf16.mxu0 %v1235_v63 }
  0x39   :  { %1124 = vmatpush3.bf16.msra.mxu1 %v1234_v62 }
  0x3a   :  { %1125 = vmatprep.subr.bf16.mxu1 %v1239_v4 }
  0x3b   :  { %1098 = vmatpush3.bf16.msra.mxu0 %v1237_v2 }
  0x3c   :  { %1099 = vmatprep.subr.bf16.mxu0 %v1241_v6 }
  0x3d   :  { %1126 = vmatpush3.bf16.msra.mxu1 %v1240_v5 }
  0x3e   :  { %1127 = vmatprep.subr.bf16.mxu1 %v1243_v8 }
  0x3f   :  { %1100 = vmatpush3.bf16.msra.mxu0 %v1242_v7 }
  0x40   :  { %1151 = vmatprep.subr.bf16.mxu0 %v1248_v12 }
  0x41   :  { %1128 = vmatpush3.bf16.msra.mxu1 %v1247_v11 }
  0x42   :  { %820 = vmatmul.mubr.bf16.vlgmr.msra.gmra.mrb[8].mxu0 %v1244_v9 }
  0x43   :  { %1152 = vmatpush3.bf16.msra.mxu0 %v1248_v12  ;;  %827 = vmatprep.mubr.bf16.mxu0 %v953_v17 }
  0x44   :  { %868 = vmatmul.mubr.bf16.vlgmr.msra.gmra.mrb[8].mxu1 %v1249_v13  ;;  %1153 = vmatprep.subr.bf16.mxu0 %v1252_v15 }
  0x45   :  { %875 = vmatprep.mubr.bf16.mxu1 %v955_v21 }
  0x47   :  { %1154 = vmatpush3.bf16.msra.mxu0 %v1252_v15 }
  0x48   :  { %1155 = vmatprep.subr.bf16.mxu0 %v1255_v18 }
  0x4a   :  { %828 = vmatmul.mubr.bf16.gmra.mrb[12].mxu0 %v952_v20 }
  0x4b   :  { %1156 = vmatpush3.bf16.msra.mxu0 %v1255_v18  ;;  %1167 = vmatprep.mubr.bf16.mxu0 %v1263_v24 }
  0x4c   :  { %876 = vmatmul.mubr.bf16.gmra.mrb[12].mxu1 %v954_v22  ;;  %1157 = vmatprep.subr.bf16.mxu0 %v1258_v23 }
  0x4f   :  { %1158 = vmatpush3.bf16.msra.mxu0 %v1258_v23 }
  0x50   :  { %1159 = vmatprep.subr.bf16.mxu0 %v1259_v25 }
  0x53   :  { %1160 = vmatpush3.bf16.msra.mxu0 %v1259_v25 }
  0x54   :  { %1161 = vmatprep.subr.bf16.mxu0 %v1260_v26 }
  0x57   :  { %1162 = vmatpush3.bf16.msra.mxu0 %v1260_v26 }
  0x58   :  { %1163 = vmatprep.subr.bf16.mxu0 %v1261_v27 }
  0x5b   :  { %1164 = vmatpush3.bf16.msra.mxu0 %v1261_v27 }
  0x5c   :  { %1165 = vmatprep.subr.bf16.mxu0 %v1262_v28 }
  0x5f   :  { %1166 = vmatpush3.bf16.msra.mxu0 %v1262_v28 }
  0x62   :  { %1168 = vmatmul.mubr.bf16.vlgmr.msra.gmra.mrb[16].mxu0 %v1264_v29 }
  0xf5   :  { %v1045_v30 = vpop.f32.mrb[0].mxu0 }
  0xf6   :  { %v1046_v32 = vpop.f32.mrb[1].mxu0 }
  0xf7   :  { %v1047_v33 = vadd.f32 %v1046_v32, %v1045_v30  ;;  %v1048_v34 = vpop.f32.mrb[2].mxu0  ;;  %v1073_v35 = vpop.f32.mrb[0].mxu1 }
  0xf8   :  { %v1049_v36 = vpop.f32.mrb[3].mxu0  ;;  %v1074_v39 = vpop.f32.mrb[1].mxu1 }
  0xf9   :  { %v726_v37 = vadd.f32 %v1047_v33, %v938_v31  ;;  %v1050_v38 = vadd.f32 %v1049_v36, %v1048_v34  ;;  %v1075_v40 = vadd.f32 %v1074_v39, %v1073_v35  ;;  %v1076_v41 = vpop.f32.mrb[2].mxu1 }
  0xfa   :  { %v1077_v43 = vpop.f32.mrb[3].mxu1 }
  0xfb   :  { %v729_v42 = vadd.f32 %v1050_v38, %v938_v31  ;;  %v774_v44 = vadd.f32 %v1075_v40, %v726_v37  ;;  %v1078_v45 = vadd.f32 %v1077_v43, %v1076_v41 }
  0xfd   :  { %v777_v46 = vadd.f32 %v1078_v45, %v729_v42  ;;  %v1051_v47 = vpop.f32.mrb[4].mxu0 }
  0xfe   :  { %v1052_v48 = vpop.f32.mrb[5].mxu0 }
  0xff   :  { %v1053_v49 = vadd.f32 %v1052_v48, %v1051_v47  ;;  %v1054_v50 = vpop.f32.mrb[6].mxu0  ;;  %v1079_v53 = vpop.f32.mrb[4].mxu1 }
 0x100   :  { %v1055_v51 = vpop.f32.mrb[7].mxu0  ;;  %v1080_v54 = vpop.f32.mrb[5].mxu1 }
 0x101   :  { %v734_v52 = vadd.f32 %v1053_v49, %v938_v31  ;;  %v1081_v55 = vadd.f32 %v1080_v54, %v1079_v53  ;;  %v1082_v56 = vpop.f32.mrb[6].mxu1 }
 0x102   :  { %v1083_v57 = vpop.f32.mrb[7].mxu1 }
 0x103   :  { %v782_v58 = vadd.f32 %v1081_v55, %v734_v52 }
 0x115   :  { %v1101_v59 = vpop.f32.mrb[8].mxu0 }
 0x116   :  { %v1102_v60 = vpop.f32.mrb[9].mxu0 }
 0x117   :  { %v1103_v61 = vadd.f32 %v1102_v60, %v1101_v59  ;;  %v1104_v62 = vpop.f32.mrb[10].mxu0  ;;  %v1129_v63 = vpop.f32.mrb[8].mxu1 }
 0x118   :  { %v1105_v0 = vpop.f32.mrb[11].mxu0  ;;  %v1130_v3 = vpop.f32.mrb[9].mxu1 }
 0x119   :  { %v822_v1 = vadd.f32 %v1103_v61, %v774_v44  ;;  %v1106_v2 = vadd.f32 %v1105_v0, %v1104_v62  ;;  %v1131_v4 = vadd.f32 %v1130_v3, %v1129_v63  ;;  %v1132_v5 = vpop.f32.mrb[10].mxu1 }
 0x11a   :  { %v1133_v7 = vpop.f32.mrb[11].mxu1 }
 0x11b   :  { %v825_v6 = vadd.f32 %v1106_v2, %v777_v46  ;;  %v1134_v8 = vadd.f32 %v1133_v7, %v1132_v5  ;;  %v870_v9 = vadd.f32 %v1131_v4, %v822_v1 }
 0x11d   :  { %v1107_v10 = vpop.f32.mrb[12].mxu0  ;;  %v873_v12 = vadd.f32 %v1134_v8, %v825_v6 }
 0x11e   :  { %v1108_v11 = vpop.f32.mrb[13].mxu0 }
 0x11f   :  { %v1109_v13 = vadd.f32 %v1108_v11, %v1107_v10  ;;  %v1110_v14 = vpop.f32.mrb[14].mxu0  ;;  %v1135_v15 = vpop.f32.mrb[12].mxu1 }
 0x120   :  { %v1111_v16 = vpop.f32.mrb[15].mxu0  ;;  %v1136_v18 = vpop.f32.mrb[13].mxu1 }
 0x121   :  { %v830_v17 = vadd.f32 %v1109_v13, %v782_v58  ;;  %v1137_v19 = vadd.f32 %v1136_v18, %v1135_v15  ;;  %v1138_v20 = vpop.f32.mrb[14].mxu1 }
 0x122   :  { %v1139_v21 = vpop.f32.mrb[15].mxu1 }
 0x123   :  { %v878_v22 = vadd.f32 %v1137_v19, %v830_v17 }
 0x135   :  { %v1169_v23 = vpop.f32.mrb[16].mxu0 }
 0x136   :  { %v926_v24 = vadd.f32 %v1169_v23, %v878_v22  ;;  %v917_v25 = vpop.f32.mrb[17].mxu0 }
 0x137   :  { %v918_v26 = vadd.f32 %v917_v25, %v870_v9  ;;  %v1170_v27 = vpop.f32.mrb[18].mxu0 }
 0x138   :  { %933 = vst [vmem:[%s1558_s3 + $0x10] sm:$0x3] %v926_v24  ;;  %v920_v28 = vpop.f32.mrb[19].mxu0 }
 0x139   :  { %931 = vst [vmem:[%s1558_s3] sm:$0xff] %v918_v26  ;;  %v921_v29 = vadd.f32 %v920_v28, %v873_v12 }
 0x13b   :  { %932 = vst [vmem:[%s1558_s3 + $0x8] sm:$0xff] %v921_v29 }

</bundles_post_ra>
